<compile_context>
chip_gen: v5e
topology: v5e:2x2
jax: 0.10.0
libtpu: 0.0.40
codegen_flags: <defaults>
</compile_context>

<pallas_src>
import functools
import math

import jax
import jax.numpy as jnp
from jax.experimental import pallas as pl
from jax.experimental.pallas import tpu as pltpu


# ----------------------------------------------------------------------------
# Fused kernel
# ----------------------------------------------------------------------------
def _run_layer(x_flat_bf, wih_ref, whh_ref, b_ref, h0, c0,
               n_steps, H, Bp, gx_ref, out_buf):
    """One pyramid LSTM layer.

    x_flat_bf : (n_steps*Bp, D_in) bf16 value, time-major rows (t*Bp + b).
    gx_ref    : (n_steps*Bp, 4H) f32 scratch for the hoisted input projection.
    out_buf   : (n_steps//2*Bp, 2H) bf16 scratch for the pyramid concat, or
                None for the last layer.
    Returns (h_final_f32, c_final_f32) of shape (Bp, H).
    """
    # Hoisted input projection for ALL timesteps + bias folded in once.
    gx_ref[...] = (
        jnp.dot(x_flat_bf, wih_ref[...], preferred_element_type=jnp.float32)
        + b_ref[...])

    whh = whh_ref[...]          # (H, 4H) bf16, loaded once per layer
    h = h0                      # f32 (Bp, H)
    c = c0                      # f32 (Bp, H)
    h_bf = h.astype(jnp.bfloat16)

    def cell(t, h_bf_in, c_in):
        # Serial critical path: one small h @ Whh matmul + gate math.
        gates = gx_ref[pl.ds(t * Bp, Bp), :] + jnp.dot(
            h_bf_in, whh, preferred_element_type=jnp.float32)
        # Gate order (i, f, o, g): one sigmoid over 3H lanes, one tanh over H.
        sig = jax.nn.sigmoid(gates[:, :3 * H])
        g_g = jnp.tanh(gates[:, 3 * H:])
        c_new = sig[:, H:2 * H] * c_in + sig[:, 0:H] * g_g
        h_new = sig[:, 2 * H:3 * H] * jnp.tanh(c_new)
        return h_new, c_new

    if out_buf is None:
        # Last layer: only the final hidden state is needed.
        for t in range(n_steps):
            h, c = cell(t, h_bf, c)
            h_bf = h.astype(jnp.bfloat16)
    else:
        # Two timesteps per iteration; pyramid concat [h_even | h_odd] is one
        # dense bf16 store per pair (matches torch.cat((out[:, ::2], out[:, 1::2]), 2)).
        for p in range(n_steps // 2):
            h_e, c = cell(2 * p, h_bf, c)
            h_e_bf = h_e.astype(jnp.bfloat16)
            h, c = cell(2 * p + 1, h_e_bf, c)
            h_bf = h.astype(jnp.bfloat16)
            out_buf[pl.ds(p * Bp, Bp), :] = jnp.concatenate(
                [h_e_bf, h_bf], axis=-1)
    return h, c


def pyramid_lstm_kernel(
    # inputs
    x_ref,
    wih1, whh1, b1, h01, c01,
    wih2, whh2, b2, h02, c02,
    wih3, whh3, b3, h03, c03,
    wih4, whh4, b4, h04, c04,
    fcw_ref, fcb_ref,
    # outputs
    probs_ref,
    h1_ref, c1_ref, h2_ref, c2_ref, h3_ref, c3_ref, h4_ref, c4_ref,
    # scratch
    gx1, gx2, gx3, gx4, buf1, buf2, buf3,
    *, seq_len, hidden_dim, batch_pad,
):
    T, H, Bp = seq_len, hidden_dim, batch_pad

    # layer 1: T steps over the raw (flattened, bf16) input
    h1, c1 = _run_layer(x_ref[...], wih1, whh1, b1, h01[...], c01[...],
                        T, H, Bp, gx1, buf1)
    # layer 2: T/2 steps over the pyramid output of layer 1
    h2, c2 = _run_layer(buf1[...], wih2, whh2, b2, h02[...], c02[...],
                        T // 2, 2 * H, Bp, gx2, buf2)
    # layer 3: T/4 steps
    h3, c3 = _run_layer(buf2[...], wih3, whh3, b3, h03[...], c03[...],
                        T // 4, 4 * H, Bp, gx3, buf3)
    # layer 4: T/8 steps; out4[:, -1, :] == final h4, never materialized
    h4, c4 = _run_layer(buf3[...], wih4, whh4, b4, h04[...], c04[...],
                        T // 8, 8 * H, Bp, gx4, None)

    # final Linear + softmax
    logits = jnp.dot(h4, fcw_ref[...],
                     preferred_element_type=jnp.float32) + fcb_ref[...]
    m = jnp.max(logits, axis=-1, keepdims=True)
    e = jnp.exp(logits - m)
    denom = jnp.sum(e, axis=-1, keepdims=True)
    probs_ref[...] = e * pl.reciprocal(denom, approx=True)

    # write final (h, c) of every layer once, at the end
    h1_ref[...] = h1; c1_ref[...] = c1
    h2_ref[...] = h2; c2_ref[...] = c2
    h3_ref[...] = h3; c3_ref[...] = c3
    h4_ref[...] = h4; c4_ref[...] = c4


# ----------------------------------------------------------------------------
# Wrapper
# ----------------------------------------------------------------------------
def _full_block(shape):
    nd = len(shape)
    return pl.BlockSpec(shape, lambda i, _nd=nd: (0,) * _nd)


def _pad_axis(a, axis, target):
    pad = target - a.shape[axis]
    if pad == 0:
        return a
    widths = [(0, 0)] * a.ndim
    widths[axis] = (0, pad)
    return jnp.pad(a, widths)


def _nbytes(shape, dtype):
    return math.prod(shape) * jnp.dtype(dtype).itemsize


def forward(params, x, hidden):
    """x: (B, T, D_in) f32 batch-first (like the PyTorch module).
    hidden: list of 4 tuples ((1, B, H_i), (1, B, H_i)).
    Returns (probs (B, output_dim), new_hidden)."""
    B, T, D = x.shape
    if T % 8 != 0:
        raise ValueError("sequence length must be divisible by 8 (pyramid x3)")
    H = params["hidden_dim"]
    O = params["fc"]["w"].shape[-1]
    Bp = max(8, -(-B // 8) * 8)                 # pad batch to sublane multiple

    # time-major once, pad batch once, flatten (T, Bp, D) -> (T*Bp, D), bf16
    xt = _pad_axis(jnp.transpose(x, (1, 0, 2)), 1, Bp)
    x_flat = xt.reshape(T * Bp, D).astype(jnp.bfloat16)

    inputs = [x_flat]
    for i in range(4):
        p = params[f"lstm{i + 1}"]
        inputs += [p["wih"], p["whh"], p["b"],
                   _pad_axis(hidden[i][0][0], 0, Bp),
                   _pad_axis(hidden[i][1][0], 0, Bp)]
    inputs += [params["fc"]["w"], params["fc"]["b"]]

    out_shape = [jax.ShapeDtypeStruct((Bp, O), jnp.float32)]
    for mult in (1, 2, 4, 8):
        out_shape += [jax.ShapeDtypeStruct((Bp, H * mult), jnp.float32)] * 2
    out_shape = tuple(out_shape)

    # scratch: hoisted-projection buffers (f32) + bf16 pyramid activation bufs
    scratch_defs = [
        ((T * Bp, 4 * H), jnp.float32),
        ((T // 2 * Bp, 8 * H), jnp.float32),
        ((T // 4 * Bp, 16 * H), jnp.float32),
        ((T // 8 * Bp, 32 * H), jnp.float32),
        ((T // 2 * Bp, 2 * H), jnp.bfloat16),
        ((T // 4 * Bp, 4 * H), jnp.bfloat16),
        ((T // 8 * Bp, 8 * H), jnp.bfloat16),
    ]
    scratch_shapes = [pltpu.VMEM(s, d) for s, d in scratch_defs]

    # explicit VMEM budget: inputs/outputs (x2 for pipeline buffers) + scratch
    in_bytes = sum(int(a.size) * a.dtype.itemsize for a in inputs)
    out_bytes = sum(_nbytes(s.shape, s.dtype) for s in out_shape)
    scratch_bytes = sum(_nbytes(s, d) for s, d in scratch_defs)
    vmem_limit = 2 * (in_bytes + out_bytes) + scratch_bytes + (4 << 20)
    vmem_limit = int(min(max(vmem_limit, 32 << 20), 128 << 20))

    results = pl.pallas_call(
        functools.partial(pyramid_lstm_kernel,
                          seq_len=T, hidden_dim=H, batch_pad=Bp),
        out_shape=out_shape,
        grid=(1,),
        in_specs=[_full_block(a.shape) for a in inputs],
        out_specs=tuple(_full_block(s.shape) for s in out_shape),
        scratch_shapes=scratch_shapes,
        compiler_params=pltpu.CompilerParams(
            dimension_semantics=("arbitrary",),
            vmem_limit_bytes=vmem_limit),
    )(*inputs)

    probs = results[0][:B]
    new_hidden = [(results[1 + 2 * i][:B][None], results[2 + 2 * i][:B][None])
                  for i in range(4)]
    return probs, new_hidden


# ----------------------------------------------------------------------------
# Parameters (PyTorch nn.LSTM layout -> kernel layout with gate reorder)
# ----------------------------------------------------------------------------
def convert_lstm_params(w_ih, w_hh, b_ih, b_hh):
    """PyTorch nn.LSTM params: w_ih (4H, D), w_hh (4H, H), gate order (i,f,g,o).
    Kernel layout: columns permuted to (i, f, o, g), transposed to (D, 4H) /
    (H, 4H) bf16, and a single combined f32 bias (1, 4H)."""
    H = w_ih.shape[0] // 4
    perm = jnp.concatenate([jnp.arange(0, H), jnp.arange(H, 2 * H),
                            jnp.arange(3 * H, 4 * H), jnp.arange(2 * H, 3 * H)])
    wih = jnp.transpose(w_ih[perm]).astype(jnp.bfloat16)
    whh = jnp.transpose(w_hh[perm]).astype(jnp.bfloat16)
    b = (b_ih + b_hh)[perm][None, :].astype(jnp.float32)
    return {"wih": wih, "whh": whh, "b": b}


def _uniform(key, shape, bound):
    return jax.random.uniform(key, shape, jnp.float32, -bound, bound)


def init_lstm_params(key, d_in, h):
    k = 1.0 / jnp.sqrt(jnp.float32(h))
    k1, k2, k3, k4 = jax.random.split(key, 4)
    # Generate in PyTorch layout, then convert (documents the gate permutation
    # needed when loading pretrained weights).
    w_ih = _uniform(k1, (4 * h, d_in), k)
    w_hh = _uniform(k2, (4 * h, h), k)
    b_ih = _uniform(k3, (4 * h,), k)
    b_hh = _uniform(k4, (4 * h,), k)
    return convert_lstm_params(w_ih, w_hh, b_ih, b_hh)


def init_params(key, input_dim, hidden_dim, output_dim):
    keys = jax.random.split(key, 5)
    params = {
        "hidden_dim": hidden_dim,
        "lstm1": init_lstm_params(keys[0], input_dim, hidden_dim),
        "lstm2": init_lstm_params(keys[1], 2 * hidden_dim, 2 * hidden_dim),
        "lstm3": init_lstm_params(keys[2], 4 * hidden_dim, 4 * hidden_dim),
        "lstm4": init_lstm_params(keys[3], 8 * hidden_dim, 8 * hidden_dim),
    }
    kf = 1.0 / jnp.sqrt(jnp.float32(8 * hidden_dim))
    kw, kb = jax.random.split(keys[4])
    params["fc"] = {"w": _uniform(kw, (8 * hidden_dim, output_dim), kf),
                    "b": _uniform(kb, (1, output_dim), kf)}
    return params


def init_hidden(batch_size, hidden_dim):
    hidden = []
    for mult in (1, 2, 4, 8):
        h = jnp.zeros((1, batch_size, hidden_dim * mult), jnp.float32)
        c = jnp.zeros((1, batch_size, hidden_dim * mult), jnp.float32)
        hidden.append((h, c))
    return hidden


if __name__ == "__main__":
    # Small shapes consistent with the module: batch=2, seq=8 (halved 3x),
    # input_dim=32, hidden_dim=16, output_dim=3.
    B, T, D_IN, H, O = 2, 8, 32, 16, 3
    key = jax.random.PRNGKey(0)
    kp, kx = jax.random.split(key)
    params = init_params(kp, D_IN, H, O)
    x = jax.random.normal(kx, (B, T, D_IN), jnp.float32)
    hidden = init_hidden(B, H)

    out, hidden = forward(params, x, hidden)
    jax.block_until_ready(out)

    assert out.shape == (B, O)
    # approx=True softmax reciprocal + bf16 weights -> loose tolerance
    assert jnp.allclose(jnp.sum(out, axis=1), 1.0, atol=1e-2)
    assert all(hidden[i][0].shape == (1, B, H * m)
               for i, m in enumerate((1, 2, 4, 8)))
    print("KERNEL_OK")
</pallas_src>

<mosaic_0001>
module attributes {stable_mosaic.version = 11 : i64} {
  func.func @pyramid_lstm_kernel(%arg0: i32, %arg1: memref<64x32xbf16, #tpu.memory_space<vmem>>, %arg2: memref<32x64xbf16, #tpu.memory_space<vmem>>, %arg3: memref<16x64xbf16, #tpu.memory_space<vmem>>, %arg4: memref<1x64xf32, #tpu.memory_space<vmem>>, %arg5: memref<8x16xf32, #tpu.memory_space<vmem>>, %arg6: memref<8x16xf32, #tpu.memory_space<vmem>>, %arg7: memref<32x128xbf16, #tpu.memory_space<vmem>>, %arg8: memref<32x128xbf16, #tpu.memory_space<vmem>>, %arg9: memref<1x128xf32, #tpu.memory_space<vmem>>, %arg10: memref<8x32xf32, #tpu.memory_space<vmem>>, %arg11: memref<8x32xf32, #tpu.memory_space<vmem>>, %arg12: memref<64x256xbf16, #tpu.memory_space<vmem>>, %arg13: memref<64x256xbf16, #tpu.memory_space<vmem>>, %arg14: memref<1x256xf32, #tpu.memory_space<vmem>>, %arg15: memref<8x64xf32, #tpu.memory_space<vmem>>, %arg16: memref<8x64xf32, #tpu.memory_space<vmem>>, %arg17: memref<128x512xbf16, #tpu.memory_space<vmem>>, %arg18: memref<128x512xbf16, #tpu.memory_space<vmem>>, %arg19: memref<1x512xf32, #tpu.memory_space<vmem>>, %arg20: memref<8x128xf32, #tpu.memory_space<vmem>>, %arg21: memref<8x128xf32, #tpu.memory_space<vmem>>, %arg22: memref<128x3xf32, #tpu.memory_space<vmem>>, %arg23: memref<1x3xf32, #tpu.memory_space<vmem>>, %arg24: memref<8x3xf32, #tpu.memory_space<vmem>>, %arg25: memref<8x16xf32, #tpu.memory_space<vmem>>, %arg26: memref<8x16xf32, #tpu.memory_space<vmem>>, %arg27: memref<8x32xf32, #tpu.memory_space<vmem>>, %arg28: memref<8x32xf32, #tpu.memory_space<vmem>>, %arg29: memref<8x64xf32, #tpu.memory_space<vmem>>, %arg30: memref<8x64xf32, #tpu.memory_space<vmem>>, %arg31: memref<8x128xf32, #tpu.memory_space<vmem>>, %arg32: memref<8x128xf32, #tpu.memory_space<vmem>>, %arg33: memref<64x64xf32, #tpu.memory_space<vmem>>, %arg34: memref<32x128xf32, #tpu.memory_space<vmem>>, %arg35: memref<16x256xf32, #tpu.memory_space<vmem>>, %arg36: memref<8x512xf32, #tpu.memory_space<vmem>>, %arg37: memref<32x32xbf16, #tpu.memory_space<vmem>>, %arg38: memref<16x64xbf16, #tpu.memory_space<vmem>>, %arg39: memref<8x128xbf16, #tpu.memory_space<vmem>>) attributes {dimension_semantics = [#tpu.dimension_semantics<arbitrary>], iteration_bounds = array<i64: 1>, scalar_prefetch = 0 : i64, scratch_operands = 7 : i64, tpu.core_type = #tpu.core_type<tc>, window_params = [{pipeline_mode = #tpu.pipeline_mode<synchronous>, transform_indices = @transform_0, window_bounds = array<i64: 64, 32>}, {pipeline_mode = #tpu.pipeline_mode<synchronous>, transform_indices = @transform_1, window_bounds = array<i64: 32, 64>}, {pipeline_mode = #tpu.pipeline_mode<synchronous>, transform_indices = @transform_2, window_bounds = array<i64: 16, 64>}, {pipeline_mode = #tpu.pipeline_mode<synchronous>, transform_indices = @transform_3, window_bounds = array<i64: 1, 64>}, {pipeline_mode = #tpu.pipeline_mode<synchronous>, transform_indices = @transform_4, window_bounds = array<i64: 8, 16>}, {pipeline_mode = #tpu.pipeline_mode<synchronous>, transform_indices = @transform_5, window_bounds = array<i64: 8, 16>}, {pipeline_mode = #tpu.pipeline_mode<synchronous>, transform_indices = @transform_6, window_bounds = array<i64: 32, 128>}, {pipeline_mode = #tpu.pipeline_mode<synchronous>, transform_indices = @transform_7, window_bounds = array<i64: 32, 128>}, {pipeline_mode = #tpu.pipeline_mode<synchronous>, transform_indices = @transform_8, window_bounds = array<i64: 1, 128>}, {pipeline_mode = #tpu.pipeline_mode<synchronous>, transform_indices = @transform_9, window_bounds = array<i64: 8, 32>}, {pipeline_mode = #tpu.pipeline_mode<synchronous>, transform_indices = @transform_10, window_bounds = array<i64: 8, 32>}, {pipeline_mode = #tpu.pipeline_mode<synchronous>, transform_indices = @transform_11, window_bounds = array<i64: 64, 256>}, {pipeline_mode = #tpu.pipeline_mode<synchronous>, transform_indices = @transform_12, window_bounds = array<i64: 64, 256>}, {pipeline_mode = #tpu.pipeline_mode<synchronous>, transform_indices = @transform_13, window_bounds = array<i64: 1, 256>}, {pipeline_mode = #tpu.pipeline_mode<synchronous>, transform_indices = @transform_14, window_bounds = array<i64: 8, 64>}, {pipeline_mode = #tpu.pipeline_mode<synchronous>, transform_indices = @transform_15, window_bounds = array<i64: 8, 64>}, {pipeline_mode = #tpu.pipeline_mode<synchronous>, transform_indices = @transform_16, window_bounds = array<i64: 128, 512>}, {pipeline_mode = #tpu.pipeline_mode<synchronous>, transform_indices = @transform_17, window_bounds = array<i64: 128, 512>}, {pipeline_mode = #tpu.pipeline_mode<synchronous>, transform_indices = @transform_18, window_bounds = array<i64: 1, 512>}, {pipeline_mode = #tpu.pipeline_mode<synchronous>, transform_indices = @transform_19, window_bounds = array<i64: 8, 128>}, {pipeline_mode = #tpu.pipeline_mode<synchronous>, transform_indices = @transform_20, window_bounds = array<i64: 8, 128>}, {pipeline_mode = #tpu.pipeline_mode<synchronous>, transform_indices = @transform_21, window_bounds = array<i64: 128, 3>}, {pipeline_mode = #tpu.pipeline_mode<synchronous>, transform_indices = @transform_22, window_bounds = array<i64: 1, 3>}, {pipeline_mode = #tpu.pipeline_mode<synchronous>, transform_indices = @transform_23, window_bounds = array<i64: 8, 3>}, {pipeline_mode = #tpu.pipeline_mode<synchronous>, transform_indices = @transform_24, window_bounds = array<i64: 8, 16>}, {pipeline_mode = #tpu.pipeline_mode<synchronous>, transform_indices = @transform_25, window_bounds = array<i64: 8, 16>}, {pipeline_mode = #tpu.pipeline_mode<synchronous>, transform_indices = @transform_26, window_bounds = array<i64: 8, 32>}, {pipeline_mode = #tpu.pipeline_mode<synchronous>, transform_indices = @transform_27, window_bounds = array<i64: 8, 32>}, {pipeline_mode = #tpu.pipeline_mode<synchronous>, transform_indices = @transform_28, window_bounds = array<i64: 8, 64>}, {pipeline_mode = #tpu.pipeline_mode<synchronous>, transform_indices = @transform_29, window_bounds = array<i64: 8, 64>}, {pipeline_mode = #tpu.pipeline_mode<synchronous>, transform_indices = @transform_30, window_bounds = array<i64: 8, 128>}, {pipeline_mode = #tpu.pipeline_mode<synchronous>, transform_indices = @transform_31, window_bounds = array<i64: 8, 128>}]} {
    %c0 = arith.constant 0 : index
    %c0_0 = arith.constant 0 : index
    %0 = vector.load %arg1[%c0, %c0_0] : memref<64x32xbf16, #tpu.memory_space<vmem>>, vector<64x32xbf16>
    %c0_1 = arith.constant 0 : index
    %c0_2 = arith.constant 0 : index
    %1 = vector.load %arg5[%c0_1, %c0_2] : memref<8x16xf32, #tpu.memory_space<vmem>>, vector<8x16xf32>
    %c0_3 = arith.constant 0 : index
    %c0_4 = arith.constant 0 : index
    %2 = vector.load %arg6[%c0_3, %c0_4] : memref<8x16xf32, #tpu.memory_space<vmem>>, vector<8x16xf32>
    %c0_5 = arith.constant 0 : index
    %c0_6 = arith.constant 0 : index
    %3 = vector.load %arg2[%c0_5, %c0_6] : memref<32x64xbf16, #tpu.memory_space<vmem>>, vector<32x64xbf16>
    %cst = arith.constant dense<0.000000e+00> : vector<64x64xf32>
    %4 = tpu.matmul %0, %3, %cst {dimension_numbers = #tpu.dot_dimension_numbers<[1], [0], [0], [1], [0, 0, 1, 1], [], []>} : vector<64x32xbf16>, vector<32x64xbf16>, vector<64x64xf32> -> vector<64x64xf32>
    %c0_7 = arith.constant 0 : index
    %c0_8 = arith.constant 0 : index
    %5 = vector.load %arg4[%c0_7, %c0_8] : memref<1x64xf32, #tpu.memory_space<vmem>>, vector<1x64xf32>
    %6 = vector.broadcast %5 : vector<1x64xf32> to vector<64x64xf32>
    %7 = arith.addf %4, %6 : vector<64x64xf32>
    %c0_9 = arith.constant 0 : index
    %c0_10 = arith.constant 0 : index
    %8 = vector.load %arg33[%c0_9, %c0_10] : memref<64x64xf32, #tpu.memory_space<vmem>>, vector<64x64xf32>
    tpu.vector_store %arg33[%c0_9, %c0_10], %7 {strides = array<i32>} : memref<64x64xf32, #tpu.memory_space<vmem>>, vector<64x64xf32>,
    %c0_11 = arith.constant 0 : index
    %c0_12 = arith.constant 0 : index
    %9 = vector.load %arg3[%c0_11, %c0_12] : memref<16x64xbf16, #tpu.memory_space<vmem>>, vector<16x64xbf16>
    %10 = arith.truncf %1 : vector<8x16xf32> to vector<8x16xbf16>
    %c0_13 = arith.constant 0 : index
    %c0_14 = arith.constant 0 : index
    %11 = vector.load %arg33[%c0_13, %c0_14] : memref<64x64xf32, #tpu.memory_space<vmem>>, vector<8x64xf32>
    %cst_15 = arith.constant dense<0.000000e+00> : vector<8x64xf32>
    %12 = tpu.matmul %10, %9, %cst_15 {dimension_numbers = #tpu.dot_dimension_numbers<[1], [0], [0], [1], [0, 0, 1, 1], [], []>} : vector<8x16xbf16>, vector<16x64xbf16>, vector<8x64xf32> -> vector<8x64xf32>
    %13 = arith.addf %11, %12 : vector<8x64xf32>
    %14 = vector.extract_strided_slice %13 {offsets = [0, 0], sizes = [8, 48], strides = [1, 1]} : vector<8x64xf32> to vector<8x48xf32>
    %15 = arith.negf %14 : vector<8x48xf32>
    %16 = math.exp %15 : vector<8x48xf32>
    %cst_16 = arith.constant 1.000000e+00 : f32
    %17 = vector.broadcast %cst_16 : f32 to vector<8x48xf32>
    %18 = arith.addf %17, %16 : vector<8x48xf32>
    %19 = arith.divf %17, %18 : vector<8x48xf32>
    %20 = vector.extract_strided_slice %13 {offsets = [0, 48], sizes = [8, 16], strides = [1, 1]} : vector<8x64xf32> to vector<8x16xf32>
    %21 = math.tanh %20 : vector<8x16xf32>
    %22 = vector.extract_strided_slice %19 {offsets = [0, 16], sizes = [8, 16], strides = [1, 1]} : vector<8x48xf32> to vector<8x16xf32>
    %23 = arith.mulf %22, %2 : vector<8x16xf32>
    %24 = vector.extract_strided_slice %19 {offsets = [0, 0], sizes = [8, 16], strides = [1, 1]} : vector<8x48xf32> to vector<8x16xf32>
    %25 = arith.mulf %24, %21 : vector<8x16xf32>
    %26 = arith.addf %23, %25 : vector<8x16xf32>
    %27 = vector.extract_strided_slice %19 {offsets = [0, 32], sizes = [8, 16], strides = [1, 1]} : vector<8x48xf32> to vector<8x16xf32>
    %28 = math.tanh %26 : vector<8x16xf32>
    %29 = arith.mulf %27, %28 : vector<8x16xf32>
    %30 = arith.truncf %29 : vector<8x16xf32> to vector<8x16xbf16>
    %c8 = arith.constant 8 : index
    %c0_17 = arith.constant 0 : index
    %31 = vector.load %arg33[%c8, %c0_17] : memref<64x64xf32, #tpu.memory_space<vmem>>, vector<8x64xf32>
    %cst_18 = arith.constant dense<0.000000e+00> : vector<8x64xf32>
    %32 = tpu.matmul %30, %9, %cst_18 {dimension_numbers = #tpu.dot_dimension_numbers<[1], [0], [0], [1], [0, 0, 1, 1], [], []>} : vector<8x16xbf16>, vector<16x64xbf16>, vector<8x64xf32> -> vector<8x64xf32>
    %33 = arith.addf %31, %32 : vector<8x64xf32>
    %34 = vector.extract_strided_slice %33 {offsets = [0, 0], sizes = [8, 48], strides = [1, 1]} : vector<8x64xf32> to vector<8x48xf32>
    %35 = arith.negf %34 : vector<8x48xf32>
    %36 = math.exp %35 : vector<8x48xf32>
    %cst_19 = arith.constant 1.000000e+00 : f32
    %37 = vector.broadcast %cst_19 : f32 to vector<8x48xf32>
    %38 = arith.addf %37, %36 : vector<8x48xf32>
    %39 = arith.divf %37, %38 : vector<8x48xf32>
    %40 = vector.extract_strided_slice %33 {offsets = [0, 48], sizes = [8, 16], strides = [1, 1]} : vector<8x64xf32> to vector<8x16xf32>
    %41 = math.tanh %40 : vector<8x16xf32>
    %42 = vector.extract_strided_slice %39 {offsets = [0, 16], sizes = [8, 16], strides = [1, 1]} : vector<8x48xf32> to vector<8x16xf32>
    %43 = arith.mulf %42, %26 : vector<8x16xf32>
    %44 = vector.extract_strided_slice %39 {offsets = [0, 0], sizes = [8, 16], strides = [1, 1]} : vector<8x48xf32> to vector<8x16xf32>
    %45 = arith.mulf %44, %41 : vector<8x16xf32>
    %46 = arith.addf %43, %45 : vector<8x16xf32>
    %47 = vector.extract_strided_slice %39 {offsets = [0, 32], sizes = [8, 16], strides = [1, 1]} : vector<8x48xf32> to vector<8x16xf32>
    %48 = math.tanh %46 : vector<8x16xf32>
    %49 = arith.mulf %47, %48 : vector<8x16xf32>
    %50 = arith.truncf %49 : vector<8x16xf32> to vector<8x16xbf16>
    %51 = tpu.concatenate %30, %50 in 1 : vector<8x16xbf16>, vector<8x16xbf16> -> vector<8x32xbf16>
    %c0_20 = arith.constant 0 : index
    %c0_21 = arith.constant 0 : index
    %52 = vector.load %arg37[%c0_20, %c0_21] : memref<32x32xbf16, #tpu.memory_space<vmem>>, vector<8x32xbf16>
    tpu.vector_store %arg37[%c0_20, %c0_21], %51 {strides = array<i32>} : memref<32x32xbf16, #tpu.memory_space<vmem>>, vector<8x32xbf16>,
    %c16 = arith.constant 16 : index
    %c0_22 = arith.constant 0 : index
    %53 = vector.load %arg33[%c16, %c0_22] : memref<64x64xf32, #tpu.memory_space<vmem>>, vector<8x64xf32>
    %cst_23 = arith.constant dense<0.000000e+00> : vector<8x64xf32>
    %54 = tpu.matmul %50, %9, %cst_23 {dimension_numbers = #tpu.dot_dimension_numbers<[1], [0], [0], [1], [0, 0, 1, 1], [], []>} : vector<8x16xbf16>, vector<16x64xbf16>, vector<8x64xf32> -> vector<8x64xf32>
    %55 = arith.addf %53, %54 : vector<8x64xf32>
    %56 = vector.extract_strided_slice %55 {offsets = [0, 0], sizes = [8, 48], strides = [1, 1]} : vector<8x64xf32> to vector<8x48xf32>
    %57 = arith.negf %56 : vector<8x48xf32>
    %58 = math.exp %57 : vector<8x48xf32>
    %cst_24 = arith.constant 1.000000e+00 : f32
    %59 = vector.broadcast %cst_24 : f32 to vector<8x48xf32>
    %60 = arith.addf %59, %58 : vector<8x48xf32>
    %61 = arith.divf %59, %60 : vector<8x48xf32>
    %62 = vector.extract_strided_slice %55 {offsets = [0, 48], sizes = [8, 16], strides = [1, 1]} : vector<8x64xf32> to vector<8x16xf32>
    %63 = math.tanh %62 : vector<8x16xf32>
    %64 = vector.extract_strided_slice %61 {offsets = [0, 16], sizes = [8, 16], strides = [1, 1]} : vector<8x48xf32> to vector<8x16xf32>
    %65 = arith.mulf %64, %46 : vector<8x16xf32>
    %66 = vector.extract_strided_slice %61 {offsets = [0, 0], sizes = [8, 16], strides = [1, 1]} : vector<8x48xf32> to vector<8x16xf32>
    %67 = arith.mulf %66, %63 : vector<8x16xf32>
    %68 = arith.addf %65, %67 : vector<8x16xf32>
    %69 = vector.extract_strided_slice %61 {offsets = [0, 32], sizes = [8, 16], strides = [1, 1]} : vector<8x48xf32> to vector<8x16xf32>
    %70 = math.tanh %68 : vector<8x16xf32>
    %71 = arith.mulf %69, %70 : vector<8x16xf32>
    %72 = arith.truncf %71 : vector<8x16xf32> to vector<8x16xbf16>
    %c24 = arith.constant 24 : index
    %c0_25 = arith.constant 0 : index
    %73 = vector.load %arg33[%c24, %c0_25] : memref<64x64xf32, #tpu.memory_space<vmem>>, vector<8x64xf32>
    %cst_26 = arith.constant dense<0.000000e+00> : vector<8x64xf32>
    %74 = tpu.matmul %72, %9, %cst_26 {dimension_numbers = #tpu.dot_dimension_numbers<[1], [0], [0], [1], [0, 0, 1, 1], [], []>} : vector<8x16xbf16>, vector<16x64xbf16>, vector<8x64xf32> -> vector<8x64xf32>
    %75 = arith.addf %73, %74 : vector<8x64xf32>
    %76 = vector.extract_strided_slice %75 {offsets = [0, 0], sizes = [8, 48], strides = [1, 1]} : vector<8x64xf32> to vector<8x48xf32>
    %77 = arith.negf %76 : vector<8x48xf32>
    %78 = math.exp %77 : vector<8x48xf32>
    %cst_27 = arith.constant 1.000000e+00 : f32
    %79 = vector.broadcast %cst_27 : f32 to vector<8x48xf32>
    %80 = arith.addf %79, %78 : vector<8x48xf32>
    %81 = arith.divf %79, %80 : vector<8x48xf32>
    %82 = vector.extract_strided_slice %75 {offsets = [0, 48], sizes = [8, 16], strides = [1, 1]} : vector<8x64xf32> to vector<8x16xf32>
    %83 = math.tanh %82 : vector<8x16xf32>
    %84 = vector.extract_strided_slice %81 {offsets = [0, 16], sizes = [8, 16], strides = [1, 1]} : vector<8x48xf32> to vector<8x16xf32>
    %85 = arith.mulf %84, %68 : vector<8x16xf32>
    %86 = vector.extract_strided_slice %81 {offsets = [0, 0], sizes = [8, 16], strides = [1, 1]} : vector<8x48xf32> to vector<8x16xf32>
    %87 = arith.mulf %86, %83 : vector<8x16xf32>
    %88 = arith.addf %85, %87 : vector<8x16xf32>
    %89 = vector.extract_strided_slice %81 {offsets = [0, 32], sizes = [8, 16], strides = [1, 1]} : vector<8x48xf32> to vector<8x16xf32>
    %90 = math.tanh %88 : vector<8x16xf32>
    %91 = arith.mulf %89, %90 : vector<8x16xf32>
    %92 = arith.truncf %91 : vector<8x16xf32> to vector<8x16xbf16>
    %93 = tpu.concatenate %72, %92 in 1 : vector<8x16xbf16>, vector<8x16xbf16> -> vector<8x32xbf16>
    %c8_28 = arith.constant 8 : index
    %c0_29 = arith.constant 0 : index
    %94 = vector.load %arg37[%c8_28, %c0_29] : memref<32x32xbf16, #tpu.memory_space<vmem>>, vector<8x32xbf16>
    tpu.vector_store %arg37[%c8_28, %c0_29], %93 {strides = array<i32>} : memref<32x32xbf16, #tpu.memory_space<vmem>>, vector<8x32xbf16>,
    %c32 = arith.constant 32 : index
    %c0_30 = arith.constant 0 : index
    %95 = vector.load %arg33[%c32, %c0_30] : memref<64x64xf32, #tpu.memory_space<vmem>>, vector<8x64xf32>
    %cst_31 = arith.constant dense<0.000000e+00> : vector<8x64xf32>
    %96 = tpu.matmul %92, %9, %cst_31 {dimension_numbers = #tpu.dot_dimension_numbers<[1], [0], [0], [1], [0, 0, 1, 1], [], []>} : vector<8x16xbf16>, vector<16x64xbf16>, vector<8x64xf32> -> vector<8x64xf32>
    %97 = arith.addf %95, %96 : vector<8x64xf32>
    %98 = vector.extract_strided_slice %97 {offsets = [0, 0], sizes = [8, 48], strides = [1, 1]} : vector<8x64xf32> to vector<8x48xf32>
    %99 = arith.negf %98 : vector<8x48xf32>
    %100 = math.exp %99 : vector<8x48xf32>
    %cst_32 = arith.constant 1.000000e+00 : f32
    %101 = vector.broadcast %cst_32 : f32 to vector<8x48xf32>
    %102 = arith.addf %101, %100 : vector<8x48xf32>
    %103 = arith.divf %101, %102 : vector<8x48xf32>
    %104 = vector.extract_strided_slice %97 {offsets = [0, 48], sizes = [8, 16], strides = [1, 1]} : vector<8x64xf32> to vector<8x16xf32>
    %105 = math.tanh %104 : vector<8x16xf32>
    %106 = vector.extract_strided_slice %103 {offsets = [0, 16], sizes = [8, 16], strides = [1, 1]} : vector<8x48xf32> to vector<8x16xf32>
    %107 = arith.mulf %106, %88 : vector<8x16xf32>
    %108 = vector.extract_strided_slice %103 {offsets = [0, 0], sizes = [8, 16], strides = [1, 1]} : vector<8x48xf32> to vector<8x16xf32>
    %109 = arith.mulf %108, %105 : vector<8x16xf32>
    %110 = arith.addf %107, %109 : vector<8x16xf32>
    %111 = vector.extract_strided_slice %103 {offsets = [0, 32], sizes = [8, 16], strides = [1, 1]} : vector<8x48xf32> to vector<8x16xf32>
    %112 = math.tanh %110 : vector<8x16xf32>
    %113 = arith.mulf %111, %112 : vector<8x16xf32>
    %114 = arith.truncf %113 : vector<8x16xf32> to vector<8x16xbf16>
    %c40 = arith.constant 40 : index
    %c0_33 = arith.constant 0 : index
    %115 = vector.load %arg33[%c40, %c0_33] : memref<64x64xf32, #tpu.memory_space<vmem>>, vector<8x64xf32>
    %cst_34 = arith.constant dense<0.000000e+00> : vector<8x64xf32>
    %116 = tpu.matmul %114, %9, %cst_34 {dimension_numbers = #tpu.dot_dimension_numbers<[1], [0], [0], [1], [0, 0, 1, 1], [], []>} : vector<8x16xbf16>, vector<16x64xbf16>, vector<8x64xf32> -> vector<8x64xf32>
    %117 = arith.addf %115, %116 : vector<8x64xf32>
    %118 = vector.extract_strided_slice %117 {offsets = [0, 0], sizes = [8, 48], strides = [1, 1]} : vector<8x64xf32> to vector<8x48xf32>
    %119 = arith.negf %118 : vector<8x48xf32>
    %120 = math.exp %119 : vector<8x48xf32>
    %cst_35 = arith.constant 1.000000e+00 : f32
    %121 = vector.broadcast %cst_35 : f32 to vector<8x48xf32>
    %122 = arith.addf %121, %120 : vector<8x48xf32>
    %123 = arith.divf %121, %122 : vector<8x48xf32>
    %124 = vector.extract_strided_slice %117 {offsets = [0, 48], sizes = [8, 16], strides = [1, 1]} : vector<8x64xf32> to vector<8x16xf32>
    %125 = math.tanh %124 : vector<8x16xf32>
    %126 = vector.extract_strided_slice %123 {offsets = [0, 16], sizes = [8, 16], strides = [1, 1]} : vector<8x48xf32> to vector<8x16xf32>
    %127 = arith.mulf %126, %110 : vector<8x16xf32>
    %128 = vector.extract_strided_slice %123 {offsets = [0, 0], sizes = [8, 16], strides = [1, 1]} : vector<8x48xf32> to vector<8x16xf32>
    %129 = arith.mulf %128, %125 : vector<8x16xf32>
    %130 = arith.addf %127, %129 : vector<8x16xf32>
    %131 = vector.extract_strided_slice %123 {offsets = [0, 32], sizes = [8, 16], strides = [1, 1]} : vector<8x48xf32> to vector<8x16xf32>
    %132 = math.tanh %130 : vector<8x16xf32>
    %133 = arith.mulf %131, %132 : vector<8x16xf32>
    %134 = arith.truncf %133 : vector<8x16xf32> to vector<8x16xbf16>
    %135 = tpu.concatenate %114, %134 in 1 : vector<8x16xbf16>, vector<8x16xbf16> -> vector<8x32xbf16>
    %c16_36 = arith.constant 16 : index
    %c0_37 = arith.constant 0 : index
    %136 = vector.load %arg37[%c16_36, %c0_37] : memref<32x32xbf16, #tpu.memory_space<vmem>>, vector<8x32xbf16>
    tpu.vector_store %arg37[%c16_36, %c0_37], %135 {strides = array<i32>} : memref<32x32xbf16, #tpu.memory_space<vmem>>, vector<8x32xbf16>,
    %c48 = arith.constant 48 : index
    %c0_38 = arith.constant 0 : index
    %137 = vector.load %arg33[%c48, %c0_38] : memref<64x64xf32, #tpu.memory_space<vmem>>, vector<8x64xf32>
    %cst_39 = arith.constant dense<0.000000e+00> : vector<8x64xf32>
    %138 = tpu.matmul %134, %9, %cst_39 {dimension_numbers = #tpu.dot_dimension_numbers<[1], [0], [0], [1], [0, 0, 1, 1], [], []>} : vector<8x16xbf16>, vector<16x64xbf16>, vector<8x64xf32> -> vector<8x64xf32>
    %139 = arith.addf %137, %138 : vector<8x64xf32>
    %140 = vector.extract_strided_slice %139 {offsets = [0, 0], sizes = [8, 48], strides = [1, 1]} : vector<8x64xf32> to vector<8x48xf32>
    %141 = arith.negf %140 : vector<8x48xf32>
    %142 = math.exp %141 : vector<8x48xf32>
    %cst_40 = arith.constant 1.000000e+00 : f32
    %143 = vector.broadcast %cst_40 : f32 to vector<8x48xf32>
    %144 = arith.addf %143, %142 : vector<8x48xf32>
    %145 = arith.divf %143, %144 : vector<8x48xf32>
    %146 = vector.extract_strided_slice %139 {offsets = [0, 48], sizes = [8, 16], strides = [1, 1]} : vector<8x64xf32> to vector<8x16xf32>
    %147 = math.tanh %146 : vector<8x16xf32>
    %148 = vector.extract_strided_slice %145 {offsets = [0, 16], sizes = [8, 16], strides = [1, 1]} : vector<8x48xf32> to vector<8x16xf32>
    %149 = arith.mulf %148, %130 : vector<8x16xf32>
    %150 = vector.extract_strided_slice %145 {offsets = [0, 0], sizes = [8, 16], strides = [1, 1]} : vector<8x48xf32> to vector<8x16xf32>
    %151 = arith.mulf %150, %147 : vector<8x16xf32>
    %152 = arith.addf %149, %151 : vector<8x16xf32>
    %153 = vector.extract_strided_slice %145 {offsets = [0, 32], sizes = [8, 16], strides = [1, 1]} : vector<8x48xf32> to vector<8x16xf32>
    %154 = math.tanh %152 : vector<8x16xf32>
    %155 = arith.mulf %153, %154 : vector<8x16xf32>
    %156 = arith.truncf %155 : vector<8x16xf32> to vector<8x16xbf16>
    %c56 = arith.constant 56 : index
    %c0_41 = arith.constant 0 : index
    %157 = vector.load %arg33[%c56, %c0_41] : memref<64x64xf32, #tpu.memory_space<vmem>>, vector<8x64xf32>
    %cst_42 = arith.constant dense<0.000000e+00> : vector<8x64xf32>
    %158 = tpu.matmul %156, %9, %cst_42 {dimension_numbers = #tpu.dot_dimension_numbers<[1], [0], [0], [1], [0, 0, 1, 1], [], []>} : vector<8x16xbf16>, vector<16x64xbf16>, vector<8x64xf32> -> vector<8x64xf32>
    %159 = arith.addf %157, %158 : vector<8x64xf32>
    %160 = vector.extract_strided_slice %159 {offsets = [0, 0], sizes = [8, 48], strides = [1, 1]} : vector<8x64xf32> to vector<8x48xf32>
    %161 = arith.negf %160 : vector<8x48xf32>
    %162 = math.exp %161 : vector<8x48xf32>
    %cst_43 = arith.constant 1.000000e+00 : f32
    %163 = vector.broadcast %cst_43 : f32 to vector<8x48xf32>
    %164 = arith.addf %163, %162 : vector<8x48xf32>
    %165 = arith.divf %163, %164 : vector<8x48xf32>
    %166 = vector.extract_strided_slice %159 {offsets = [0, 48], sizes = [8, 16], strides = [1, 1]} : vector<8x64xf32> to vector<8x16xf32>
    %167 = math.tanh %166 : vector<8x16xf32>
    %168 = vector.extract_strided_slice %165 {offsets = [0, 16], sizes = [8, 16], strides = [1, 1]} : vector<8x48xf32> to vector<8x16xf32>
    %169 = arith.mulf %168, %152 : vector<8x16xf32>
    %170 = vector.extract_strided_slice %165 {offsets = [0, 0], sizes = [8, 16], strides = [1, 1]} : vector<8x48xf32> to vector<8x16xf32>
    %171 = arith.mulf %170, %167 : vector<8x16xf32>
    %172 = arith.addf %169, %171 : vector<8x16xf32>
    %173 = vector.extract_strided_slice %165 {offsets = [0, 32], sizes = [8, 16], strides = [1, 1]} : vector<8x48xf32> to vector<8x16xf32>
    %174 = math.tanh %172 : vector<8x16xf32>
    %175 = arith.mulf %173, %174 : vector<8x16xf32>
    %176 = arith.truncf %175 : vector<8x16xf32> to vector<8x16xbf16>
    %177 = tpu.concatenate %156, %176 in 1 : vector<8x16xbf16>, vector<8x16xbf16> -> vector<8x32xbf16>
    %c24_44 = arith.constant 24 : index
    %c0_45 = arith.constant 0 : index
    %178 = vector.load %arg37[%c24_44, %c0_45] : memref<32x32xbf16, #tpu.memory_space<vmem>>, vector<8x32xbf16>
    tpu.vector_store %arg37[%c24_44, %c0_45], %177 {strides = array<i32>} : memref<32x32xbf16, #tpu.memory_space<vmem>>, vector<8x32xbf16>,
    %c0_46 = arith.constant 0 : index
    %c0_47 = arith.constant 0 : index
    %179 = vector.load %arg37[%c0_46, %c0_47] : memref<32x32xbf16, #tpu.memory_space<vmem>>, vector<32x32xbf16>
    %c0_48 = arith.constant 0 : index
    %c0_49 = arith.constant 0 : index
    %180 = vector.load %arg10[%c0_48, %c0_49] : memref<8x32xf32, #tpu.memory_space<vmem>>, vector<8x32xf32>
    %c0_50 = arith.constant 0 : index
    %c0_51 = arith.constant 0 : index
    %181 = vector.load %arg11[%c0_50, %c0_51] : memref<8x32xf32, #tpu.memory_space<vmem>>, vector<8x32xf32>
    %c0_52 = arith.constant 0 : index
    %c0_53 = arith.constant 0 : index
    %182 = vector.load %arg7[%c0_52, %c0_53] : memref<32x128xbf16, #tpu.memory_space<vmem>>, vector<32x128xbf16>
    %cst_54 = arith.constant dense<0.000000e+00> : vector<32x128xf32>
    %183 = tpu.matmul %179, %182, %cst_54 {dimension_numbers = #tpu.dot_dimension_numbers<[1], [0], [0], [1], [0, 0, 1, 1], [], []>} : vector<32x32xbf16>, vector<32x128xbf16>, vector<32x128xf32> -> vector<32x128xf32>
    %c0_55 = arith.constant 0 : index
    %c0_56 = arith.constant 0 : index
    %184 = vector.load %arg9[%c0_55, %c0_56] : memref<1x128xf32, #tpu.memory_space<vmem>>, vector<1x128xf32>
    %185 = vector.broadcast %184 : vector<1x128xf32> to vector<32x128xf32>
    %186 = arith.addf %183, %185 : vector<32x128xf32>
    %c0_57 = arith.constant 0 : index
    %c0_58 = arith.constant 0 : index
    %187 = vector.load %arg34[%c0_57, %c0_58] : memref<32x128xf32, #tpu.memory_space<vmem>>, vector<32x128xf32>
    tpu.vector_store %arg34[%c0_57, %c0_58], %186 {strides = array<i32>} : memref<32x128xf32, #tpu.memory_space<vmem>>, vector<32x128xf32>,
    %c0_59 = arith.constant 0 : index
    %c0_60 = arith.constant 0 : index
    %188 = vector.load %arg8[%c0_59, %c0_60] : memref<32x128xbf16, #tpu.memory_space<vmem>>, vector<32x128xbf16>
    %189 = arith.truncf %180 : vector<8x32xf32> to vector<8x32xbf16>
    %c0_61 = arith.constant 0 : index
    %c0_62 = arith.constant 0 : index
    %190 = vector.load %arg34[%c0_61, %c0_62] : memref<32x128xf32, #tpu.memory_space<vmem>>, vector<8x128xf32>
    %cst_63 = arith.constant dense<0.000000e+00> : vector<8x128xf32>
    %191 = tpu.matmul %189, %188, %cst_63 {dimension_numbers = #tpu.dot_dimension_numbers<[1], [0], [0], [1], [0, 0, 1, 1], [], []>} : vector<8x32xbf16>, vector<32x128xbf16>, vector<8x128xf32> -> vector<8x128xf32>
    %192 = arith.addf %190, %191 : vector<8x128xf32>
    %193 = vector.extract_strided_slice %192 {offsets = [0, 0], sizes = [8, 96], strides = [1, 1]} : vector<8x128xf32> to vector<8x96xf32>
    %194 = arith.negf %193 : vector<8x96xf32>
    %195 = math.exp %194 : vector<8x96xf32>
    %cst_64 = arith.constant 1.000000e+00 : f32
    %196 = vector.broadcast %cst_64 : f32 to vector<8x96xf32>
    %197 = arith.addf %196, %195 : vector<8x96xf32>
    %198 = arith.divf %196, %197 : vector<8x96xf32>
    %199 = vector.extract_strided_slice %192 {offsets = [0, 96], sizes = [8, 32], strides = [1, 1]} : vector<8x128xf32> to vector<8x32xf32>
    %200 = math.tanh %199 : vector<8x32xf32>
    %201 = vector.extract_strided_slice %198 {offsets = [0, 32], sizes = [8, 32], strides = [1, 1]} : vector<8x96xf32> to vector<8x32xf32>
    %202 = arith.mulf %201, %181 : vector<8x32xf32>
    %203 = vector.extract_strided_slice %198 {offsets = [0, 0], sizes = [8, 32], strides = [1, 1]} : vector<8x96xf32> to vector<8x32xf32>
    %204 = arith.mulf %203, %200 : vector<8x32xf32>
    %205 = arith.addf %202, %204 : vector<8x32xf32>
    %206 = vector.extract_strided_slice %198 {offsets = [0, 64], sizes = [8, 32], strides = [1, 1]} : vector<8x96xf32> to vector<8x32xf32>
    %207 = math.tanh %205 : vector<8x32xf32>
    %208 = arith.mulf %206, %207 : vector<8x32xf32>
    %209 = arith.truncf %208 : vector<8x32xf32> to vector<8x32xbf16>
    %c8_65 = arith.constant 8 : index
    %c0_66 = arith.constant 0 : index
    %210 = vector.load %arg34[%c8_65, %c0_66] : memref<32x128xf32, #tpu.memory_space<vmem>>, vector<8x128xf32>
    %cst_67 = arith.constant dense<0.000000e+00> : vector<8x128xf32>
    %211 = tpu.matmul %209, %188, %cst_67 {dimension_numbers = #tpu.dot_dimension_numbers<[1], [0], [0], [1], [0, 0, 1, 1], [], []>} : vector<8x32xbf16>, vector<32x128xbf16>, vector<8x128xf32> -> vector<8x128xf32>
    %212 = arith.addf %210, %211 : vector<8x128xf32>
    %213 = vector.extract_strided_slice %212 {offsets = [0, 0], sizes = [8, 96], strides = [1, 1]} : vector<8x128xf32> to vector<8x96xf32>
    %214 = arith.negf %213 : vector<8x96xf32>
    %215 = math.exp %214 : vector<8x96xf32>
    %cst_68 = arith.constant 1.000000e+00 : f32
    %216 = vector.broadcast %cst_68 : f32 to vector<8x96xf32>
    %217 = arith.addf %216, %215 : vector<8x96xf32>
    %218 = arith.divf %216, %217 : vector<8x96xf32>
    %219 = vector.extract_strided_slice %212 {offsets = [0, 96], sizes = [8, 32], strides = [1, 1]} : vector<8x128xf32> to vector<8x32xf32>
    %220 = math.tanh %219 : vector<8x32xf32>
    %221 = vector.extract_strided_slice %218 {offsets = [0, 32], sizes = [8, 32], strides = [1, 1]} : vector<8x96xf32> to vector<8x32xf32>
    %222 = arith.mulf %221, %205 : vector<8x32xf32>
    %223 = vector.extract_strided_slice %218 {offsets = [0, 0], sizes = [8, 32], strides = [1, 1]} : vector<8x96xf32> to vector<8x32xf32>
    %224 = arith.mulf %223, %220 : vector<8x32xf32>
    %225 = arith.addf %222, %224 : vector<8x32xf32>
    %226 = vector.extract_strided_slice %218 {offsets = [0, 64], sizes = [8, 32], strides = [1, 1]} : vector<8x96xf32> to vector<8x32xf32>
    %227 = math.tanh %225 : vector<8x32xf32>
    %228 = arith.mulf %226, %227 : vector<8x32xf32>
    %229 = arith.truncf %228 : vector<8x32xf32> to vector<8x32xbf16>
    %230 = tpu.concatenate %209, %229 in 1 : vector<8x32xbf16>, vector<8x32xbf16> -> vector<8x64xbf16>
    %c0_69 = arith.constant 0 : index
    %c0_70 = arith.constant 0 : index
    %231 = vector.load %arg38[%c0_69, %c0_70] : memref<16x64xbf16, #tpu.memory_space<vmem>>, vector<8x64xbf16>
    tpu.vector_store %arg38[%c0_69, %c0_70], %230 {strides = array<i32>} : memref<16x64xbf16, #tpu.memory_space<vmem>>, vector<8x64xbf16>,
    %c16_71 = arith.constant 16 : index
    %c0_72 = arith.constant 0 : index
    %232 = vector.load %arg34[%c16_71, %c0_72] : memref<32x128xf32, #tpu.memory_space<vmem>>, vector<8x128xf32>
    %cst_73 = arith.constant dense<0.000000e+00> : vector<8x128xf32>
    %233 = tpu.matmul %229, %188, %cst_73 {dimension_numbers = #tpu.dot_dimension_numbers<[1], [0], [0], [1], [0, 0, 1, 1], [], []>} : vector<8x32xbf16>, vector<32x128xbf16>, vector<8x128xf32> -> vector<8x128xf32>
    %234 = arith.addf %232, %233 : vector<8x128xf32>
    %235 = vector.extract_strided_slice %234 {offsets = [0, 0], sizes = [8, 96], strides = [1, 1]} : vector<8x128xf32> to vector<8x96xf32>
    %236 = arith.negf %235 : vector<8x96xf32>
    %237 = math.exp %236 : vector<8x96xf32>
    %cst_74 = arith.constant 1.000000e+00 : f32
    %238 = vector.broadcast %cst_74 : f32 to vector<8x96xf32>
    %239 = arith.addf %238, %237 : vector<8x96xf32>
    %240 = arith.divf %238, %239 : vector<8x96xf32>
    %241 = vector.extract_strided_slice %234 {offsets = [0, 96], sizes = [8, 32], strides = [1, 1]} : vector<8x128xf32> to vector<8x32xf32>
    %242 = math.tanh %241 : vector<8x32xf32>
    %243 = vector.extract_strided_slice %240 {offsets = [0, 32], sizes = [8, 32], strides = [1, 1]} : vector<8x96xf32> to vector<8x32xf32>
    %244 = arith.mulf %243, %225 : vector<8x32xf32>
    %245 = vector.extract_strided_slice %240 {offsets = [0, 0], sizes = [8, 32], strides = [1, 1]} : vector<8x96xf32> to vector<8x32xf32>
    %246 = arith.mulf %245, %242 : vector<8x32xf32>
    %247 = arith.addf %244, %246 : vector<8x32xf32>
    %248 = vector.extract_strided_slice %240 {offsets = [0, 64], sizes = [8, 32], strides = [1, 1]} : vector<8x96xf32> to vector<8x32xf32>
    %249 = math.tanh %247 : vector<8x32xf32>
    %250 = arith.mulf %248, %249 : vector<8x32xf32>
    %251 = arith.truncf %250 : vector<8x32xf32> to vector<8x32xbf16>
    %c24_75 = arith.constant 24 : index
    %c0_76 = arith.constant 0 : index
    %252 = vector.load %arg34[%c24_75, %c0_76] : memref<32x128xf32, #tpu.memory_space<vmem>>, vector<8x128xf32>
    %cst_77 = arith.constant dense<0.000000e+00> : vector<8x128xf32>
    %253 = tpu.matmul %251, %188, %cst_77 {dimension_numbers = #tpu.dot_dimension_numbers<[1], [0], [0], [1], [0, 0, 1, 1], [], []>} : vector<8x32xbf16>, vector<32x128xbf16>, vector<8x128xf32> -> vector<8x128xf32>
    %254 = arith.addf %252, %253 : vector<8x128xf32>
    %255 = vector.extract_strided_slice %254 {offsets = [0, 0], sizes = [8, 96], strides = [1, 1]} : vector<8x128xf32> to vector<8x96xf32>
    %256 = arith.negf %255 : vector<8x96xf32>
    %257 = math.exp %256 : vector<8x96xf32>
    %cst_78 = arith.constant 1.000000e+00 : f32
    %258 = vector.broadcast %cst_78 : f32 to vector<8x96xf32>
    %259 = arith.addf %258, %257 : vector<8x96xf32>
    %260 = arith.divf %258, %259 : vector<8x96xf32>
    %261 = vector.extract_strided_slice %254 {offsets = [0, 96], sizes = [8, 32], strides = [1, 1]} : vector<8x128xf32> to vector<8x32xf32>
    %262 = math.tanh %261 : vector<8x32xf32>
    %263 = vector.extract_strided_slice %260 {offsets = [0, 32], sizes = [8, 32], strides = [1, 1]} : vector<8x96xf32> to vector<8x32xf32>
    %264 = arith.mulf %263, %247 : vector<8x32xf32>
    %265 = vector.extract_strided_slice %260 {offsets = [0, 0], sizes = [8, 32], strides = [1, 1]} : vector<8x96xf32> to vector<8x32xf32>
    %266 = arith.mulf %265, %262 : vector<8x32xf32>
    %267 = arith.addf %264, %266 : vector<8x32xf32>
    %268 = vector.extract_strided_slice %260 {offsets = [0, 64], sizes = [8, 32], strides = [1, 1]} : vector<8x96xf32> to vector<8x32xf32>
    %269 = math.tanh %267 : vector<8x32xf32>
    %270 = arith.mulf %268, %269 : vector<8x32xf32>
    %271 = arith.truncf %270 : vector<8x32xf32> to vector<8x32xbf16>
    %272 = tpu.concatenate %251, %271 in 1 : vector<8x32xbf16>, vector<8x32xbf16> -> vector<8x64xbf16>
    %c8_79 = arith.constant 8 : index
    %c0_80 = arith.constant 0 : index
    %273 = vector.load %arg38[%c8_79, %c0_80] : memref<16x64xbf16, #tpu.memory_space<vmem>>, vector<8x64xbf16>
    tpu.vector_store %arg38[%c8_79, %c0_80], %272 {strides = array<i32>} : memref<16x64xbf16, #tpu.memory_space<vmem>>, vector<8x64xbf16>,
    %c0_81 = arith.constant 0 : index
    %c0_82 = arith.constant 0 : index
    %274 = vector.load %arg38[%c0_81, %c0_82] : memref<16x64xbf16, #tpu.memory_space<vmem>>, vector<16x64xbf16>
    %c0_83 = arith.constant 0 : index
    %c0_84 = arith.constant 0 : index
    %275 = vector.load %arg15[%c0_83, %c0_84] : memref<8x64xf32, #tpu.memory_space<vmem>>, vector<8x64xf32>
    %c0_85 = arith.constant 0 : index
    %c0_86 = arith.constant 0 : index
    %276 = vector.load %arg16[%c0_85, %c0_86] : memref<8x64xf32, #tpu.memory_space<vmem>>, vector<8x64xf32>
    %c0_87 = arith.constant 0 : index
    %c0_88 = arith.constant 0 : index
    %277 = vector.load %arg12[%c0_87, %c0_88] : memref<64x256xbf16, #tpu.memory_space<vmem>>, vector<64x256xbf16>
    %cst_89 = arith.constant dense<0.000000e+00> : vector<16x256xf32>
    %278 = tpu.matmul %274, %277, %cst_89 {dimension_numbers = #tpu.dot_dimension_numbers<[1], [0], [0], [1], [0, 0, 1, 1], [], []>} : vector<16x64xbf16>, vector<64x256xbf16>, vector<16x256xf32> -> vector<16x256xf32>
    %c0_90 = arith.constant 0 : index
    %c0_91 = arith.constant 0 : index
    %279 = vector.load %arg14[%c0_90, %c0_91] : memref<1x256xf32, #tpu.memory_space<vmem>>, vector<1x256xf32>
    %280 = vector.broadcast %279 : vector<1x256xf32> to vector<16x256xf32>
    %281 = arith.addf %278, %280 : vector<16x256xf32>
    %c0_92 = arith.constant 0 : index
    %c0_93 = arith.constant 0 : index
    %282 = vector.load %arg35[%c0_92, %c0_93] : memref<16x256xf32, #tpu.memory_space<vmem>>, vector<16x256xf32>
    tpu.vector_store %arg35[%c0_92, %c0_93], %281 {strides = array<i32>} : memref<16x256xf32, #tpu.memory_space<vmem>>, vector<16x256xf32>,
    %c0_94 = arith.constant 0 : index
    %c0_95 = arith.constant 0 : index
    %283 = vector.load %arg13[%c0_94, %c0_95] : memref<64x256xbf16, #tpu.memory_space<vmem>>, vector<64x256xbf16>
    %284 = arith.truncf %275 : vector<8x64xf32> to vector<8x64xbf16>
    %c0_96 = arith.constant 0 : index
    %c0_97 = arith.constant 0 : index
    %285 = vector.load %arg35[%c0_96, %c0_97] : memref<16x256xf32, #tpu.memory_space<vmem>>, vector<8x256xf32>
    %cst_98 = arith.constant dense<0.000000e+00> : vector<8x256xf32>
    %286 = tpu.matmul %284, %283, %cst_98 {dimension_numbers = #tpu.dot_dimension_numbers<[1], [0], [0], [1], [0, 0, 1, 1], [], []>} : vector<8x64xbf16>, vector<64x256xbf16>, vector<8x256xf32> -> vector<8x256xf32>
    %287 = arith.addf %285, %286 : vector<8x256xf32>
    %288 = vector.extract_strided_slice %287 {offsets = [0, 0], sizes = [8, 192], strides = [1, 1]} : vector<8x256xf32> to vector<8x192xf32>
    %289 = arith.negf %288 : vector<8x192xf32>
    %290 = math.exp %289 : vector<8x192xf32>
    %cst_99 = arith.constant 1.000000e+00 : f32
    %291 = vector.broadcast %cst_99 : f32 to vector<8x192xf32>
    %292 = arith.addf %291, %290 : vector<8x192xf32>
    %293 = arith.divf %291, %292 : vector<8x192xf32>
    %294 = vector.extract_strided_slice %287 {offsets = [0, 192], sizes = [8, 64], strides = [1, 1]} : vector<8x256xf32> to vector<8x64xf32>
    %295 = math.tanh %294 : vector<8x64xf32>
    %296 = vector.extract_strided_slice %293 {offsets = [0, 64], sizes = [8, 64], strides = [1, 1]} : vector<8x192xf32> to vector<8x64xf32>
    %297 = arith.mulf %296, %276 : vector<8x64xf32>
    %298 = vector.extract_strided_slice %293 {offsets = [0, 0], sizes = [8, 64], strides = [1, 1]} : vector<8x192xf32> to vector<8x64xf32>
    %299 = arith.mulf %298, %295 : vector<8x64xf32>
    %300 = arith.addf %297, %299 : vector<8x64xf32>
    %301 = vector.extract_strided_slice %293 {offsets = [0, 128], sizes = [8, 64], strides = [1, 1]} : vector<8x192xf32> to vector<8x64xf32>
    %302 = math.tanh %300 : vector<8x64xf32>
    %303 = arith.mulf %301, %302 : vector<8x64xf32>
    %304 = arith.truncf %303 : vector<8x64xf32> to vector<8x64xbf16>
    %c8_100 = arith.constant 8 : index
    %c0_101 = arith.constant 0 : index
    %305 = vector.load %arg35[%c8_100, %c0_101] : memref<16x256xf32, #tpu.memory_space<vmem>>, vector<8x256xf32>
    %cst_102 = arith.constant dense<0.000000e+00> : vector<8x256xf32>
    %306 = tpu.matmul %304, %283, %cst_102 {dimension_numbers = #tpu.dot_dimension_numbers<[1], [0], [0], [1], [0, 0, 1, 1], [], []>} : vector<8x64xbf16>, vector<64x256xbf16>, vector<8x256xf32> -> vector<8x256xf32>
    %307 = arith.addf %305, %306 : vector<8x256xf32>
    %308 = vector.extract_strided_slice %307 {offsets = [0, 0], sizes = [8, 192], strides = [1, 1]} : vector<8x256xf32> to vector<8x192xf32>
    %309 = arith.negf %308 : vector<8x192xf32>
    %310 = math.exp %309 : vector<8x192xf32>
    %cst_103 = arith.constant 1.000000e+00 : f32
    %311 = vector.broadcast %cst_103 : f32 to vector<8x192xf32>
    %312 = arith.addf %311, %310 : vector<8x192xf32>
    %313 = arith.divf %311, %312 : vector<8x192xf32>
    %314 = vector.extract_strided_slice %307 {offsets = [0, 192], sizes = [8, 64], strides = [1, 1]} : vector<8x256xf32> to vector<8x64xf32>
    %315 = math.tanh %314 : vector<8x64xf32>
    %316 = vector.extract_strided_slice %313 {offsets = [0, 64], sizes = [8, 64], strides = [1, 1]} : vector<8x192xf32> to vector<8x64xf32>
    %317 = arith.mulf %316, %300 : vector<8x64xf32>
    %318 = vector.extract_strided_slice %313 {offsets = [0, 0], sizes = [8, 64], strides = [1, 1]} : vector<8x192xf32> to vector<8x64xf32>
    %319 = arith.mulf %318, %315 : vector<8x64xf32>
    %320 = arith.addf %317, %319 : vector<8x64xf32>
    %321 = vector.extract_strided_slice %313 {offsets = [0, 128], sizes = [8, 64], strides = [1, 1]} : vector<8x192xf32> to vector<8x64xf32>
    %322 = math.tanh %320 : vector<8x64xf32>
    %323 = arith.mulf %321, %322 : vector<8x64xf32>
    %324 = arith.truncf %323 : vector<8x64xf32> to vector<8x64xbf16>
    %325 = tpu.concatenate %304, %324 in 1 : vector<8x64xbf16>, vector<8x64xbf16> -> vector<8x128xbf16>
    %c0_104 = arith.constant 0 : index
    %c0_105 = arith.constant 0 : index
    %326 = vector.load %arg39[%c0_104, %c0_105] : memref<8x128xbf16, #tpu.memory_space<vmem>>, vector<8x128xbf16>
    tpu.vector_store %arg39[%c0_104, %c0_105], %325 {strides = array<i32>} : memref<8x128xbf16, #tpu.memory_space<vmem>>, vector<8x128xbf16>,
    %c0_106 = arith.constant 0 : index
    %c0_107 = arith.constant 0 : index
    %327 = vector.load %arg39[%c0_106, %c0_107] : memref<8x128xbf16, #tpu.memory_space<vmem>>, vector<8x128xbf16>
    %c0_108 = arith.constant 0 : index
    %c0_109 = arith.constant 0 : index
    %328 = vector.load %arg20[%c0_108, %c0_109] : memref<8x128xf32, #tpu.memory_space<vmem>>, vector<8x128xf32>
    %c0_110 = arith.constant 0 : index
    %c0_111 = arith.constant 0 : index
    %329 = vector.load %arg21[%c0_110, %c0_111] : memref<8x128xf32, #tpu.memory_space<vmem>>, vector<8x128xf32>
    %c0_112 = arith.constant 0 : index
    %c0_113 = arith.constant 0 : index
    %330 = vector.load %arg17[%c0_112, %c0_113] : memref<128x512xbf16, #tpu.memory_space<vmem>>, vector<128x512xbf16>
    %cst_114 = arith.constant dense<0.000000e+00> : vector<8x512xf32>
    %331 = tpu.matmul %327, %330, %cst_114 {dimension_numbers = #tpu.dot_dimension_numbers<[1], [0], [0], [1], [0, 0, 1, 1], [], []>} : vector<8x128xbf16>, vector<128x512xbf16>, vector<8x512xf32> -> vector<8x512xf32>
    %c0_115 = arith.constant 0 : index
    %c0_116 = arith.constant 0 : index
    %332 = vector.load %arg19[%c0_115, %c0_116] : memref<1x512xf32, #tpu.memory_space<vmem>>, vector<1x512xf32>
    %333 = vector.broadcast %332 : vector<1x512xf32> to vector<8x512xf32>
    %334 = arith.addf %331, %333 : vector<8x512xf32>
    %c0_117 = arith.constant 0 : index
    %c0_118 = arith.constant 0 : index
    %335 = vector.load %arg36[%c0_117, %c0_118] : memref<8x512xf32, #tpu.memory_space<vmem>>, vector<8x512xf32>
    tpu.vector_store %arg36[%c0_117, %c0_118], %334 {strides = array<i32>} : memref<8x512xf32, #tpu.memory_space<vmem>>, vector<8x512xf32>,
    %c0_119 = arith.constant 0 : index
    %c0_120 = arith.constant 0 : index
    %336 = vector.load %arg18[%c0_119, %c0_120] : memref<128x512xbf16, #tpu.memory_space<vmem>>, vector<128x512xbf16>
    %337 = arith.truncf %328 : vector<8x128xf32> to vector<8x128xbf16>
    %c0_121 = arith.constant 0 : index
    %c0_122 = arith.constant 0 : index
    %338 = vector.load %arg36[%c0_121, %c0_122] : memref<8x512xf32, #tpu.memory_space<vmem>>, vector<8x512xf32>
    %cst_123 = arith.constant dense<0.000000e+00> : vector<8x512xf32>
    %339 = tpu.matmul %337, %336, %cst_123 {dimension_numbers = #tpu.dot_dimension_numbers<[1], [0], [0], [1], [0, 0, 1, 1], [], []>} : vector<8x128xbf16>, vector<128x512xbf16>, vector<8x512xf32> -> vector<8x512xf32>
    %340 = arith.addf %338, %339 : vector<8x512xf32>
    %341 = vector.extract_strided_slice %340 {offsets = [0, 0], sizes = [8, 384], strides = [1, 1]} : vector<8x512xf32> to vector<8x384xf32>
    %342 = arith.negf %341 : vector<8x384xf32>
    %343 = math.exp %342 : vector<8x384xf32>
    %cst_124 = arith.constant 1.000000e+00 : f32
    %344 = vector.broadcast %cst_124 : f32 to vector<8x384xf32>
    %345 = arith.addf %344, %343 : vector<8x384xf32>
    %346 = arith.divf %344, %345 : vector<8x384xf32>
    %347 = vector.extract_strided_slice %340 {offsets = [0, 384], sizes = [8, 128], strides = [1, 1]} : vector<8x512xf32> to vector<8x128xf32>
    %348 = math.tanh %347 : vector<8x128xf32>
    %349 = vector.extract_strided_slice %346 {offsets = [0, 128], sizes = [8, 128], strides = [1, 1]} : vector<8x384xf32> to vector<8x128xf32>
    %350 = arith.mulf %349, %329 : vector<8x128xf32>
    %351 = vector.extract_strided_slice %346 {offsets = [0, 0], sizes = [8, 128], strides = [1, 1]} : vector<8x384xf32> to vector<8x128xf32>
    %352 = arith.mulf %351, %348 : vector<8x128xf32>
    %353 = arith.addf %350, %352 : vector<8x128xf32>
    %354 = vector.extract_strided_slice %346 {offsets = [0, 256], sizes = [8, 128], strides = [1, 1]} : vector<8x384xf32> to vector<8x128xf32>
    %355 = math.tanh %353 : vector<8x128xf32>
    %356 = arith.mulf %354, %355 : vector<8x128xf32>
    %c0_125 = arith.constant 0 : index
    %c0_126 = arith.constant 0 : index
    %357 = vector.load %arg22[%c0_125, %c0_126] : memref<128x3xf32, #tpu.memory_space<vmem>>, vector<128x3xf32>
    %cst_127 = arith.constant dense<0.000000e+00> : vector<8x3xf32>
    %358 = tpu.matmul %356, %357, %cst_127 {dimension_numbers = #tpu.dot_dimension_numbers<[1], [0], [0], [1], [0, 0, 1, 1], [], []>} : vector<8x128xf32>, vector<128x3xf32>, vector<8x3xf32> -> vector<8x3xf32>
    %c0_128 = arith.constant 0 : index
    %c0_129 = arith.constant 0 : index
    %359 = vector.load %arg23[%c0_128, %c0_129] : memref<1x3xf32, #tpu.memory_space<vmem>>, vector<1x3xf32>
    %360 = vector.broadcast %359 : vector<1x3xf32> to vector<8x3xf32>
    %361 = arith.addf %358, %360 : vector<8x3xf32>
    %cst_130 = arith.constant dense<0xFF800000> : vector<8xf32>
    %362 = vector.multi_reduction <maximumf>, %361, %cst_130 [1] : vector<8x3xf32> to vector<8xf32>
    %363 = vector.shape_cast %362 : vector<8xf32> to vector<8x1xf32>
    %364 = vector.broadcast %363 : vector<8x1xf32> to vector<8x3xf32>
    %365 = arith.subf %361, %364 : vector<8x3xf32>
    %366 = math.exp %365 : vector<8x3xf32>
    %cst_131 = arith.constant dense<0.000000e+00> : vector<8xf32>
    %367 = vector.multi_reduction <add>, %366, %cst_131 [1] : vector<8x3xf32> to vector<8xf32>
    %368 = vector.shape_cast %367 : vector<8xf32> to vector<8x1xf32>
    %369 = tpu.reciprocal %368 {approx = true} : vector<8x1xf32> -> vector<8x1xf32>
    %370 = vector.broadcast %369 : vector<8x1xf32> to vector<8x3xf32>
    %371 = arith.mulf %366, %370 : vector<8x3xf32>
    %c0_132 = arith.constant 0 : index
    %c0_133 = arith.constant 0 : index
    %372 = vector.load %arg24[%c0_132, %c0_133] : memref<8x3xf32, #tpu.memory_space<vmem>>, vector<8x3xf32>
    tpu.vector_store %arg24[%c0_132, %c0_133], %371 {strides = array<i32>} : memref<8x3xf32, #tpu.memory_space<vmem>>, vector<8x3xf32>,
    %c0_134 = arith.constant 0 : index
    %c0_135 = arith.constant 0 : index
    %373 = vector.load %arg25[%c0_134, %c0_135] : memref<8x16xf32, #tpu.memory_space<vmem>>, vector<8x16xf32>
    tpu.vector_store %arg25[%c0_134, %c0_135], %175 {strides = array<i32>} : memref<8x16xf32, #tpu.memory_space<vmem>>, vector<8x16xf32>,
    %c0_136 = arith.constant 0 : index
    %c0_137 = arith.constant 0 : index
    %374 = vector.load %arg26[%c0_136, %c0_137] : memref<8x16xf32, #tpu.memory_space<vmem>>, vector<8x16xf32>
    tpu.vector_store %arg26[%c0_136, %c0_137], %172 {strides = array<i32>} : memref<8x16xf32, #tpu.memory_space<vmem>>, vector<8x16xf32>,
    %c0_138 = arith.constant 0 : index
    %c0_139 = arith.constant 0 : index
    %375 = vector.load %arg27[%c0_138, %c0_139] : memref<8x32xf32, #tpu.memory_space<vmem>>, vector<8x32xf32>
    tpu.vector_store %arg27[%c0_138, %c0_139], %270 {strides = array<i32>} : memref<8x32xf32, #tpu.memory_space<vmem>>, vector<8x32xf32>,
    %c0_140 = arith.constant 0 : index
    %c0_141 = arith.constant 0 : index
    %376 = vector.load %arg28[%c0_140, %c0_141] : memref<8x32xf32, #tpu.memory_space<vmem>>, vector<8x32xf32>
    tpu.vector_store %arg28[%c0_140, %c0_141], %267 {strides = array<i32>} : memref<8x32xf32, #tpu.memory_space<vmem>>, vector<8x32xf32>,
    %c0_142 = arith.constant 0 : index
    %c0_143 = arith.constant 0 : index
    %377 = vector.load %arg29[%c0_142, %c0_143] : memref<8x64xf32, #tpu.memory_space<vmem>>, vector<8x64xf32>
    tpu.vector_store %arg29[%c0_142, %c0_143], %323 {strides = array<i32>} : memref<8x64xf32, #tpu.memory_space<vmem>>, vector<8x64xf32>,
    %c0_144 = arith.constant 0 : index
    %c0_145 = arith.constant 0 : index
    %378 = vector.load %arg30[%c0_144, %c0_145] : memref<8x64xf32, #tpu.memory_space<vmem>>, vector<8x64xf32>
    tpu.vector_store %arg30[%c0_144, %c0_145], %320 {strides = array<i32>} : memref<8x64xf32, #tpu.memory_space<vmem>>, vector<8x64xf32>,
    %c0_146 = arith.constant 0 : index
    %c0_147 = arith.constant 0 : index
    %379 = vector.load %arg31[%c0_146, %c0_147] : memref<8x128xf32, #tpu.memory_space<vmem>>, vector<8x128xf32>
    tpu.vector_store %arg31[%c0_146, %c0_147], %356 {strides = array<i32>} : memref<8x128xf32, #tpu.memory_space<vmem>>, vector<8x128xf32>,
    %c0_148 = arith.constant 0 : index
    %c0_149 = arith.constant 0 : index
    %380 = vector.load %arg32[%c0_148, %c0_149] : memref<8x128xf32, #tpu.memory_space<vmem>>, vector<8x128xf32>
    tpu.vector_store %arg32[%c0_148, %c0_149], %353 {strides = array<i32>} : memref<8x128xf32, #tpu.memory_space<vmem>>, vector<8x128xf32>,
    return
  }
  func.func @transform_0(%arg0: i32) -> (i32, i32) {
    %c0_i32 = arith.constant 0 : i32
    %c0_i32_0 = arith.constant 0 : i32
    %c0_i32_1 = arith.constant 0 : i32
    return %c0_i32, %c0_i32_0 : i32, i32
  }
  func.func @transform_1(%arg0: i32) -> (i32, i32) {
    %c0_i32 = arith.constant 0 : i32
    %c0_i32_0 = arith.constant 0 : i32
    %c0_i32_1 = arith.constant 0 : i32
    return %c0_i32, %c0_i32_0 : i32, i32
  }
  func.func @transform_2(%arg0: i32) -> (i32, i32) {
    %c0_i32 = arith.constant 0 : i32
    %c0_i32_0 = arith.constant 0 : i32
    %c0_i32_1 = arith.constant 0 : i32
    return %c0_i32, %c0_i32_0 : i32, i32
  }
  func.func @transform_3(%arg0: i32) -> (i32, i32) {
    %c0_i32 = arith.constant 0 : i32
    %c0_i32_0 = arith.constant 0 : i32
    %c0_i32_1 = arith.constant 0 : i32
    return %c0_i32, %c0_i32_0 : i32, i32
  }
  func.func @transform_4(%arg0: i32) -> (i32, i32) {
    %c0_i32 = arith.constant 0 : i32
    %c0_i32_0 = arith.constant 0 : i32
    %c0_i32_1 = arith.constant 0 : i32
    return %c0_i32, %c0_i32_0 : i32, i32
  }
  func.func @transform_5(%arg0: i32) -> (i32, i32) {
    %c0_i32 = arith.constant 0 : i32
    %c0_i32_0 = arith.constant 0 : i32
    %c0_i32_1 = arith.constant 0 : i32
    return %c0_i32, %c0_i32_0 : i32, i32
  }
  func.func @transform_6(%arg0: i32) -> (i32, i32) {
    %c0_i32 = arith.constant 0 : i32
    %c0_i32_0 = arith.constant 0 : i32
    %c0_i32_1 = arith.constant 0 : i32
    return %c0_i32, %c0_i32_0 : i32, i32
  }
  func.func @transform_7(%arg0: i32) -> (i32, i32) {
    %c0_i32 = arith.constant 0 : i32
    %c0_i32_0 = arith.constant 0 : i32
    %c0_i32_1 = arith.constant 0 : i32
    return %c0_i32, %c0_i32_0 : i32, i32
  }
  func.func @transform_8(%arg0: i32) -> (i32, i32) {
    %c0_i32 = arith.constant 0 : i32
    %c0_i32_0 = arith.constant 0 : i32
    %c0_i32_1 = arith.constant 0 : i32
    return %c0_i32, %c0_i32_0 : i32, i32
  }
  func.func @transform_9(%arg0: i32) -> (i32, i32) {
    %c0_i32 = arith.constant 0 : i32
    %c0_i32_0 = arith.constant 0 : i32
    %c0_i32_1 = arith.constant 0 : i32
    return %c0_i32, %c0_i32_0 : i32, i32
  }
  func.func @transform_10(%arg0: i32) -> (i32, i32) {
    %c0_i32 = arith.constant 0 : i32
    %c0_i32_0 = arith.constant 0 : i32
    %c0_i32_1 = arith.constant 0 : i32
    return %c0_i32, %c0_i32_0 : i32, i32
  }
  func.func @transform_11(%arg0: i32) -> (i32, i32) {
    %c0_i32 = arith.constant 0 : i32
    %c0_i32_0 = arith.constant 0 : i32
    %c0_i32_1 = arith.constant 0 : i32
    return %c0_i32, %c0_i32_0 : i32, i32
  }
  func.func @transform_12(%arg0: i32) -> (i32, i32) {
    %c0_i32 = arith.constant 0 : i32
    %c0_i32_0 = arith.constant 0 : i32
    %c0_i32_1 = arith.constant 0 : i32
    return %c0_i32, %c0_i32_0 : i32, i32
  }
  func.func @transform_13(%arg0: i32) -> (i32, i32) {
    %c0_i32 = arith.constant 0 : i32
    %c0_i32_0 = arith.constant 0 : i32
    %c0_i32_1 = arith.constant 0 : i32
    return %c0_i32, %c0_i32_0 : i32, i32
  }
  func.func @transform_14(%arg0: i32) -> (i32, i32) {
    %c0_i32 = arith.constant 0 : i32
    %c0_i32_0 = arith.constant 0 : i32
    %c0_i32_1 = arith.constant 0 : i32
    return %c0_i32, %c0_i32_0 : i32, i32
  }
  func.func @transform_15(%arg0: i32) -> (i32, i32) {
    %c0_i32 = arith.constant 0 : i32
    %c0_i32_0 = arith.constant 0 : i32
    %c0_i32_1 = arith.constant 0 : i32
    return %c0_i32, %c0_i32_0 : i32, i32
  }
  func.func @transform_16(%arg0: i32) -> (i32, i32) {
    %c0_i32 = arith.constant 0 : i32
    %c0_i32_0 = arith.constant 0 : i32
    %c0_i32_1 = arith.constant 0 : i32
    return %c0_i32, %c0_i32_0 : i32, i32
  }
  func.func @transform_17(%arg0: i32) -> (i32, i32) {
    %c0_i32 = arith.constant 0 : i32
    %c0_i32_0 = arith.constant 0 : i32
    %c0_i32_1 = arith.constant 0 : i32
    return %c0_i32, %c0_i32_0 : i32, i32
  }
  func.func @transform_18(%arg0: i32) -> (i32, i32) {
    %c0_i32 = arith.constant 0 : i32
    %c0_i32_0 = arith.constant 0 : i32
    %c0_i32_1 = arith.constant 0 : i32
    return %c0_i32, %c0_i32_0 : i32, i32
  }
  func.func @transform_19(%arg0: i32) -> (i32, i32) {
    %c0_i32 = arith.constant 0 : i32
    %c0_i32_0 = arith.constant 0 : i32
    %c0_i32_1 = arith.constant 0 : i32
    return %c0_i32, %c0_i32_0 : i32, i32
  }
  func.func @transform_20(%arg0: i32) -> (i32, i32) {
    %c0_i32 = arith.constant 0 : i32
    %c0_i32_0 = arith.constant 0 : i32
    %c0_i32_1 = arith.constant 0 : i32
    return %c0_i32, %c0_i32_0 : i32, i32
  }
  func.func @transform_21(%arg0: i32) -> (i32, i32) {
    %c0_i32 = arith.constant 0 : i32
    %c0_i32_0 = arith.constant 0 : i32
    %c0_i32_1 = arith.constant 0 : i32
    return %c0_i32, %c0_i32_0 : i32, i32
  }
  func.func @transform_22(%arg0: i32) -> (i32, i32) {
    %c0_i32 = arith.constant 0 : i32
    %c0_i32_0 = arith.constant 0 : i32
    %c0_i32_1 = arith.constant 0 : i32
    return %c0_i32, %c0_i32_0 : i32, i32
  }
  func.func @transform_23(%arg0: i32) -> (i32, i32) {
    %c0_i32 = arith.constant 0 : i32
    %c0_i32_0 = arith.constant 0 : i32
    %c0_i32_1 = arith.constant 0 : i32
    return %c0_i32, %c0_i32_0 : i32, i32
  }
  func.func @transform_24(%arg0: i32) -> (i32, i32) {
    %c0_i32 = arith.constant 0 : i32
    %c0_i32_0 = arith.constant 0 : i32
    %c0_i32_1 = arith.constant 0 : i32
    return %c0_i32, %c0_i32_0 : i32, i32
  }
  func.func @transform_25(%arg0: i32) -> (i32, i32) {
    %c0_i32 = arith.constant 0 : i32
    %c0_i32_0 = arith.constant 0 : i32
    %c0_i32_1 = arith.constant 0 : i32
    return %c0_i32, %c0_i32_0 : i32, i32
  }
  func.func @transform_26(%arg0: i32) -> (i32, i32) {
    %c0_i32 = arith.constant 0 : i32
    %c0_i32_0 = arith.constant 0 : i32
    %c0_i32_1 = arith.constant 0 : i32
    return %c0_i32, %c0_i32_0 : i32, i32
  }
  func.func @transform_27(%arg0: i32) -> (i32, i32) {
    %c0_i32 = arith.constant 0 : i32
    %c0_i32_0 = arith.constant 0 : i32
    %c0_i32_1 = arith.constant 0 : i32
    return %c0_i32, %c0_i32_0 : i32, i32
  }
  func.func @transform_28(%arg0: i32) -> (i32, i32) {
    %c0_i32 = arith.constant 0 : i32
    %c0_i32_0 = arith.constant 0 : i32
    %c0_i32_1 = arith.constant 0 : i32
    return %c0_i32, %c0_i32_0 : i32, i32
  }
  func.func @transform_29(%arg0: i32) -> (i32, i32) {
    %c0_i32 = arith.constant 0 : i32
    %c0_i32_0 = arith.constant 0 : i32
    %c0_i32_1 = arith.constant 0 : i32
    return %c0_i32, %c0_i32_0 : i32, i32
  }
  func.func @transform_30(%arg0: i32) -> (i32, i32) {
    %c0_i32 = arith.constant 0 : i32
    %c0_i32_0 = arith.constant 0 : i32
    %c0_i32_1 = arith.constant 0 : i32
    return %c0_i32, %c0_i32_0 : i32, i32
  }
  func.func @transform_31(%arg0: i32) -> (i32, i32) {
    %c0_i32 = arith.constant 0 : i32
    %c0_i32_0 = arith.constant 0 : i32
    %c0_i32_1 = arith.constant 0 : i32
    return %c0_i32, %c0_i32_0 : i32, i32
  }
}

</mosaic_0001>

<bundles_post_ra>
// kernel: tpu_custom_call.1
= control target key start
LH: loop header
LB: loop body
LE: loop exit
PB: predicated region body
PF: predicated region fallthrough
CT: control target
= control target key end

     0   :  { %s3641_s6 = smov 1   ;;  %s3642_s10 = smov 2   ;;  %s4263_s0 = inlined_call_operand.smem [shape: u32[32], index: -1, kind: input, shape index: {}] }
   0x1   :  { %s3708_s5 = sld [smem:[%s4263_s0]]   ;;  %s3643_s14 = smov 3  }
   0x2   :  { %s3713_s9 = sld [smem:[%s4263_s0 + %s3641_s6]]   ;;  %s3644_s18 = smov 4  }
   0x3   :  { %s3718_s13 = sld [smem:[%s4263_s0 + %s3642_s10]]   ;;  %s3645_s22 = smov 5  }
   0x4   :  { %s3723_s17 = sld [smem:[%s4263_s0 + %s3643_s14]]   ;;  %s3646_s26 = smov 6  }
   0x5   :  { %s3728_s21 = sld [smem:[%s4263_s0 + %s3644_s18]]   ;;  %s3647_s30 = smov 7  }
   0x6   :  { %s3733_s25 = sld [smem:[%s4263_s0 + %s3645_s22]]   ;;  %s3648_s4 = smov 8  }
   0x7   :  { %s3738_s29 = sld [smem:[%s4263_s0 + %s3646_s26]]   ;;  %s3649_s10 = smov 9  }
   0x8   :  { %s3743_s3 = sld [smem:[%s4263_s0 + %s3647_s30]]   ;;  %s3650_s15 = smov 10  }
   0x9   :  { %s3748_s8 = sld [smem:[%s4263_s0 + %s3648_s4]]   ;;  %s3651_s20 = smov 11  }
   0xa   :  { %4273 = sst [smem:[#allocation53_spill]] %s3723_s17  ;;  %s3652_s26 = smov 12  }
   0xb   :  { %s3753_s14 = sld [smem:[%s4263_s0 + %s3649_s10]]   ;;  %s3653_s1 = smov 13  }
   0xc   :  { %s3758_s19 = sld [smem:[%s4263_s0 + %s3650_s15]]   ;;  %s3654_s7 = smov 14  }
   0xd   :  { %4274 = sst [smem:[#allocation54_spill]] %s3738_s29  ;;  %s3655_s15 = smov 15  }
   0xe   :  { %4275 = sst [smem:[#allocation55_spill]] %s3743_s3  ;;  %s3656_s22 = smov 16  }
   0xf   :  { %s3763_s24 = sld [smem:[%s4263_s0 + %s3651_s20]]   ;;  %s3657_s28 = smov 17  }
  0x10   :  { %s3768_s30 = sld [smem:[%s4263_s0 + %s3652_s26]]  }
  0x11   :  { %s3773_s6 = sld [smem:[%s4263_s0 + %s3653_s1]]  }
  0x12   :  { %4276 = sst [smem:[#allocation56_spill]] %s3758_s19 }
  0x13   :  { %s3778_s12 = sld [smem:[%s4263_s0 + %s3654_s7]]   ;;  %s3658_s7 = smov 18  }
  0x14   :  { %s3783_s20 = sld [smem:[%s4263_s0 + %s3655_s15]]   ;;  %s3659_s15 = smov 19  }
  0x15   :  { %4277 = sst [smem:[#allocation57_spill]] %s3763_s24 }
  0x16   :  { %4278 = sst [smem:[#allocation58_spill]] %s3768_s30 }
  0x17   :  { %s3788_s27 = sld [smem:[%s4263_s0 + %s3656_s22]]   ;;  %s3660_s22 = smov 20  }
  0x18   :  { %s3793_s4 = sld [smem:[%s4263_s0 + %s3657_s28]]   ;;  %s3661_s28 = smov 21  }
  0x19   :  { %s3798_s30 = sld [smem:[%s4263_s0 + %s3658_s7]]   ;;  %s3662_s7 = smov 22  }
  0x1a   :  { %s3803_s24 = sld [smem:[%s4263_s0 + %s3659_s15]]   ;;  %s3663_s15 = smov 23  }
  0x1b   :  { %s3808_s19 = sld [smem:[%s4263_s0 + %s3660_s22]]   ;;  %s3664_s22 = smov 24  }
  0x1c   :  { %s3813_s3 = sld [smem:[%s4263_s0 + %s3661_s28]]   ;;  %s3665_s28 = smov 25  }
  0x1d   :  { %s3818_s29 = sld [smem:[%s4263_s0 + %s3662_s7]]   ;;  %s3666_s7 = smov 26  }
  0x1e   :  { %s3828_s17 = sld [smem:[%s4263_s0 + %s3664_s22]]   ;;  %s3668_s22 = smov 28  }
  0x20   :  { %4279 = sst [smem:[#allocation59_spill]] %s3803_s24 }
  0x21   :  { %s3823_s24 = sld [smem:[%s4263_s0 + %s3663_s15]]   ;;  %s3667_s15 = smov 27  }
  0x22   :  { %4280 = sst [smem:[#allocation60_spill]] %s3813_s3 }
  0x23   :  { %4281 = sst [smem:[#allocation61_spill]] %s3818_s29 }
  0x24   :  { %4283 = sst [smem:[#allocation63_spill]] %s3828_s17 }
  0x25   :  { %s3833_s3 = sld [smem:[%s4263_s0 + %s3665_s28]]   ;;  %s3669_s28 = smov 29  }
  0x26   :  { %s3838_s29 = sld [smem:[%s4263_s0 + %s3666_s7]]   ;;  %s3670_s7 = smov 30  }
  0x27   :  { %4282 = sst [smem:[#allocation62_spill]] %s3823_s24 }
  0x28   :  { %s3843_s24 = sld [smem:[%s4263_s0 + %s3667_s15]]   ;;  %s3671_s15 = smov 31  }
  0x29   :  { %s3848_s17 = sld [smem:[%s4263_s0 + %s3668_s22]]  }
  0x2b   :  { %4284 = sst [smem:[#allocation64_spill]] %s3833_s3 }
  0x2c   :  { %4285 = sst [smem:[#allocation65_spill]] %s3838_s29 }
  0x2d   :  { %s3853_s3 = sld [smem:[%s4263_s0 + %s3669_s28]]  }
  0x2e   :  { %4286 = sst [smem:[#allocation66_spill]] %s3843_s24 }
  0x2f   :  { %s3858_s29 = sld [smem:[%s4263_s0 + %s3670_s7]]  }
  0x30   :  { %s3863_s24 = sld [smem:[%s4263_s0 + %s3671_s15]]  }
  0x31   :  { %69 = vsyncpa [#allocation10], 0 }
  0x32   :  { %70 = vsyncpa [#allocation13], 0 }
  0x33   :  { %71 = vsyncpa [#allocation16], 0 }
  0x34   :  { %72 = vsyncpa [#allocation19], 0 }
  0x35   :  { %73 = vsyncpa [#allocation22], 0 }
  0x36   :  { %74 = vsyncpa [#allocation25], 0 }
  0x37   :  { %75 = vsyncpa [#allocation28], 0 }
  0x38   :  { %76 = vsyncpa [#allocation11], 0 }
  0x39   :  { %77 = vsyncpa [#allocation31], 0 }
  0x3a   :  { %78 = vsyncpa [#allocation34], 0 }
  0x3b   :  { %79 = vsyncpa [#allocation37], 0  ;;  %s105_s22 = sshll.u32 %s3728_s21, 4  ;;  %s106_s22 = int_to_ptr.hbm [resolvable:$true] %s105_s22 }
  0x3c   :  { %80 = vsyncpa [#allocation40], 0  ;;  %s3672_s0 = smov [#allocation12]   ;;  %s131_s26 = sshll.u32 %s3748_s8, 4  ;;  %s132_s26 = int_to_ptr.hbm [resolvable:$true] %s131_s26 }
  0x3d   :  { %s107_s23 = sshll.u32 %s3672_s0, 4  ;;  %s3137_s28 = sshra.s32 %s106_s22, 4  ;;  %s108_s23 = int_to_ptr.vmem [resolvable:$true] %s107_s23  ;;  %s3138_s28 = int_to_ptr.hbm [resolvable:$true] %s3137_s28 }
  0x3e   :  { %s3139_s1 = scalar_lea.hbm %s3138_s28, 8  ;;  %s3141_s2 = scalar_lea.hbm %s3728_s21, 8 }
  0x3f   :  { %p3140_p0 = scmp.ne.s32.totalorder %s3138_s28, %s3139_s1  ;;  %p3142_p1 = scmp.lt.s32.totalorder %s3138_s28, %s3728_s21 }
  0x40   :  { %p3143_p2 = scmp.lt.s32.totalorder %s3141_s2, %s3139_s1 }
  0x42   :  { %p3144_p3 = por %p3143_p2, %p3142_p1 }
  0x44   :  { %p3145_p4 = pnand %p3144_p3, %p3140_p0 }
  0x46   :  { %3148 = shalt.err (!%p3145_p4)
}
  0x47   :  { %110 = dma.hbm_to_vmem [thread:$0]  %s106_s22, 128, %s108_s23, [#allocation13]  }
  0x48   :  { %s3673_s7 = smov [#allocation15]   ;;  %s159_s11 = sshll.u32 %s3773_s6, 4  ;;  %s160_s11 = int_to_ptr.hbm [resolvable:$true] %s159_s11 }
  0x49   :  { %s133_s10 = sshll.u32 %s3673_s7, 4  ;;  %s3161_s15 = sshra.s32 %s132_s26, 4  ;;  %s134_s10 = int_to_ptr.vmem [resolvable:$true] %s133_s10  ;;  %s3162_s15 = int_to_ptr.hbm [resolvable:$true] %s3161_s15 }
  0x4a   :  { %s3163_s16 = scalar_lea.hbm %s3162_s15, 1  ;;  %s3165_s18 = scalar_lea.hbm %s3748_s8, 1 }
  0x4b   :  { %p3164_p5 = scmp.ne.s32.totalorder %s3162_s15, %s3163_s16  ;;  %p3166_p6 = scmp.lt.s32.totalorder %s3162_s15, %s3748_s8 }
  0x4c   :  { %p3167_p7 = scmp.lt.s32.totalorder %s3165_s18, %s3163_s16 }
  0x4e   :  { %p3168_p8 = por %p3167_p7, %p3166_p6 }
  0x50   :  { %p3169_p9 = pnand %p3168_p8, %p3164_p5 }
  0x52   :  { %3172 = shalt.err (!%p3169_p9)
}
  0x53   :  { %136 = dma.hbm_to_vmem [thread:$0]  %s132_s26, 16, %s134_s10, [#allocation16]  }
  0x54   :  { %s181_s21 = sshll.u32 %s3783_s20, 4  ;;  %s3674_s22 = smov [#allocation18]   ;;  %s182_s21 = int_to_ptr.hbm [resolvable:$true] %s181_s21 }
  0x55   :  { %s161_s0 = sshll.u32 %s3674_s22, 4  ;;  %s3185_s23 = sshra.s32 %s160_s11, 4  ;;  %s162_s0 = int_to_ptr.vmem [resolvable:$true] %s161_s0  ;;  %s3186_s23 = int_to_ptr.hbm [resolvable:$true] %s3185_s23 }
  0x56   :  { %s3187_s28 = scalar_lea.hbm %s3186_s23, 2  ;;  %s3189_s1 = scalar_lea.hbm %s3773_s6, 2 }
  0x57   :  { %p3188_p10 = scmp.ne.s32.totalorder %s3186_s23, %s3187_s28  ;;  %p3190_p11 = scmp.lt.s32.totalorder %s3186_s23, %s3773_s6 }
  0x58   :  { %p3191_p12 = scmp.lt.s32.totalorder %s3189_s1, %s3187_s28 }
  0x5a   :  { %p3192_p13 = por %p3191_p12, %p3190_p11 }
  0x5c   :  { %p3193_p0 = pnand %p3192_p13, %p3188_p10 }
  0x5e   :  { %3196 = shalt.err (!%p3193_p0)
}
  0x5f   :  { %164 = dma.hbm_to_vmem [thread:$0]  %s160_s11, 32, %s162_s0, [#allocation19]  }
  0x60   :  { %s3675_s8 = smov [#allocation21]   ;;  %s3209_s2 = sshra.s32 %s182_s21, 4  ;;  %s3210_s2 = int_to_ptr.hbm [resolvable:$true] %s3209_s2 }
  0x61   :  { %s183_s26 = sshll.u32 %s3675_s8, 4  ;;  %s3211_s7 = scalar_lea.hbm %s3210_s2, 8  ;;  %s184_s26 = int_to_ptr.vmem [resolvable:$true] %s183_s26 }
  0x62   :  { %p3212_p1 = scmp.ne.s32.totalorder %s3210_s2, %s3211_s7  ;;  %s3213_s10 = scalar_lea.hbm %s3783_s20, 8 }
  0x63   :  { %p3214_p2 = scmp.lt.s32.totalorder %s3210_s2, %s3783_s20  ;;  %p3215_p3 = scmp.lt.s32.totalorder %s3213_s10, %s3211_s7 }
  0x65   :  { %p3216_p4 = por %p3215_p3, %p3214_p2 }
  0x67   :  { %p3217_p5 = pnand %p3216_p4, %p3212_p1 }
  0x69   :  { %3220 = shalt.err (!%p3217_p5)
}
  0x6a   :  { %186 = dma.hbm_to_vmem [thread:$0]  %s182_s21, 128, %s184_s26, [#allocation22]  }
  0x6b   :  { %s204_s6 = sshll.u32 %s3793_s4, 4  ;;  %s3676_s11 = smov [#allocation24]   ;;  %s205_s6 = int_to_ptr.hbm [resolvable:$true] %s204_s6 }
  0x6c   :  { %s206_s15 = sshll.u32 %s3676_s11, 4  ;;  %s89_s16 = sshll.u32 %s3718_s13, 4  ;;  %s207_s15 = int_to_ptr.vmem [resolvable:$true] %s206_s15  ;;  %s90_s16 = int_to_ptr.hbm [resolvable:$true] %s89_s16 }
  0x6d   :  { %s3233_s18 = sshra.s32 %s205_s6, 4  ;;  %s3237_s20 = scalar_lea.hbm %s3793_s4, 256  ;;  %s3234_s18 = int_to_ptr.hbm [resolvable:$true] %s3233_s18 }
  0x6e   :  { %s3235_s22 = scalar_lea.hbm %s3234_s18, 256  ;;  %p3238_p7 = scmp.lt.s32.totalorder %s3234_s18, %s3793_s4 }
  0x6f   :  { %p3236_p6 = scmp.ne.s32.totalorder %s3234_s18, %s3235_s22  ;;  %p3239_p8 = scmp.lt.s32.totalorder %s3237_s20, %s3235_s22 }
  0x71   :  { %p3240_p9 = por %p3239_p8, %p3238_p7 }
  0x73   :  { %p3241_p10 = pnand %p3240_p9, %p3236_p6 }
  0x75   :  { %3244 = shalt.err (!%p3241_p10)
}
  0x76   :  { %s3677_s21 = smov 256   ;;  %s3678_s0 = smov 16  }
  0x77   :  { %212 = dma.hbm_to_vmem [thread:$0]  %s205_s6, 4096, %s207_s15, [#allocation25], %s3677_s21, %s3677_s21, %s3678_s0  }
  0x78   :  { %s3679_s23 = smov [#allocation9]   ;;  %s3257_s1 = sshra.s32 %s90_s16, 4  ;;  %s3258_s1 = int_to_ptr.hbm [resolvable:$true] %s3257_s1 }
  0x79   :  { %s91_s28 = sshll.u32 %s3679_s23, 4  ;;  %s3259_s8 = scalar_lea.hbm %s3258_s1, 8  ;;  %s92_s28 = int_to_ptr.vmem [resolvable:$true] %s91_s28 }
  0x7a   :  { %p3260_p11 = scmp.ne.s32.totalorder %s3258_s1, %s3259_s8  ;;  %s3261_s4 = scalar_lea.hbm %s3718_s13, 8 }
  0x7b   :  { %p3262_p12 = scmp.lt.s32.totalorder %s3258_s1, %s3718_s13  ;;  %p3263_p13 = scmp.lt.s32.totalorder %s3261_s4, %s3259_s8 }
  0x7d   :  { %p3264_p0 = por %p3263_p13, %p3262_p12 }
  0x7f   :  { %p3265_p1 = pnand %p3264_p0, %p3260_p11 }
  0x81   :  { %3268 = shalt.err (!%p3265_p1)
}
  0x82   :  { %s3680_s26 = smov 64   ;;  %s3681_s2 = smov 4  }
  0x83   :  { %97 = dma.hbm_to_vmem [thread:$0]  %s90_s16, 128, %s92_s28, [#allocation10], %s3680_s26, %s3680_s26, %s3681_s2  }
  0x84   :  { %s116_s7 = sshll.u32 %s3733_s25, 4  ;;  %s3682_s10 = smov [#allocation14]   ;;  %s117_s7 = int_to_ptr.hbm [resolvable:$true] %s116_s7 }
  0x85   :  { %s118_s6 = sshll.u32 %s3682_s10, 4  ;;  %s142_s11 = sshll.u32 %s3753_s14, 4  ;;  %s119_s6 = int_to_ptr.vmem [resolvable:$true] %s118_s6  ;;  %s143_s11 = int_to_ptr.hbm [resolvable:$true] %s142_s11 }
  0x86   :  { %s3281_s13 = sshra.s32 %s117_s7, 4  ;;  %s3285_s18 = scalar_lea.hbm %s3733_s25, 8  ;;  %s3282_s13 = int_to_ptr.hbm [resolvable:$true] %s3281_s13 }
  0x87   :  { %s3283_s15 = scalar_lea.hbm %s3282_s13, 8  ;;  %p3286_p3 = scmp.lt.s32.totalorder %s3282_s13, %s3733_s25 }
  0x88   :  { %p3284_p2 = scmp.ne.s32.totalorder %s3282_s13, %s3283_s15  ;;  %p3287_p4 = scmp.lt.s32.totalorder %s3285_s18, %s3283_s15 }
  0x8a   :  { %p3288_p5 = por %p3287_p4, %p3286_p3 }
  0x8c   :  { %p3289_p6 = pnand %p3288_p5, %p3284_p2 }
  0x8e   :  { %3292 = shalt.err (!%p3289_p6)
}
  0x8f   :  { %121 = dma.hbm_to_vmem [thread:$0]  %s117_s7, 128, %s119_s6, [#allocation13]  }
  0x90   :  { %s3683_s16 = smov [#allocation17]   ;;  %s170_s20 = sshll.u32 %s3778_s12, 4  ;;  %s171_s20 = int_to_ptr.hbm [resolvable:$true] %s170_s20 }
  0x91   :  { %s144_s22 = sshll.u32 %s3683_s16, 4  ;;  %s3305_s23 = sshra.s32 %s143_s11, 4  ;;  %s145_s22 = int_to_ptr.vmem [resolvable:$true] %s144_s22  ;;  %s3306_s23 = int_to_ptr.hbm [resolvable:$true] %s3305_s23 }
  0x92   :  { %s3307_s28 = scalar_lea.hbm %s3306_s23, 8  ;;  %s3309_s1 = scalar_lea.hbm %s3753_s14, 8 }
  0x93   :  { %p3308_p7 = scmp.ne.s32.totalorder %s3306_s23, %s3307_s28  ;;  %p3310_p8 = scmp.lt.s32.totalorder %s3306_s23, %s3753_s14 }
  0x94   :  { %p3311_p9 = scmp.lt.s32.totalorder %s3309_s1, %s3307_s28 }
  0x96   :  { %p3312_p10 = por %p3311_p9, %p3310_p8 }
  0x98   :  { %p3313_p11 = pnand %p3312_p10, %p3308_p7 }
  0x9a   :  { %3316 = shalt.err (!%p3313_p11)
}
  0x9b   :  { %147 = dma.hbm_to_vmem [thread:$0]  %s143_s11, 128, %s145_s22, [#allocation16]  }
  0x9c   :  { %s191_s25 = sshll.u32 %s3788_s27, 4  ;;  %s3684_s8 = smov [#allocation20]   ;;  %s3896_s25 = int_to_ptr.hbm [resolvable:$true] %s191_s25 }
  0x9d   :  { %s172_s4 = sshll.u32 %s3684_s8, 4  ;;  %s3329_s2 = sshra.s32 %s171_s20, 4  ;;  %s173_s4 = int_to_ptr.vmem [resolvable:$true] %s172_s4  ;;  %s3330_s2 = int_to_ptr.hbm [resolvable:$true] %s3329_s2 }
  0x9e   :  { %s3331_s7 = scalar_lea.hbm %s3330_s2, 8  ;;  %s3333_s10 = scalar_lea.hbm %s3778_s12, 8 }
  0x9f   :  { %p3332_p12 = scmp.ne.s32.totalorder %s3330_s2, %s3331_s7  ;;  %p3334_p13 = scmp.lt.s32.totalorder %s3330_s2, %s3778_s12 }
  0xa0   :  { %p3335_p0 = scmp.lt.s32.totalorder %s3333_s10, %s3331_s7 }
  0xa2   :  { %p3336_p1 = por %p3335_p0, %p3334_p13 }
  0xa4   :  { %p3337_p2 = pnand %p3336_p1, %p3332_p12 }
  0xa6   :  { %3340 = shalt.err (!%p3337_p2)
}
  0xa7   :  { %175 = dma.hbm_to_vmem [thread:$0]  %s171_s20, 128, %s173_s4, [#allocation19]  }
  0xa8   :  { %s3685_s14 = smov [#allocation23]   ;;  %s218_s11 = sshll.u32 %s3798_s30, 4  ;;  %s219_s11 = int_to_ptr.hbm [resolvable:$true] %s218_s11 }
  0xa9   :  { %s193_s6 = sshll.u32 %s3685_s14, 4  ;;  %s3353_s13 = sshra.s32 %s3896_s25, 4  ;;  %s194_s6 = int_to_ptr.vmem [resolvable:$true] %s193_s6  ;;  %s3354_s13 = int_to_ptr.hbm [resolvable:$true] %s3353_s13 }
  0xaa   :  { %s3355_s15 = scalar_lea.hbm %s3354_s13, 256  ;;  %s3357_s18 = scalar_lea.hbm %s3788_s27, 256 }
  0xab   :  { %p3356_p3 = scmp.ne.s32.totalorder %s3354_s13, %s3355_s15  ;;  %p3358_p4 = scmp.lt.s32.totalorder %s3354_s13, %s3788_s27 }
  0xac   :  { %p3359_p5 = scmp.lt.s32.totalorder %s3357_s18, %s3355_s15 }
  0xae   :  { %p3360_p6 = por %p3359_p5, %p3358_p4 }
  0xb0   :  { %p3361_p7 = pnand %p3360_p6, %p3356_p3 }
  0xb2   :  { %3364 = shalt.err (!%p3361_p7)
}
  0xb3   :  { %199 = dma.hbm_to_vmem [thread:$0]  %s3896_s25, 4096, %s194_s6, [#allocation22], %s3677_s21, %s3677_s21, %s3678_s0  }
  0xb4   :  { %s231_s12 = sshll.u32 %s3808_s19, 4  ;;  %s3686_s16 = smov [#allocation26]   ;;  %s232_s12 = int_to_ptr.hbm [resolvable:$true] %s231_s12 }
  0xb5   :  { %s220_s22 = sshll.u32 %s3686_s16, 4  ;;  %s3377_s20 = sshra.s32 %s219_s11, 4  ;;  %s221_s22 = int_to_ptr.vmem [resolvable:$true] %s220_s22  ;;  %s3378_s20 = int_to_ptr.hbm [resolvable:$true] %s3377_s20 }
  0xb6   :  { %s3379_s27 = scalar_lea.hbm %s3378_s20, 4  ;;  %s3381_s23 = scalar_lea.hbm %s3798_s30, 4 }
  0xb7   :  { %p3380_p8 = scmp.ne.s32.totalorder %s3378_s20, %s3379_s27  ;;  %p3382_p9 = scmp.lt.s32.totalorder %s3378_s20, %s3798_s30 }
  0xb8   :  { %p3383_p10 = scmp.lt.s32.totalorder %s3381_s23, %s3379_s27 }
  0xba   :  { %p3384_p11 = por %p3383_p10, %p3382_p9 }
  0xbc   :  { %p3385_p12 = pnand %p3384_p11, %p3380_p8 }
  0xbe   :  { %3388 = shalt.err (!%p3385_p12)
}
  0xbf   :  { %223 = dma.hbm_to_vmem [thread:$0]  %s219_s11, 64, %s221_s22, [#allocation25]  }
  0xc0   :  { %s3687_s28 = smov [#allocation27]   ;;  %s3401_s1 = sshra.s32 %s232_s12, 4  ;;  %s3402_s1 = int_to_ptr.hbm [resolvable:$true] %s3401_s1 }
  0xc1   :  { %s233_s21 = sshll.u32 %s3687_s28, 4  ;;  %s3403_s25 = scalar_lea.hbm %s3402_s1, 8  ;;  %s234_s21 = int_to_ptr.vmem [resolvable:$true] %s233_s21 }
  0xc2   :  { %p3404_p13 = scmp.ne.s32.totalorder %s3402_s1, %s3403_s25  ;;  %s3405_s8 = scalar_lea.hbm %s3808_s19, 8 }
  0xc3   :  { %p3406_p0 = scmp.lt.s32.totalorder %s3402_s1, %s3808_s19  ;;  %p3407_p1 = scmp.lt.s32.totalorder %s3405_s8, %s3403_s25 }
  0xc5   :  { %p3408_p2 = por %p3407_p1, %p3406_p0 }
  0xc7   :  { %p3409_p3 = pnand %p3408_p2, %p3404_p13 }
  0xc9   :  { %3412 = shalt.err (!%p3409_p3)
}
  0xca   :  { %236 = dma.hbm_to_vmem [thread:$0]  %s232_s12, 128, %s234_s21, [#allocation28]  }
  0xcb   :  { %3617 = dma.done.wait [#allocation10], 128  }
  0xcc   :  { %3618 = vsyncadd [#allocation10], 4294967168 }
  0xcd   :  { %3619 = dma.done.wait [#allocation13], 256  }
  0xce   :  { %3620 = vsyncadd [#allocation13], 4294967040 }
  0xcf   :  { %3621 = dma.done.wait [#allocation16], 144  }
  0xd0   :  { %3622 = vsyncadd [#allocation16], 4294967152 }
  0xd1   :  { %3623 = dma.done.wait [#allocation19], 160  }
  0xd2   :  { %3624 = vsyncadd [#allocation19], 4294967136 }
  0xd3   :  { %3625 = dma.done.wait [#allocation22], 4224  }
  0xd4   :  { %3626 = vsyncadd [#allocation22], 4294963072 }
  0xd5   :  { %3627 = dma.done.wait [#allocation25], 4160  }
  0xd6   :  { %3628 = vsyncadd [#allocation25], 4294963136 }
  0xd7   :  { %3629 = dma.done.wait [#allocation28], 128  }
  0xd8   :  { %3630 = vsyncadd [#allocation28], 4294967168  ;;  %v2846_v0 = vld [vmem:[%s3713_s9 + $0x8] sm:$0xff]  ;;  %v3914_v1 = vld [vmem:[#allocation9] sm:$0xff]  ;;  %s4287_s19 = sld [smem:[#allocation53_spill]]  ;;  %vm401_vm0 = vcmask 130048  }
  0xd9   :  { %v298_v2 = vld [vmem:[#allocation12] sm:$0xff]  ;;  %359 = vmatpush.bf16.msra.mxu0 %v2846_v0  ;;  %412 = vmatpush.bf16.msra.mxu2 %v3914_v1  ;;  %vm340_vm1 = vcmask 261120   ;;  %vm382_vm2 = vcmask 523264   ;;  %v299_v16 = vld [vmem:[#allocation14] sm:$0xff]  ;;  %s3689_s30 = smov 96   ;;  %s3690_s4 = smov 112  }
  0xda   :  { %v393_v3 = vpack.c.bf16 %v298_v2, %v298_v2  ;;  %v2845_v4 = vld [vmem:[%s3713_s9] sm:$0xff]  ;;  %545 = vmatpush.bf16.msra.mxu3 %v3914_v1  ;;  %606 = vmatpush.bf16.msra.mxu1 %v3914_v1  ;;  %s3688_s9 = smov 80   ;;  %s4288_s2 = sld [smem:[#allocation54_spill]] }
  0xdb   :  { %v2841_v5 = vld [vmem:[%s3708_s5] sm:$0xff]  ;;  %s4289_s7 = sld [smem:[#allocation55_spill]]  ;;  %s3691_s10 = smov 32  }
  0xdc   :  { %2454 = vmatmul.msk.bf16.vlgmr.msra.gmra.mxu2 %vm401_vm0, %v393_v3  ;;  %v2842_v3 = vld [vmem:[%s3708_s5 + $0x8] sm:$0xff]  ;;  %s4292_s14 = sld [smem:[#allocation58_spill]]  ;;  %s3692_s15 = smov [#allocation30]  }
  0xdd   :  { %477 = vmatpush.bf16.msrb.mxu2 %v3914_v1  ;;  %360 = vmatpush.bf16.msra.mxu0 %v2845_v4  ;;  %s4294_s6 = sld [smem:[#allocation60_spill]]  ;;  %s2273_s18 = sshll.u32 %s3692_s15, 4  ;;  %s2274_s18 = int_to_ptr.vmem [resolvable:$true] %s2273_s18 }
  0xde   :  { %734 = vmatpush.bf16.msrb.mxu3 %v3914_v1  ;;  %801 = vmatpush.bf16.msrb.mxu1 %v3914_v1  ;;  %v3928_v6 = vld [vmem:[%s4287_s19] ss:$0 sm:$0xff]  ;;  %s4295_s11 = sld [smem:[#allocation61_spill]] }
  0xdf   :  { %s4296_s13 = sld [smem:[#allocation64_spill]] }
  0xe0   :  { %2446 = vmatmul.msk.bf16.vlgmr.msra.gmra.mxu0 %vm340_vm1, %v2841_v5 }
  0xe1   :  { %673 = vmatpush.bf16.msra.mxu2 %v3914_v1 }
  0xe5   :  { %s2275_s12 = sshll.u32 %s4296_s13, 4  ;;  %s3441_s20 = scalar_lea.hbm %s4296_s13, 8  ;;  %s2276_s12 = int_to_ptr.hbm [resolvable:$true] %s2275_s12 }
  0xe6   :  { %s3437_s16 = sshra.s32 %s2276_s12, 4  ;;  %s3438_s16 = int_to_ptr.hbm [resolvable:$true] %s3437_s16 }
  0xe7   :  { %s3439_s22 = scalar_lea.hbm %s3438_s16, 8  ;;  %p3442_p5 = scmp.lt.s32.totalorder %s3438_s16, %s4296_s13 }
  0xe8   :  { %p3440_p4 = scmp.ne.s32.totalorder %s3438_s16, %s3439_s22  ;;  %p3443_p6 = scmp.lt.s32.totalorder %s3441_s20, %s3439_s22 }
  0xea   :  { %p3444_p7 = por %p3443_p6, %p3442_p5 }
  0xec   :  { %p3445_p8 = pnand %p3444_p7, %p3440_p4 }
  0xf0   :  { %2447 = vmatmul.msk.bf16.gmra.mxu0 %vm340_vm1, %v2842_v3 }
 0x15d   :  { %v362_v7 = vpop.f32.mrf.mxu0 }
 0x15e   :  { %v363_v8 = vadd.f32 %v3928_v6, %v362_v7 }
 0x15f   :  { %v414_v9 = vpop.f32.mrf.mxu2 }
 0x160   :  { %383 = vst.msk [vmem:[#allocation2] sm:$0xff] %vm382_vm2, %v363_v8 }
 0x165   :  { %v364_v10 = vpop.f32.mrf.mxu0 }
 0x166   :  { %v365_v11 = vadd.f32 %v3928_v6, %v364_v10 }
 0x167   :  { %v394_v12 = vld [vmem:[#allocation2] sm:$0xff]  ;;  %v416_v13 = vpop.f32.mrf.mxu2 }
 0x168   :  { %v418_v14 = vadd.f32 %v414_v9, %v394_v12  ;;  %384 = vst.msk [vmem:[#allocation2 + $0x8] sm:$0xff] %vm382_vm2, %v365_v11 }
 0x16a   :  { %2997 = vtanh.f32 %v418_v14  ;;  %v2455_v17 = vmul.f32 -1.442695, %v418_v14 }
 0x16c   :  { %2999 = vpow2.f32 %v2455_v17 }
 0x16d   :  { %v367_v11 = vpop.f32.mrf.mxu0 }
 0x16e   :  { %v368_v12 = vadd.f32 %v3928_v6, %v367_v11 }
 0x16f   :  { %v461_v43 = vld [vmem:[#allocation2 + $0x8] sm:$0xff] }
 0x170   :  { %v2998_v15 = vpop.eup %2997  ;;  %385 = vst.msk [vmem:[#allocation2 + $0x10] sm:$0xff] %vm382_vm2, %v368_v12 }
 0x171   :  { %445 = vrot.lane.b32.xlu0 %v2998_v15, %s3688_s9 }
 0x172   :  { %v3000_v18 = vpop.eup %2999 }
 0x173   :  { %v422_v19 = vadd.f32 1.0, %v3000_v18 }
 0x175   :  { %3001 = vrcp.f32 %v422_v19  ;;  %v434_v25 = vand.u32 2147483648, %v422_v19  ;;  %vm428_vm4 = vweird.f32 %v422_v19  ;;  %v432_v26 = vand.u32 2147483647, %v422_v19  ;;  %v369_v13 = vpop.f32.mrf.mxu0 }
 0x176   :  { %v370_v14 = vadd.f32 %v3928_v6, %v369_v13 }
 0x177   :  { %v435_v28 = vor.u32 1.1754944e-38, %v434_v25  ;;  %vm433_vm6 = vcmp.eq.f32.partialorder %v432_v26, 8.507059e+37  ;;  %v532_v15 = vld [vmem:[#allocation2 + $0x10] sm:$0xff] }
 0x178   :  { %386 = vst.msk [vmem:[#allocation2 + $0x18] sm:$0xff] %vm382_vm2, %v370_v14 }
 0x179   :  { %440 = vrot.lane.b32.xlu0 %v299_v16, %s3678_s0 }
 0x17b   :  { %v3002_v20 = vpop.eup %3001 }
 0x17c   :  { %v424_v21 = vmul.f32 %v3002_v20, %v422_v19  ;;  %vm429_vm3 = vweird.f32 %v3002_v20 }
 0x17d   :  { %vm430_vm5 = vmor %vm428_vm4, %vm429_vm3 }
 0x17e   :  { %v425_v22 = vsub.f32 1.0, %v424_v21 }
 0x180   :  { %v426_v23 = vmul.f32 %v3002_v20, %v425_v22 }
 0x182   :  { %v427_v24 = vadd.f32 %v3002_v20, %v426_v23 }
 0x184   :  { %v431_v27 = vsel %vm430_vm5, %v3002_v20, %v427_v24 }
 0x185   :  { %v436_v30 = vsel %vm433_vm6, %v435_v28, %v431_v27 }
 0x1e3   :  { %v446_v29 = vpop.permute.xlu0 %445 }
 0x1e4   :  { %v448_v31 = vmul.f32 %v446_v29, %v436_v30 }
 0x1e6   :  { %450 = vrot.lane.b32.xlu1 %v448_v31, %s3678_s0 }
 0x1eb   :  { %v441_v32 = vpop.permute.xlu0 %440 }
 0x1ec   :  { %v443_v33 = vmul.f32 %v441_v32, %v436_v30 }
 0x258   :  { %v451_v34 = vpop.permute.xlu1 %450 }
 0x259   :  { %v453_v35 = vadd.f32 %v451_v34, %v443_v33 }
 0x25b   :  { %3003 = vtanh.f32 %v453_v35 }
 0x261   :  { %v3004_v36 = vpop.eup %3003 }
 0x262   :  { %456 = vrot.lane.b32.xlu1 %v3004_v36, %s3678_s0 }
 0x2d4   :  { %v457_v37 = vpop.permute.xlu1 %456 }
 0x2d5   :  { %v459_v38 = vmul.f32 %v457_v37, %v436_v30 }
 0x2d7   :  { %v460_v39 = vpack.c.bf16 %v459_v38, %v459_v38 }
 0x2d9   :  { %v463_v40 = vunpack.c.l.b16 %v460_v39 }
 0x2db   :  { %v464_v41 = vpack.c.b16 %v463_v40, %v463_v40 }
 0x2dd   :  { %465 = vrot.lane.b32.xlu2 %v464_v41, %s3689_s30 }
 0x337   :  { %v3939_v42 = vpop.permute.xlu2 %465 }
 0x338   :  { %2456 = vmatmul.msk.bf16.vlgmr.msrb.gmra.mxu2 %vm401_vm0, %v3939_v42 }
 0x339   :  { %862 = vmatpush.bf16.msrb.mxu2 %v3914_v1 }
 0x3bb   :  { %v479_v44 = vpop.f32.mrf.mxu2 }
 0x3bc   :  { %v483_v45 = vadd.f32 %v479_v44, %v461_v43 }
 0x3be   :  { %3005 = vtanh.f32 %v483_v45  ;;  %v2457_v48 = vmul.f32 -1.442695, %v483_v45 }
 0x3c0   :  { %3007 = vpow2.f32 %v2457_v48 }
 0x3c3   :  { %v481_v46 = vpop.f32.mrf.mxu2 }
 0x3c4   :  { %v3006_v47 = vpop.eup %3005  ;;  %v590_v46 = vld [vmem:[#allocation2 + $0x18] sm:$0xff] }
 0x3c5   :  { %506 = vrot.lane.b32.xlu2 %v3006_v47, %s3688_s9 }
 0x3c6   :  { %v3008_v49 = vpop.eup %3007 }
 0x3c7   :  { %v487_v50 = vadd.f32 1.0, %v3008_v49 }
 0x3c9   :  { %3009 = vrcp.f32 %v487_v50  ;;  %v499_v56 = vand.u32 2147483648, %v487_v50  ;;  %vm493_vm8 = vweird.f32 %v487_v50  ;;  %v497_v57 = vand.u32 2147483647, %v487_v50 }
 0x3cb   :  { %v500_v59 = vor.u32 1.1754944e-38, %v499_v56  ;;  %vm498_vm10 = vcmp.eq.f32.partialorder %v497_v57, 8.507059e+37 }
 0x3cf   :  { %v3010_v51 = vpop.eup %3009 }
 0x3d0   :  { %v489_v52 = vmul.f32 %v3010_v51, %v487_v50  ;;  %vm494_vm7 = vweird.f32 %v3010_v51 }
 0x3d1   :  { %vm495_vm9 = vmor %vm493_vm8, %vm494_vm7 }
 0x3d2   :  { %v490_v53 = vsub.f32 1.0, %v489_v52 }
 0x3d4   :  { %v491_v54 = vmul.f32 %v3010_v51, %v490_v53 }
 0x3d6   :  { %v492_v55 = vadd.f32 %v3010_v51, %v491_v54 }
 0x3d8   :  { %v496_v58 = vsel %vm495_vm9, %v3010_v51, %v492_v55 }
 0x3d9   :  { %v501_v61 = vsel %vm498_vm10, %v500_v59, %v496_v58 }
 0x3da   :  { %v504_v63 = vmul.f32 %v501_v61, %v453_v35 }
 0x41f   :  { %v507_v60 = vpop.permute.xlu2 %506 }
 0x420   :  { %v509_v62 = vmul.f32 %v507_v60, %v501_v61 }
 0x422   :  { %511 = vrot.lane.b32.xlu0 %v509_v62, %s3678_s0 }
 0x494   :  { %v512_v0 = vpop.permute.xlu0 %511 }
 0x495   :  { %v514_v1 = vadd.f32 %v512_v0, %v504_v63 }
 0x497   :  { %3011 = vtanh.f32 %v514_v1 }
 0x49d   :  { %v3012_v2 = vpop.eup %3011 }
 0x49e   :  { %517 = vrot.lane.b32.xlu1 %v3012_v2, %s3678_s0 }
 0x510   :  { %v518_v4 = vpop.permute.xlu1 %517 }
 0x511   :  { %v520_v5 = vmul.f32 %v518_v4, %v501_v61 }
 0x513   :  { %v521_v7 = vpack.c.bf16 %v520_v5, %v520_v5 }
 0x515   :  { %v523_v8 = vunpack.c.l.b16 %v521_v7  ;;  %v2843_v7 = vld [vmem:[%s3708_s5 + $0x10] sm:$0xff] }
 0x516   :  { %2448 = vmatmul.msk.bf16.gmra.mxu0 %vm340_vm1, %v2843_v7 }
 0x517   :  { %v3949_v9 = vpack.c.b16 %v523_v8, %v523_v8 }
 0x519   :  { %533 = vrot.lane.b32.xlu2 %v3949_v9, %s3689_s30 }
 0x573   :  { %v534_v10 = vpop.permute.xlu2 %533 }
 0x574   :  { %2458 = vmatmul.msk.bf16.vlgmr.msra.gmra.mxu3 %vm401_vm0, %v534_v10 }
 0x593   :  { %v372_v14 = vpop.f32.mrf.mxu0 }
 0x5f7   :  { %v547_v16 = vpop.f32.mrf.mxu3 }
 0x5f8   :  { %v551_v17 = vadd.f32 %v547_v16, %v532_v15  ;;  %v373_v15 = vadd.f32 %v3928_v6, %v372_v14  ;;  %v374_v16 = vpop.f32.mrf.mxu0 }
 0x5fa   :  { %3013 = vtanh.f32 %v551_v17  ;;  %v2459_v20 = vmul.f32 -1.442695, %v551_v17  ;;  %387 = vst.msk [vmem:[#allocation2 + $0x20] sm:$0xff] %vm382_vm2, %v373_v15  ;;  %v375_v17 = vadd.f32 %v3928_v6, %v374_v16 }
 0x5fc   :  { %3015 = vpow2.f32 %v2459_v20  ;;  %388 = vst.msk [vmem:[#allocation2 + $0x28] sm:$0xff] %vm382_vm2, %v375_v17 }
 0x5ff   :  { %v549_v18 = vpop.f32.mrf.mxu3 }
 0x600   :  { %v3014_v19 = vpop.eup %3013 }
 0x601   :  { %574 = vrot.lane.b32.xlu0 %v3014_v19, %s3688_s9  ;;  %v660_v19 = vld [vmem:[#allocation2 + $0x20] sm:$0xff] }
 0x602   :  { %v3016_v21 = vpop.eup %3015 }
 0x603   :  { %v555_v22 = vadd.f32 1.0, %v3016_v21 }
 0x605   :  { %3017 = vrcp.f32 %v555_v22  ;;  %v567_v28 = vand.u32 2147483648, %v555_v22  ;;  %vm561_vm12 = vweird.f32 %v555_v22  ;;  %v565_v29 = vand.u32 2147483647, %v555_v22 }
 0x607   :  { %v568_v31 = vor.u32 1.1754944e-38, %v567_v28  ;;  %vm566_vm14 = vcmp.eq.f32.partialorder %v565_v29, 8.507059e+37 }
 0x60b   :  { %v3018_v23 = vpop.eup %3017 }
 0x60c   :  { %v557_v24 = vmul.f32 %v3018_v23, %v555_v22  ;;  %vm562_vm11 = vweird.f32 %v3018_v23 }
 0x60d   :  { %vm563_vm13 = vmor %vm561_vm12, %vm562_vm11 }
 0x60e   :  { %v558_v25 = vsub.f32 1.0, %v557_v24 }
 0x610   :  { %v559_v26 = vmul.f32 %v3018_v23, %v558_v25 }
 0x612   :  { %v560_v27 = vadd.f32 %v3018_v23, %v559_v26 }
 0x614   :  { %v564_v30 = vsel %vm563_vm13, %v3018_v23, %v560_v27 }
 0x615   :  { %v569_v33 = vsel %vm566_vm14, %v568_v31, %v564_v30  ;;  %vm530_vm14 = vcmask 257024  }
 0x616   :  { %v572_v35 = vmul.f32 %v569_v33, %v514_v1 }
 0x673   :  { %v575_v32 = vpop.permute.xlu0 %574 }
 0x674   :  { %v577_v34 = vmul.f32 %v575_v32, %v569_v33 }
 0x676   :  { %579 = vrot.lane.b32.xlu1 %v577_v34, %s3678_s0 }
 0x6e8   :  { %v580_v36 = vpop.permute.xlu1 %579 }
 0x6e9   :  { %v582_v37 = vadd.f32 %v580_v36, %v572_v35 }
 0x6eb   :  { %3019 = vtanh.f32 %v582_v37 }
 0x6f1   :  { %v3020_v38 = vpop.eup %3019 }
 0x6f2   :  { %585 = vrot.lane.b32.xlu2 %v3020_v38, %s3678_s0 }
 0x74c   :  { %v586_v39 = vpop.permute.xlu2 %585 }
 0x74d   :  { %v588_v40 = vmul.f32 %v586_v39, %v569_v33 }
 0x74f   :  { %v589_v41 = vpack.c.bf16 %v588_v40, %v588_v40 }
 0x751   :  { %v592_v43 = vunpack.c.l.b16 %v589_v41 }
 0x753   :  { %v593_v44 = vpack.c.b16 %v592_v43, %v592_v43 }
 0x755   :  { %594 = vrot.lane.b32.xlu0 %v593_v44, %s3689_s30 }
 0x7c7   :  { %v3962_v45 = vpop.permute.xlu0 %594 }
 0x7c8   :  { %2460 = vmatmul.msk.bf16.vlgmr.msra.gmra.mxu1 %vm401_vm0, %v3962_v45 }
 0x845   :  { %v608_v47 = vpop.f32.mrf.mxu1 }
 0x846   :  { %v612_v48 = vadd.f32 %v608_v47, %v590_v46 }
 0x848   :  { %3021 = vtanh.f32 %v612_v48  ;;  %v2461_v51 = vmul.f32 -1.442695, %v612_v48 }
 0x84a   :  { %3023 = vpow2.f32 %v2461_v51  ;;  %v718_v51 = vld [vmem:[#allocation2 + $0x28] sm:$0xff] }
 0x84d   :  { %v610_v49 = vpop.f32.mrf.mxu1 }
 0x84e   :  { %v3022_v50 = vpop.eup %3021 }
 0x84f   :  { %635 = vrot.lane.b32.xlu1 %v3022_v50, %s3688_s9 }
 0x850   :  { %v3024_v52 = vpop.eup %3023 }
 0x851   :  { %v616_v53 = vadd.f32 1.0, %v3024_v52 }
 0x853   :  { %3025 = vrcp.f32 %v616_v53  ;;  %v628_v59 = vand.u32 2147483648, %v616_v53  ;;  %vm622_vm3 = vweird.f32 %v616_v53  ;;  %v626_v60 = vand.u32 2147483647, %v616_v53 }
 0x855   :  { %v629_v62 = vor.u32 1.1754944e-38, %v628_v59  ;;  %vm627_vm5 = vcmp.eq.f32.partialorder %v626_v60, 8.507059e+37 }
 0x859   :  { %v3026_v54 = vpop.eup %3025 }
 0x85a   :  { %v618_v55 = vmul.f32 %v3026_v54, %v616_v53  ;;  %vm623_vm15 = vweird.f32 %v3026_v54 }
 0x85b   :  { %vm624_vm4 = vmor %vm622_vm3, %vm623_vm15 }
 0x85c   :  { %v619_v56 = vsub.f32 1.0, %v618_v55 }
 0x85e   :  { %v620_v57 = vmul.f32 %v3026_v54, %v619_v56 }
 0x860   :  { %v621_v58 = vadd.f32 %v3026_v54, %v620_v57 }
 0x862   :  { %v625_v61 = vsel %vm624_vm4, %v3026_v54, %v621_v58 }
 0x863   :  { %v630_v0 = vsel %vm627_vm5, %v629_v62, %v625_v61 }
 0x864   :  { %v633_v2 = vmul.f32 %v630_v0, %v582_v37 }
 0x8c1   :  { %v636_v63 = vpop.permute.xlu1 %635 }
 0x8c2   :  { %v638_v1 = vmul.f32 %v636_v63, %v630_v0 }
 0x8c4   :  { %640 = vrot.lane.b32.xlu2 %v638_v1, %s3678_s0 }
 0x91e   :  { %v641_v3 = vpop.permute.xlu2 %640 }
 0x91f   :  { %v643_v4 = vadd.f32 %v641_v3, %v633_v2 }
 0x921   :  { %3027 = vtanh.f32 %v643_v4 }
 0x927   :  { %v3028_v5 = vpop.eup %3027 }
 0x928   :  { %646 = vrot.lane.b32.xlu0 %v3028_v5, %s3678_s0 }
 0x99a   :  { %v647_v8 = vpop.permute.xlu0 %646 }
 0x99b   :  { %v649_v10 = vmul.f32 %v647_v8, %v630_v0 }
 0x99d   :  { %v650_v11 = vpack.c.bf16 %v649_v10, %v649_v10  ;;  %v2851_v10 = vld [vmem:[%s4288_s2 + $0x8] sm:$0xff] }
 0x99e   :  { %964 = vmatpush.bf16.msra.mxu3 %v2851_v10 }
 0x99f   :  { %v652_v12 = vunpack.c.l.b16 %v650_v11  ;;  %v2850_v11 = vld [vmem:[%s4288_s2] sm:$0xff] }
 0x9a1   :  { %v3971_v13 = vpack.c.b16 %v652_v12, %v652_v12 }
 0x9a2   :  { %965 = vmatpush.bf16.msra.mxu3 %v2850_v11 }
 0x9a3   :  { %661 = vrot.lane.b32.xlu1 %v3971_v13, %s3689_s30 }
 0xa15   :  { %v662_v18 = vpop.permute.xlu1 %661 }
 0xa16   :  { %2462 = vmatmul.msk.bf16.vlgmr.msra.gmra.mxu2 %vm401_vm0, %v662_v18 }
 0xa99   :  { %v675_v20 = vpop.f32.mrf.mxu2 }
 0xa9a   :  { %v679_v21 = vadd.f32 %v675_v20, %v660_v19 }
 0xa9c   :  { %3029 = vtanh.f32 %v679_v21  ;;  %v2463_v24 = vmul.f32 -1.442695, %v679_v21 }
 0xa9e   :  { %3031 = vpow2.f32 %v2463_v24  ;;  %v4018_v24 = vld [vmem:[%s4289_s7] sm:$0xff] }
 0xaa1   :  { %v677_v22 = vpop.f32.mrf.mxu2 }
 0xaa2   :  { %v3030_v23 = vpop.eup %3029 }
 0xaa3   :  { %702 = vrot.lane.b32.xlu2 %v3030_v23, %s3688_s9  ;;  %v2844_v23 = vld [vmem:[%s3708_s5 + $0x18] sm:$0xff]  ;;  %s4290_s5 = sld [smem:[#allocation56_spill]] }
 0xaa4   :  { %v3032_v25 = vpop.eup %3031  ;;  %2449 = vmatmul.msk.bf16.gmra.mxu0 %vm340_vm1, %v2844_v23 }
 0xaa5   :  { %v683_v26 = vadd.f32 1.0, %v3032_v25 }
 0xaa7   :  { %3033 = vrcp.f32 %v683_v26  ;;  %v695_v32 = vand.u32 2147483648, %v683_v26  ;;  %vm689_vm7 = vweird.f32 %v683_v26  ;;  %v693_v33 = vand.u32 2147483647, %v683_v26 }
 0xaa9   :  { %v696_v35 = vor.u32 1.1754944e-38, %v695_v32  ;;  %vm694_vm9 = vcmp.eq.f32.partialorder %v693_v33, 8.507059e+37 }
 0xaad   :  { %v3034_v27 = vpop.eup %3033 }
 0xaae   :  { %v685_v28 = vmul.f32 %v3034_v27, %v683_v26  ;;  %vm690_vm6 = vweird.f32 %v3034_v27  ;;  %v920_v26 = vld [vmem:[#allocation17] sm:$0xff] }
 0xaaf   :  { %vm691_vm8 = vmor %vm689_vm7, %vm690_vm6 }
 0xab0   :  { %v686_v29 = vsub.f32 1.0, %v685_v28 }
 0xab2   :  { %v687_v30 = vmul.f32 %v3034_v27, %v686_v29 }
 0xab4   :  { %v688_v31 = vadd.f32 %v3034_v27, %v687_v30 }
 0xab6   :  { %v692_v34 = vsel %vm691_vm8, %v3034_v27, %v688_v31  ;;  %v985_v27 = vpack.c.bf16 %v920_v26, %v920_v26 }
 0xab7   :  { %v697_v37 = vsel %vm694_vm9, %v696_v35, %v692_v34 }
 0xab8   :  { %v700_v39 = vmul.f32 %v697_v37, %v643_v4 }
 0xafd   :  { %v703_v36 = vpop.permute.xlu2 %702 }
 0xafe   :  { %v705_v38 = vmul.f32 %v703_v36, %v697_v37 }
 0xb00   :  { %707 = vrot.lane.b32.xlu0 %v705_v38, %s3678_s0 }
 0xb21   :  { %v377_v28 = vpop.f32.mrf.mxu0 }
 0xb22   :  { %v378_v29 = vadd.f32 %v3928_v6, %v377_v28 }
 0xb24   :  { %389 = vst.msk [vmem:[#allocation2 + $0x30] sm:$0xff] %vm382_vm2, %v378_v29 }
 0xb29   :  { %v379_v30 = vpop.f32.mrf.mxu0 }
 0xb2a   :  { %v380_v31 = vadd.f32 %v3928_v6, %v379_v30 }
 0xb2b   :  { %v788_v32 = vld [vmem:[#allocation2 + $0x30] sm:$0xff] }
 0xb2c   :  { %390 = vst.msk [vmem:[#allocation2 + $0x38] sm:$0xff] %vm382_vm2, %v380_v31 }
 0xb72   :  { %v708_v40 = vpop.permute.xlu0 %707 }
 0xb73   :  { %v710_v41 = vadd.f32 %v708_v40, %v700_v39  ;;  %v921_v40 = vld [vmem:[%s4290_s5] sm:$0xff] }
 0xb75   :  { %3035 = vtanh.f32 %v710_v41 }
 0xb7b   :  { %v3036_v43 = vpop.eup %3035 }
 0xb7c   :  { %713 = vrot.lane.b32.xlu1 %v3036_v43, %s3678_s0 }
 0xbee   :  { %v714_v44 = vpop.permute.xlu1 %713 }
 0xbef   :  { %v716_v46 = vmul.f32 %v714_v44, %v697_v37  ;;  %v4032_v37 = vld [vmem:[#allocation15] ss:$0 sm:$0xff] }
 0xbf1   :  { %v717_v47 = vpack.c.bf16 %v716_v46, %v716_v46 }
 0xbf3   :  { %v720_v48 = vunpack.c.l.b16 %v717_v47 }
 0xbf5   :  { %v721_v49 = vpack.c.b16 %v720_v48, %v720_v48 }
 0xbf7   :  { %722 = vrot.lane.b32.xlu2 %v721_v49, %s3689_s30 }
 0xc51   :  { %v3984_v50 = vpop.permute.xlu2 %722 }
 0xc52   :  { %2464 = vmatmul.msk.bf16.vlgmr.msrb.gmra.mxu3 %vm401_vm0, %v3984_v50 }
 0xcd5   :  { %v736_v52 = vpop.f32.mrf.mxu3 }
 0xcd6   :  { %v740_v53 = vadd.f32 %v736_v52, %v718_v51 }
 0xcd8   :  { %3037 = vtanh.f32 %v740_v53  ;;  %v2465_v56 = vmul.f32 -1.442695, %v740_v53 }
 0xcda   :  { %3039 = vpow2.f32 %v2465_v56 }
 0xcdd   :  { %v738_v54 = vpop.f32.mrf.mxu3 }
 0xcde   :  { %v3038_v55 = vpop.eup %3037 }
 0xcdf   :  { %763 = vrot.lane.b32.xlu0 %v3038_v55, %s3688_s9 }
 0xce0   :  { %v3040_v57 = vpop.eup %3039 }
 0xce1   :  { %v744_v58 = vadd.f32 1.0, %v3040_v57 }
 0xce3   :  { %3041 = vrcp.f32 %v744_v58  ;;  %v756_v0 = vand.u32 2147483648, %v744_v58  ;;  %vm750_vm11 = vweird.f32 %v744_v58  ;;  %v754_v1 = vand.u32 2147483647, %v744_v58 }
 0xce5   :  { %v757_v3 = vor.u32 1.1754944e-38, %v756_v0  ;;  %vm755_vm13 = vcmp.eq.f32.partialorder %v754_v1, 8.507059e+37 }
 0xce7   :  { %525 = vrot.lane.b32.xlu0 %v3949_v9, %s3690_s4 }
 0xce9   :  { %v3042_v59 = vpop.eup %3041 }
 0xcea   :  { %v746_v60 = vmul.f32 %v3042_v59, %v744_v58  ;;  %vm751_vm10 = vweird.f32 %v3042_v59 }
 0xceb   :  { %vm752_vm12 = vmor %vm750_vm11, %vm751_vm10 }
 0xcec   :  { %v747_v61 = vsub.f32 1.0, %v746_v60 }
 0xcee   :  { %v748_v62 = vmul.f32 %v3042_v59, %v747_v61 }
 0xcf0   :  { %v749_v63 = vadd.f32 %v3042_v59, %v748_v62 }
 0xcf2   :  { %v753_v2 = vsel %vm752_vm12, %v3042_v59, %v749_v63 }
 0xcf3   :  { %v758_v4 = vsel %vm755_vm13, %v757_v3, %v753_v2 }
 0xcf4   :  { %v761_v12 = vmul.f32 %v758_v4, %v710_v41 }
 0xd51   :  { %v764_v9 = vpop.permute.xlu0 %763 }
 0xd52   :  { %v766_v5 = vmul.f32 %v764_v9, %v758_v4 }
 0xd54   :  { %768 = vrot.lane.b32.xlu1 %v766_v5, %s3678_s0 }
 0xd59   :  { %v526_v7 = vpop.permute.xlu0 %525 }
 0xd5a   :  { %v528_v8 = vsel %vm401_vm0, %v3939_v42, %v526_v7 }
 0xd5b   :  { %531 = vst.msk [vmem:[#allocation6] sm:$0xf] %vm530_vm14, %v528_v8 }
 0xd5c   :  { %654 = vrot.lane.b32.xlu1 %v3971_v13, %s3690_s4 }
 0xdc6   :  { %v769_v14 = vpop.permute.xlu1 %768 }
 0xdc7   :  { %v3999_v15 = vadd.f32 %v769_v14, %v761_v12 }
 0xdc9   :  { %3043 = vtanh.f32 %v3999_v15 }
 0xdce   :  { %v655_v16 = vpop.permute.xlu1 %654 }
 0xdcf   :  { %v3044_v17 = vpop.eup %3043  ;;  %v657_v42 = vsel %vm401_vm0, %v3962_v45, %v655_v16  ;;  %v4014_v45 = vld [vmem:[%s4289_s7 + $0x8] sm:$0xff] }
 0xdd0   :  { %659 = vst.msk [vmem:[#allocation6 + $0x4] sm:$0xf] %vm530_vm14, %v657_v42  ;;  %774 = vrot.lane.b32.xlu2 %v3044_v17, %s3678_s0  ;;  %1008 = vmatpush.bf16.msra.mxu1 %v4014_v45 }
 0xdd1   :  { %1073 = vmatpush.bf16.msra.mxu2 %v4014_v45 }
 0xdd4   :  { %1009 = vmatpush.bf16.msra.mxu1 %v4018_v24 }
 0xdd5   :  { %1074 = vmatpush.bf16.msra.mxu2 %v4018_v24 }
 0xdd7   :  { %v2848_v13 = vld [vmem:[#allocation6] sm:$0xff] }
 0xdd8   :  { %2486 = vmatmul.msk.bf16.vlgmr.msra.gmra.mxu3 %vm340_vm1, %v2848_v13 }
 0xe2a   :  { %v775_v18 = vpop.permute.xlu2 %774 }
 0xe2b   :  { %v777_v19 = vmul.f32 %v775_v18, %v758_v4 }
 0xe2d   :  { %v778_v20 = vpack.c.bf16 %v777_v19, %v777_v19 }
 0xe2f   :  { %v780_v21 = vunpack.c.l.b16 %v778_v20 }
 0xe31   :  { %v4007_v22 = vpack.c.b16 %v780_v21, %v780_v21 }
 0xe33   :  { %789 = vrot.lane.b32.xlu2 %v4007_v22, %s3689_s30 }
 0xe5b   :  { %v967_v38 = vpop.f32.mrf.mxu3 }
 0xe5c   :  { %v968_v39 = vadd.f32 %v4032_v37, %v967_v38 }
 0xe8d   :  { %v790_v25 = vpop.permute.xlu2 %789 }
 0xe8e   :  { %2466 = vmatmul.msk.bf16.vlgmr.msrb.gmra.mxu1 %vm401_vm0, %v790_v25 }
 0xe8f   :  { %1141 = vmatpush.bf16.msrb.mxu1 %v4014_v45 }
 0xe93   :  { %1142 = vmatpush.bf16.msrb.mxu1 %v4018_v24 }
 0xe9e   :  { %2496 = vmatmul.msk.bf16.vlgmr.msra.gmra.mxu1 %vm340_vm1, %v985_v27 }
 0xf0b   :  { %v803_v33 = vpop.f32.mrf.mxu1 }
 0xf0c   :  { %v807_v34 = vadd.f32 %v803_v33, %v788_v32 }
 0xf0e   :  { %3045 = vtanh.f32 %v807_v34  ;;  %v2467_v46 = vmul.f32 -1.442695, %v807_v34 }
 0xf13   :  { %v805_v35 = vpop.f32.mrf.mxu1 }
 0xf14   :  { %v3046_v36 = vpop.eup %3045 }
 0xf15   :  { %830 = vrot.lane.b32.xlu0 %v3046_v36, %s3688_s9  ;;  %v846_v36 = vld [vmem:[#allocation2 + $0x38] sm:$0xff] }
 0xf1b   :  { %v1011_v41 = vpop.f32.mrf.mxu1 }
 0xf1c   :  { %v1015_v43 = vadd.f32 %v1011_v41, %v968_v39 }
 0xf1d   :  { %1037 = vrot.lane.b32.xlu0 %v921_v40, %s3691_s10 }
 0xf1e   :  { %3047 = vtanh.f32 %v1015_v43  ;;  %v2497_v49 = vmul.f32 -1.442695, %v1015_v43  ;;  %v969_v43 = vpop.f32.mrf.mxu3 }
 0xf1f   :  { %3049 = vpow2.f32 %v2467_v46 }
 0xf23   :  { %v1013_v6 = vpop.f32.mrf.mxu1 }
 0xf24   :  { %v3048_v44 = vpop.eup %3047  ;;  %v970_v6 = vadd.f32 %v4032_v37, %v969_v43 }
 0xf25   :  { %1042 = vrot.lane.b32.xlu1 %v3048_v44, %s3691_s10  ;;  %v3050_v47 = vpop.eup %3049 }
 0xf26   :  { %v811_v48 = vadd.f32 1.0, %v3050_v47 }
 0xf28   :  { %3051 = vrcp.f32 %v811_v48  ;;  %v823_v59 = vand.u32 2147483648, %v811_v48  ;;  %vm817_vm3 = vweird.f32 %v811_v48  ;;  %v821_v60 = vand.u32 2147483647, %v811_v48 }
 0xf29   :  { %3053 = vpow2.f32 %v2497_v49 }
 0xf2a   :  { %v824_v63 = vor.u32 1.1754944e-38, %v823_v59  ;;  %vm822_vm5 = vcmp.eq.f32.partialorder %v821_v60, 8.507059e+37 }
 0xf2e   :  { %v3052_v51 = vpop.eup %3051 }
 0xf2f   :  { %v3054_v52 = vpop.eup %3053  ;;  %v813_v53 = vmul.f32 %v3052_v51, %v811_v48  ;;  %vm818_vm15 = vweird.f32 %v3052_v51 }
 0xf30   :  { %v1019_v54 = vadd.f32 1.0, %v3054_v52  ;;  %vm819_vm4 = vmor %vm817_vm3, %vm818_vm15 }
 0xf31   :  { %v814_v55 = vsub.f32 1.0, %v813_v53 }
 0xf32   :  { %3055 = vrcp.f32 %v1019_v54  ;;  %v1031_v5 = vand.u32 2147483648, %v1019_v54  ;;  %vm1025_vm7 = vweird.f32 %v1019_v54  ;;  %v1029_v7 = vand.u32 2147483647, %v1019_v54 }
 0xf33   :  { %v815_v56 = vmul.f32 %v3052_v51, %v814_v55 }
 0xf34   :  { %v1032_v10 = vor.u32 1.1754944e-38, %v1031_v5  ;;  %vm1030_vm9 = vcmp.eq.f32.partialorder %v1029_v7, 8.507059e+37 }
 0xf35   :  { %v816_v57 = vadd.f32 %v3052_v51, %v815_v56 }
 0xf37   :  { %v820_v61 = vsel %vm819_vm4, %v3052_v51, %v816_v57 }
 0xf38   :  { %v3056_v58 = vpop.eup %3055  ;;  %v825_v1 = vsel %vm822_vm5, %v824_v63, %v820_v61 }
 0xf39   :  { %v1021_v62 = vmul.f32 %v3056_v58, %v1019_v54  ;;  %vm1026_vm6 = vweird.f32 %v3056_v58  ;;  %v828_v16 = vmul.f32 %v825_v1, %v3999_v15 }
 0xf3a   :  { %vm1027_vm8 = vmor %vm1025_vm7, %vm1026_vm6 }
 0xf3b   :  { %v1022_v3 = vsub.f32 1.0, %v1021_v62 }
 0xf3d   :  { %v1023_v9 = vmul.f32 %v3056_v58, %v1022_v3 }
 0xf3f   :  { %v1024_v4 = vadd.f32 %v3056_v58, %v1023_v9 }
 0xf41   :  { %v1028_v8 = vsel %vm1027_vm8, %v3056_v58, %v1024_v4 }
 0xf42   :  { %v1033_v11 = vsel %vm1030_vm9, %v1032_v10, %v1028_v8 }
 0xf87   :  { %v831_v0 = vpop.permute.xlu0 %830 }
 0xf88   :  { %v833_v2 = vmul.f32 %v831_v0, %v825_v1 }
 0xf8a   :  { %835 = vrot.lane.b32.xlu2 %v833_v2, %s3678_s0 }
 0xf8f   :  { %v1038_v18 = vpop.permute.xlu0 %1037 }
 0xf90   :  { %v1040_v19 = vmul.f32 %v1038_v18, %v1033_v11 }
 0xf97   :  { %v1043_v12 = vpop.permute.xlu1 %1042 }
 0xf98   :  { %v1045_v14 = vmul.f32 %v1043_v12, %v1033_v11 }
 0xf9a   :  { %1047 = vrot.lane.b32.xlu1 %v1045_v14, %s3691_s10 }
 0xfe4   :  { %v836_v17 = vpop.permute.xlu2 %835 }
 0xfe5   :  { %v4041_v42 = vadd.f32 %v836_v17, %v828_v16 }
 0xfe7   :  { %3057 = vtanh.f32 %v4041_v42 }
 0xfed   :  { %v3058_v13 = vpop.eup %3057 }
 0xfee   :  { %841 = vrot.lane.b32.xlu2 %v3058_v13, %s3678_s0 }
0x100c   :  { %v1048_v20 = vpop.permute.xlu1 %1047 }
0x100d   :  { %v4045_v21 = vadd.f32 %v1048_v20, %v1040_v19 }
0x100f   :  { %3059 = vtanh.f32 %v4045_v21 }
0x1015   :  { %v3060_v23 = vpop.eup %3059 }
0x1016   :  { %1053 = vrot.lane.b32.xlu0 %v3060_v23, %s3691_s10 }
0x1048   :  { %v842_v25 = vpop.permute.xlu2 %841 }
0x1049   :  { %v844_v15 = vmul.f32 %v842_v25, %v825_v1 }
0x104b   :  { %v845_v26 = vpack.c.bf16 %v844_v15, %v844_v15 }
0x104d   :  { %v848_v27 = vunpack.c.l.b16 %v845_v26 }
0x104f   :  { %v849_v28 = vpack.c.b16 %v848_v27, %v848_v27 }
0x1051   :  { %850 = vrot.lane.b32.xlu1 %v849_v28, %s3689_s30 }
0x1088   :  { %v1054_v29 = vpop.permute.xlu0 %1053 }
0x1089   :  { %v1056_v30 = vmul.f32 %v1054_v29, %v1033_v11 }
0x108b   :  { %v1057_v31 = vpack.c.bf16 %v1056_v30, %v1056_v30 }
0x108d   :  { %v1060_v32 = vunpack.c.l.b16 %v1057_v31 }
0x108f   :  { %v1061_v33 = vpack.c.b16 %v1060_v32, %v1060_v32 }
0x1091   :  { %1062 = vrot.lane.b32.xlu2 %v1061_v33, %s3680_s26 }
0x10c3   :  { %v4051_v34 = vpop.permute.xlu1 %850 }
0x10c4   :  { %2468 = vmatmul.msk.bf16.vlgmr.msrb.gmra.mxu2 %vm401_vm0, %v4051_v34 }
0x10c5   :  { %1202 = vmatpush.bf16.msrb.mxu2 %v4014_v45 }
0x10c9   :  { %1203 = vmatpush.bf16.msrb.mxu2 %v4018_v24 }
0x10eb   :  { %v4057_v35 = vpop.permute.xlu2 %1062 }
0x10ec   :  { %2498 = vmatmul.msk.bf16.vlgmr.msra.gmra.mxu2 %vm340_vm1, %v4057_v35 }
0x1147   :  { %v864_v38 = vpop.f32.mrf.mxu2 }
0x1148   :  { %v868_v39 = vadd.f32 %v864_v38, %v846_v36 }
0x114a   :  { %3061 = vtanh.f32 %v868_v39  ;;  %v2469_v47 = vmul.f32 -1.442695, %v868_v39 }
0x114f   :  { %v866_v40 = vpop.f32.mrf.mxu2 }
0x1150   :  { %v3062_v41 = vpop.eup %3061 }
0x1151   :  { %891 = vrot.lane.b32.xlu0 %v3062_v41, %s3688_s9 }
0x116f   :  { %v1076_v44 = vpop.f32.mrf.mxu2 }
0x1170   :  { %v1080_v45 = vadd.f32 %v1076_v44, %v970_v6 }
0x1172   :  { %3063 = vtanh.f32 %v1080_v45  ;;  %v2499_v57 = vmul.f32 -1.442695, %v1080_v45 }
0x1173   :  { %3065 = vpow2.f32 %v2469_v47 }
0x1177   :  { %v1078_v24 = vpop.f32.mrf.mxu2 }
0x1178   :  { %v3064_v46 = vpop.eup %3063 }
0x1179   :  { %1103 = vrot.lane.b32.xlu1 %v3064_v46, %s3691_s10  ;;  %v3066_v48 = vpop.eup %3065 }
0x117a   :  { %v872_v49 = vadd.f32 1.0, %v3066_v48 }
0x117c   :  { %3067 = vrcp.f32 %v872_v49  ;;  %v884_v56 = vand.u32 2147483648, %v872_v49  ;;  %vm878_vm11 = vweird.f32 %v872_v49  ;;  %v882_v58 = vand.u32 2147483647, %v872_v49 }
0x117d   :  { %3069 = vpow2.f32 %v2499_v57 }
0x117e   :  { %v885_v60 = vor.u32 1.1754944e-38, %v884_v56  ;;  %vm883_vm13 = vcmp.eq.f32.partialorder %v882_v58, 8.507059e+37 }
0x1182   :  { %v3068_v51 = vpop.eup %3067 }
0x1183   :  { %v874_v52 = vmul.f32 %v3068_v51, %v872_v49  ;;  %vm879_vm10 = vweird.f32 %v3068_v51  ;;  %v3070_v0 = vpop.eup %3069 }
0x1184   :  { %vm880_vm12 = vmor %vm878_vm11, %vm879_vm10  ;;  %v1084_v1 = vadd.f32 1.0, %v3070_v0 }
0x1185   :  { %v875_v53 = vsub.f32 1.0, %v874_v52 }
0x1186   :  { %3071 = vrcp.f32 %v1084_v1  ;;  %v1096_v7 = vand.u32 2147483648, %v1084_v1  ;;  %vm1090_vm3 = vweird.f32 %v1084_v1  ;;  %v1094_v8 = vand.u32 2147483647, %v1084_v1 }
0x1187   :  { %v876_v54 = vmul.f32 %v3068_v51, %v875_v53 }
0x1188   :  { %v1097_v11 = vor.u32 1.1754944e-38, %v1096_v7  ;;  %vm1095_vm5 = vcmp.eq.f32.partialorder %v1094_v8, 8.507059e+37 }
0x1189   :  { %v877_v55 = vadd.f32 %v3068_v51, %v876_v54 }
0x118b   :  { %v881_v59 = vsel %vm880_vm12, %v3068_v51, %v877_v55 }
0x118c   :  { %v886_v62 = vsel %vm883_vm13, %v885_v60, %v881_v59  ;;  %v3072_v2 = vpop.eup %3071  ;;  %vm1127_vm13 = vcmask 519168  }
0x118d   :  { %v1086_v3 = vmul.f32 %v3072_v2, %v1084_v1  ;;  %vm1091_vm15 = vweird.f32 %v3072_v2  ;;  %v889_v17 = vmul.f32 %v886_v62, %v4041_v42 }
0x118e   :  { %vm1092_vm4 = vmor %vm1090_vm3, %vm1091_vm15 }
0x118f   :  { %v1087_v9 = vsub.f32 1.0, %v1086_v3 }
0x1191   :  { %v1088_v4 = vmul.f32 %v3072_v2, %v1087_v9 }
0x1193   :  { %v1089_v5 = vadd.f32 %v3072_v2, %v1088_v4 }
0x1195   :  { %v1093_v10 = vsel %vm1092_vm4, %v3072_v2, %v1089_v5 }
0x1196   :  { %v1098_v14 = vsel %vm1095_vm5, %v1097_v11, %v1093_v10 }
0x1197   :  { %v1101_v20 = vmul.f32 %v1098_v14, %v4045_v21 }
0x11c3   :  { %v892_v61 = vpop.permute.xlu0 %891 }
0x11c4   :  { %v894_v63 = vmul.f32 %v892_v61, %v886_v62 }
0x11c6   :  { %896 = vrot.lane.b32.xlu2 %v894_v63, %s3678_s0 }
0x11eb   :  { %v1104_v12 = vpop.permute.xlu1 %1103 }
0x11ec   :  { %v1106_v16 = vmul.f32 %v1104_v12, %v1098_v14 }
0x11ee   :  { %1108 = vrot.lane.b32.xlu0 %v1106_v16, %s3691_s10 }
0x11f6   :  { %782 = vrot.lane.b32.xlu0 %v4007_v22, %s3690_s4 }
0x1220   :  { %v897_v13 = vpop.permute.xlu2 %896 }
0x1221   :  { %v4069_v18 = vadd.f32 %v897_v13, %v889_v17 }
0x1223   :  { %3073 = vtanh.f32 %v4069_v18 }
0x1229   :  { %v3074_v19 = vpop.eup %3073 }
0x122a   :  { %902 = vrot.lane.b32.xlu1 %v3074_v19, %s3678_s0  ;;  %s4291_s0 = sld [smem:[#allocation57_spill]] }
0x1260   :  { %v1109_v23 = vpop.permute.xlu0 %1108 }
0x1261   :  { %v1111_v25 = vadd.f32 %v1109_v23, %v1101_v20 }
0x1263   :  { %3075 = vtanh.f32 %v1111_v25 }
0x1268   :  { %v783_v15 = vpop.permute.xlu0 %782 }
0x1269   :  { %v3076_v26 = vpop.eup %3075  ;;  %v785_v22 = vsel %vm401_vm0, %v3984_v50, %v783_v15 }
0x126a   :  { %787 = vst.msk [vmem:[#allocation6 + $0x8] sm:$0xf] %vm530_vm14, %v785_v22  ;;  %1114 = vrot.lane.b32.xlu2 %v3076_v26, %s3691_s10 }
0x129c   :  { %v903_v42 = vpop.permute.xlu1 %902 }
0x129d   :  { %v4078_v27 = vmul.f32 %v903_v42, %v886_v62 }
0x129f   :  { %v906_v28 = vpack.c.bf16 %v4078_v27, %v4078_v27 }
0x12a1   :  { %v908_v29 = vunpack.c.l.b16 %v906_v28 }
0x12a3   :  { %v909_v21 = vpack.c.b16 %v908_v29, %v908_v29 }
0x12a5   :  { %910 = vrot.lane.b32.xlu1 %v909_v21, %s3690_s4 }
0x12c4   :  { %v1115_v30 = vpop.permute.xlu2 %1114 }
0x12c5   :  { %v1117_v31 = vmul.f32 %v1115_v30, %v1098_v14 }
0x12c7   :  { %v1118_v32 = vpack.c.bf16 %v1117_v31, %v1117_v31 }
0x12c9   :  { %v1120_v33 = vunpack.c.l.b16 %v1118_v32 }
0x12cb   :  { %v1121_v36 = vpack.c.b16 %v1120_v33, %v1120_v33 }
0x12cd   :  { %1130 = vrot.lane.b32.xlu2 %v1121_v36, %s3680_s26 }
0x1317   :  { %v911_v50 = vpop.permute.xlu1 %910 }
0x1318   :  { %v913_v38 = vsel %vm401_vm0, %v4051_v34, %v911_v50 }
0x1319   :  { %915 = vst.msk [vmem:[#allocation6 + $0xc] sm:$0xf] %vm530_vm14, %v913_v38  ;;  %v2861_v38 = vld [vmem:[%s4291_s0 + $0x34] sm:$0xf] }
0x1320   :  { %v2849_v39 = vld [vmem:[#allocation6 + $0x8] sm:$0xff] }
0x1321   :  { %2487 = vmatmul.msk.bf16.gmra.mxu3 %vm340_vm1, %v2849_v39  ;;  %v2536_v39 = vld [vmem:[%s4291_s0 + $0x38] sm:$0xf0] }
0x1327   :  { %v1131_v40 = vpop.permute.xlu2 %1130 }
0x1328   :  { %2500 = vmatmul.msk.bf16.vlgmr.msrb.gmra.mxu1 %vm340_vm1, %v1131_v40  ;;  %v2859_v40 = vld [vmem:[%s4291_s0 + $0x24] sm:$0xf] }
0x13a4   :  { %v972_v43 = vpop.f32.mrf.mxu3 }
0x13a5   :  { %v1144_v41 = vpop.f32.mrf.mxu1  ;;  %v973_v6 = vadd.f32 %v4032_v37, %v972_v43  ;;  %v2869_v43 = vld [vmem:[%s4292_s14 + $0x34] sm:$0xf] }
0x13a7   :  { %v1148_v44 = vadd.f32 %v1144_v41, %v973_v6  ;;  %v2528_v41 = vld [vmem:[%s4291_s0 + $0x28] sm:$0xf0]  ;;  %v2570_v6 = vld [vmem:[%s4292_s14 + $0x38] sm:$0xf0] }
0x13a9   :  { %3077 = vtanh.f32 %v1148_v44  ;;  %v2501_v46 = vmul.f32 -1.442695, %v1148_v44  ;;  %v2867_v44 = vld [vmem:[%s4292_s14 + $0x24] sm:$0xf] }
0x13ab   :  { %3079 = vpow2.f32 %v2501_v46  ;;  %v2562_v46 = vld [vmem:[%s4292_s14 + $0x28] sm:$0xf0] }
0x13ac   :  { %v974_v7 = vpop.f32.mrf.mxu3 }
0x13ad   :  { %v1146_v45 = vpop.f32.mrf.mxu1  ;;  %v975_v8 = vadd.f32 %v4032_v37, %v974_v7  ;;  %v2526_v7 = vld [vmem:[%s4291_s0 + $0x20] sm:$0xf] }
0x13ae   :  { %v2531_v45 = vor.u32 %v2859_v40, %v2528_v41 }
0x13af   :  { %v3078_v24 = vpop.eup %3077 }
0x13b0   :  { %1171 = vrot.lane.b32.xlu0 %v3078_v24, %s3691_s10  ;;  %v2573_v24 = vor.u32 %v2869_v43, %v2570_v6 }
0x13b1   :  { %v3080_v34 = vpop.eup %3079 }
0x13b2   :  { %v1152_v47 = vadd.f32 1.0, %v3080_v34  ;;  %v2857_v34 = vld [vmem:[%s4291_s0 + $0x14] sm:$0xf]  ;;  %1426 = vmatpush.bf16.msra.mxu2 %v2573_v24 }
0x13b4   :  { %3081 = vrcp.f32 %v1152_v47  ;;  %v1164_v54 = vand.u32 2147483648, %v1152_v47  ;;  %vm1158_vm6 = vweird.f32 %v1152_v47  ;;  %v1162_v55 = vand.u32 2147483647, %v1152_v47 }
0x13b6   :  { %v1165_v57 = vor.u32 1.1754944e-38, %v1164_v54  ;;  %vm1163_vm8 = vcmp.eq.f32.partialorder %v1162_v55, 8.507059e+37 }
0x13ba   :  { %v3082_v48 = vpop.eup %3081 }
0x13bb   :  { %v1154_v49 = vmul.f32 %v3082_v48, %v1152_v47  ;;  %vm1159_vm14 = vweird.f32 %v3082_v48  ;;  %v2520_v47 = vld [vmem:[%s4291_s0 + $0x18] sm:$0xf0] }
0x13bc   :  { %vm1160_vm7 = vmor %vm1158_vm6, %vm1159_vm14  ;;  %v2523_v55 = vor.u32 %v2857_v34, %v2520_v47 }
0x13bd   :  { %v1155_v51 = vsub.f32 1.0, %v1154_v49  ;;  %v2565_v49 = vor.u32 %v2867_v44, %v2562_v46 }
0x13bf   :  { %v1156_v52 = vmul.f32 %v3082_v48, %v1155_v51  ;;  %v2862_v51 = vld [vmem:[%s4291_s0 + $0x34] sm:$0xf0]  ;;  %1427 = vmatpush.bf16.msra.mxu2 %v2565_v49 }
0x13c1   :  { %v1157_v53 = vadd.f32 %v3082_v48, %v1156_v52  ;;  %v2865_v52 = vld [vmem:[%s4292_s14 + $0x14] sm:$0xf] }
0x13c3   :  { %v1161_v56 = vsel %vm1160_vm7, %v3082_v48, %v1157_v53  ;;  %v2534_v48 = vld [vmem:[%s4291_s0 + $0x30] sm:$0xf]  ;;  %v2554_v53 = vld [vmem:[%s4292_s14 + $0x18] sm:$0xf0] }
0x13c4   :  { %v1166_v59 = vsel %vm1163_vm8, %v1165_v57, %v1161_v56  ;;  %v2535_v54 = vor.u32 %v2862_v51, %v2534_v48  ;;  %v2855_v56 = vld [vmem:[%s4291_s0 + $0x4] sm:$0xf]  ;;  %v2512_v57 = vld [vmem:[%s4291_s0 + $0x8] sm:$0xf0] }
0x13c5   :  { %v1169_v61 = vmul.f32 %v1166_v59, %v1111_v25 }
0x13c6   :  { %1327 = vmatpush.bf16.msrb.mxu3 %v2535_v54 }
0x1422   :  { %v1172_v58 = vpop.permute.xlu0 %1171 }
0x1423   :  { %v1174_v60 = vmul.f32 %v1172_v58, %v1166_v59  ;;  %v2557_v58 = vor.u32 %v2865_v52, %v2554_v53 }
0x1425   :  { %1176 = vrot.lane.b32.xlu1 %v1174_v60, %s3691_s10  ;;  %v2546_v60 = vld [vmem:[%s4292_s14 + $0x8] sm:$0xf0]  ;;  %1428 = vmatpush.bf16.msra.mxu2 %v2557_v58 }
0x1497   :  { %v1177_v62 = vpop.permute.xlu1 %1176 }
0x1498   :  { %v1179_v63 = vadd.f32 %v1177_v62, %v1169_v61  ;;  %v2515_v61 = vor.u32 %v2855_v56, %v2512_v57 }
0x149a   :  { %3083 = vtanh.f32 %v1179_v63 }
0x14a0   :  { %v3084_v0 = vpop.eup %3083 }
0x14a1   :  { %1182 = vrot.lane.b32.xlu2 %v3084_v0, %s3691_s10 }
0x14fb   :  { %v1183_v1 = vpop.permute.xlu2 %1182 }
0x14fc   :  { %v1185_v2 = vmul.f32 %v1183_v1, %v1166_v59  ;;  %v2863_v59 = vld [vmem:[%s4292_s14 + $0x4] sm:$0xf] }
0x14fd   :  { %v2549_v62 = vor.u32 %v2863_v59, %v2546_v60 }
0x14fe   :  { %v1186_v3 = vpack.c.bf16 %v1185_v2, %v1185_v2 }
0x14ff   :  { %1429 = vmatpush.bf16.msra.mxu2 %v2549_v62 }
0x1500   :  { %v1189_v9 = vunpack.c.l.b16 %v1186_v3 }
0x1502   :  { %v1190_v4 = vpack.c.b16 %v1189_v9, %v1189_v9 }
0x1504   :  { %1191 = vrot.lane.b32.xlu0 %v1190_v4, %s3680_s26 }
0x1576   :  { %v4094_v5 = vpop.permute.xlu0 %1191 }
0x1577   :  { %2502 = vmatmul.msk.bf16.vlgmr.msrb.gmra.mxu2 %vm340_vm1, %v4094_v5 }
0x15fa   :  { %v1205_v10 = vpop.f32.mrf.mxu2 }
0x15fb   :  { %v1209_v11 = vadd.f32 %v1205_v10, %v975_v8  ;;  %v2860_v8 = vld [vmem:[%s4291_s0 + $0x24] sm:$0xf0] }
0x15fc   :  { %v2527_v10 = vor.u32 %v2860_v8, %v2526_v7 }
0x15fd   :  { %3085 = vtanh.f32 %v1209_v11  ;;  %v2503_v16 = vmul.f32 -1.442695, %v1209_v11  ;;  %v2518_v11 = vld [vmem:[%s4291_s0 + $0x10] sm:$0xf] }
0x15fe   :  { %1328 = vmatpush.bf16.msrb.mxu3 %v2527_v10 }
0x15ff   :  { %3087 = vpow2.f32 %v2503_v16 }
0x1602   :  { %v1207_v12 = vpop.f32.mrf.mxu2 }
0x1603   :  { %v3086_v14 = vpop.eup %3085  ;;  %v2858_v12 = vld [vmem:[%s4291_s0 + $0x14] sm:$0xf0] }
0x1604   :  { %1232 = vrot.lane.b32.xlu1 %v3086_v14, %s3691_s10  ;;  %v2568_v14 = vld [vmem:[%s4292_s14 + $0x30] sm:$0xf]  ;;  %v2519_v16 = vor.u32 %v2858_v12, %v2518_v11 }
0x1605   :  { %v3088_v17 = vpop.eup %3087 }
0x1606   :  { %v1213_v13 = vadd.f32 1.0, %v3088_v17  ;;  %v2870_v17 = vld [vmem:[%s4292_s14 + $0x34] sm:$0xf0]  ;;  %1329 = vmatpush.bf16.msrb.mxu3 %v2519_v16 }
0x1608   :  { %3089 = vrcp.f32 %v1213_v13  ;;  %v1225_v37 = vand.u32 2147483648, %v1213_v13  ;;  %vm1219_vm10 = vweird.f32 %v1213_v13  ;;  %v1223_v26 = vand.u32 2147483647, %v1213_v13 }
0x160a   :  { %v1226_v42 = vor.u32 1.1754944e-38, %v1225_v37  ;;  %vm1224_vm12 = vcmp.eq.f32.partialorder %v1223_v26, 8.507059e+37  ;;  %v2552_v26 = vld [vmem:[%s4292_s14 + $0x10] sm:$0xf] }
0x160c   :  { %1122 = vrot.lane.b32.xlu1 %v1121_v36, %s3689_s30 }
0x160e   :  { %v3090_v19 = vpop.eup %3089 }
0x160f   :  { %v1215_v20 = vmul.f32 %v3090_v19, %v1213_v13  ;;  %vm1220_vm9 = vweird.f32 %v3090_v19  ;;  %v2510_v13 = vld [vmem:[%s4291_s0] sm:$0xf] }
0x1610   :  { %vm1221_vm11 = vmor %vm1219_vm10, %vm1220_vm9 }
0x1611   :  { %v1216_v23 = vsub.f32 1.0, %v1215_v20  ;;  %v2569_v20 = vor.u32 %v2870_v17, %v2568_v14 }
0x1613   :  { %v1217_v25 = vmul.f32 %v3090_v19, %v1216_v23  ;;  %v2560_v23 = vld [vmem:[%s4292_s14 + $0x20] sm:$0xf]  ;;  %1413 = vmatpush.bf16.msra.mxu1 %v2569_v20 }
0x1615   :  { %v1218_v15 = vadd.f32 %v3090_v19, %v1217_v25  ;;  %v2868_v25 = vld [vmem:[%s4292_s14 + $0x24] sm:$0xf0] }
0x1616   :  { %v2561_v37 = vor.u32 %v2868_v25, %v2560_v23 }
0x1617   :  { %v1222_v22 = vsel %vm1221_vm11, %v3090_v19, %v1218_v15  ;;  %v2856_v19 = vld [vmem:[%s4291_s0 + $0x4] sm:$0xf0] }
0x1618   :  { %v1227_v29 = vsel %vm1224_vm12, %v1226_v42, %v1222_v22  ;;  %v2511_v15 = vor.u32 %v2856_v19, %v2510_v13  ;;  %1414 = vmatpush.bf16.msra.mxu1 %v2561_v37  ;;  %v2866_v22 = vld [vmem:[%s4292_s14 + $0x14] sm:$0xf0] }
0x1619   :  { %v1230_v32 = vmul.f32 %v1227_v29, %v1179_v63  ;;  %v1259_v63 = vld [vmem:[#allocation20] sm:$0xff]  ;;  %v2553_v42 = vor.u32 %v2866_v22, %v2552_v26 }
0x161a   :  { %v1363_v0 = vpack.c.bf16 %v1259_v63, %v1259_v63  ;;  %1330 = vmatpush.bf16.msrb.mxu3 %v2511_v15 }
0x161c   :  { %2575 = vmatmul.msk.bf16.vlgmr.msra.gmra.mxu2 %vm382_vm2, %v1363_v0  ;;  %1415 = vmatpush.bf16.msra.mxu1 %v2553_v42 }
0x161e   :  { %1507 = vmatpush.bf16.msra.mxu3 %v2569_v20 }
0x1622   :  { %1508 = vmatpush.bf16.msra.mxu3 %v2561_v37 }
0x1626   :  { %1509 = vmatpush.bf16.msra.mxu3 %v2553_v42 }
0x1676   :  { %v1233_v28 = vpop.permute.xlu1 %1232 }
0x1677   :  { %v1235_v21 = vmul.f32 %v1233_v28, %v1227_v29  ;;  %v2544_v28 = vld [vmem:[%s4292_s14] sm:$0xf] }
0x1679   :  { %1237 = vrot.lane.b32.xlu2 %v1235_v21, %s3691_s10  ;;  %v1260_v21 = vld [vmem:[#allocation21] sm:$0xff] }
0x167a   :  { %1477 = vrot.lane.b32.xlu1 %v1260_v21, %s3680_s26 }
0x167e   :  { %v1123_v30 = vpop.permute.xlu1 %1122 }
0x167f   :  { %v1125_v31 = vsel %vm340_vm1, %v4057_v35, %v1123_v30  ;;  %v2539_v35 = vor.u32 %v2861_v38, %v2536_v39 }
0x1680   :  { %1128 = vst.msk [vmem:[#allocation7] sm:$0xf] %vm1127_vm13, %v1125_v31 }
0x1681   :  { %1341 = vmatpush.bf16.msrb.mxu0 %v2539_v35  ;;  %v4154_v35 = vld [vmem:[#allocation18] sm:$0x3] }
0x1682   :  { %v1272_v41 = vperm.slane %v4154_v35, 1 }
0x1685   :  { %1342 = vmatpush.bf16.msrb.mxu0 %v2531_v45  ;;  %v1271_v45 = vperm.slane %v4154_v35, 0 }
0x1689   :  { %1343 = vmatpush.bf16.msrb.mxu0 %v2523_v55 }
0x168d   :  { %1344 = vmatpush.bf16.msrb.mxu0 %v2515_v61 }
0x1691   :  { %1520 = vmatpush.bf16.msra.mxu0 %v2573_v24 }
0x1695   :  { %1521 = vmatpush.bf16.msra.mxu0 %v2565_v49 }
0x1699   :  { %1522 = vmatpush.bf16.msra.mxu0 %v2557_v58 }
0x169d   :  { %1523 = vmatpush.bf16.msra.mxu0 %v2549_v62 }
0x16d3   :  { %v1238_v33 = vpop.permute.xlu2 %1237 }
0x16d4   :  { %v4105_v36 = vadd.f32 %v1238_v33, %v1230_v32 }
0x16d6   :  { %3091 = vtanh.f32 %v4105_v36 }
0x16dc   :  { %v3092_v50 = vpop.eup %3091 }
0x16dd   :  { %1243 = vrot.lane.b32.xlu0 %v3092_v50, %s3691_s10  ;;  %v1431_v50 = vpop.f32.mrf.mxu2 }
0x16e5   :  { %v1433_v38 = vpop.f32.mrf.mxu2 }
0x16ec   :  { %v1478_v63 = vpop.permute.xlu1 %1477 }
0x174f   :  { %v1244_v1 = vpop.permute.xlu0 %1243 }
0x1750   :  { %v4128_v2 = vmul.f32 %v1244_v1, %v1227_v29  ;;  %v2864_v29 = vld [vmem:[%s4292_s14 + $0x4] sm:$0xf0] }
0x1751   :  { %v2545_v30 = vor.u32 %v2864_v29, %v2544_v28 }
0x1752   :  { %v1247_v3 = vpack.c.bf16 %v4128_v2, %v4128_v2 }
0x1753   :  { %1416 = vmatpush.bf16.msra.mxu1 %v2545_v30  ;;  %1510 = vmatpush.bf16.msra.mxu3 %v2545_v30 }
0x1754   :  { %v1249_v9 = vunpack.c.l.b16 %v1247_v3 }
0x1756   :  { %v1250_v4 = vpack.c.b16 %v1249_v9, %v1249_v9  ;;  %2574 = vmatmul.msk.bf16.vlgmr.msra.gmra.mxu1 %vm382_vm2, %v1363_v0 }
0x1758   :  { %1251 = vrot.lane.b32.xlu2 %v1250_v4, %s3689_s30 }
0x17b2   :  { %v1252_v31 = vpop.permute.xlu2 %1251 }
0x17b3   :  { %v1254_v32 = vsel %vm340_vm1, %v4094_v5, %v1252_v31 }
0x17b4   :  { %1256 = vst.msk [vmem:[#allocation7 + $0x4] sm:$0xf] %vm1127_vm13, %v1254_v32 }
0x17bb   :  { %v2854_v33 = vld [vmem:[#allocation7] sm:$0xff] }
0x17bc   :  { %2540 = vmatmul.msk.bf16.vlgmr.msrb.gmra.mxu3 %vm382_vm2, %v2854_v33  ;;  %2541 = vmatmul.msk.bf16.vlgmr.msrb.gmra.mxu0 %vm382_vm2, %v2854_v33 }
0x17d3   :  { %v1418_v39 = vpop.f32.mrf.mxu1 }
0x17db   :  { %v1420_v40 = vpop.f32.mrf.mxu1 }
0x1839   :  { %v1346_v43 = vpop.f32.mrf.mxu0 }
0x183a   :  { %v1347_v6 = vadd.f32 %v1346_v43, %v1272_v41 }
0x183c   :  { %v1436_v5 = vadd.f32 %v1431_v50, %v1347_v6 }
0x183e   :  { %3093 = vtanh.f32 %v1436_v5  ;;  %v2577_v4 = vmul.f32 -1.442695, %v1436_v5 }
0x183f   :  { %v1332_v24 = vpop.f32.mrf.mxu3 }
0x1840   :  { %v1333_v46 = vadd.f32 %v1332_v24, %v1271_v45 }
0x1841   :  { %v1348_v26 = vpop.f32.mrf.mxu0 }
0x1842   :  { %v1435_v34 = vadd.f32 %v1418_v39, %v1333_v46  ;;  %v1349_v42 = vadd.f32 %v1348_v26, %v1272_v41  ;;  %v2680_v26 = vld [vmem:[#allocation23 + $0xc0] sm:$0xf] }
0x1844   :  { %v3094_v44 = vpop.eup %3093  ;;  %v2576_v47 = vmul.f32 -1.442695, %v1435_v34 }
0x1845   :  { %1482 = vrot.lane.b32.xlu0 %v3094_v44, %s3680_s26 }
0x1846   :  { %3095 = vpow2.f32 %v2576_v47 }
0x1847   :  { %v1334_v22 = vpop.f32.mrf.mxu3 }
0x1848   :  { %v1335_v21 = vadd.f32 %v1334_v22, %v1271_v45 }
0x184c   :  { %v3096_v48 = vpop.eup %3095 }
0x184d   :  { %v1443_v49 = vadd.f32 1.0, %v3096_v48 }
0x184f   :  { %3097 = vrcp.f32 %v1443_v49  ;;  %v1456_v56 = vand.u32 2147483648, %v1443_v49  ;;  %vm1450_vm3 = vweird.f32 %v1443_v49  ;;  %v1454_v57 = vand.u32 2147483647, %v1443_v49 }
0x1851   :  { %v1457_v59 = vor.u32 1.1754944e-38, %v1456_v56  ;;  %vm1455_vm5 = vcmp.eq.f32.partialorder %v1454_v57, 8.507059e+37 }
0x1855   :  { %v3098_v51 = vpop.eup %3097 }
0x1856   :  { %v1446_v52 = vmul.f32 %v3098_v51, %v1443_v49  ;;  %vm1451_vm15 = vweird.f32 %v3098_v51 }
0x1857   :  { %vm1452_vm4 = vmor %vm1450_vm3, %vm1451_vm15 }
0x1858   :  { %v1447_v53 = vsub.f32 1.0, %v1446_v52 }
0x185a   :  { %v1448_v54 = vmul.f32 %v3098_v51, %v1447_v53 }
0x185c   :  { %v1449_v55 = vadd.f32 %v3098_v51, %v1448_v54 }
0x185e   :  { %v1453_v58 = vsel %vm1452_vm4, %v3098_v51, %v1449_v55 }
0x185f   :  { %v1458_v60 = vsel %vm1455_vm5, %v1457_v59, %v1453_v58 }
0x1860   :  { %v1480_v0 = vmul.f32 %v1478_v63, %v1458_v60 }
0x18b7   :  { %v1483_v61 = vpop.permute.xlu0 %1482 }
0x18b8   :  { %v1485_v62 = vmul.f32 %v1483_v61, %v1458_v60 }
0x18ba   :  { %1487 = vrot.lane.b32.xlu2 %v1485_v62, %s3680_s26 }
0x1914   :  { %v1488_v1 = vpop.permute.xlu2 %1487 }
0x1915   :  { %v4164_v3 = vadd.f32 %v1488_v1, %v1480_v0 }
0x1917   :  { %3099 = vtanh.f32 %v4164_v3 }
0x1918   :  { %3101 = vpow2.f32 %v2577_v4 }
0x191d   :  { %v3100_v9 = vpop.eup %3099 }
0x191e   :  { %1493 = vrot.lane.b32.xlu0 %v3100_v9, %s3680_s26  ;;  %v3102_v7 = vpop.eup %3101 }
0x191f   :  { %v1444_v8 = vadd.f32 1.0, %v3102_v7 }
0x1921   :  { %3103 = vrcp.f32 %v1444_v8  ;;  %v1471_v17 = vand.u32 2147483648, %v1444_v8  ;;  %vm1465_vm6 = vweird.f32 %v1444_v8  ;;  %v1469_v13 = vand.u32 2147483647, %v1444_v8 }
0x1923   :  { %v1472_v20 = vor.u32 1.1754944e-38, %v1471_v17  ;;  %vm1470_vm8 = vcmp.eq.f32.partialorder %v1469_v13, 8.507059e+37  ;;  %v2698_v17 = vld [vmem:[#allocation23 + $0xf0] sm:$0xf0]  ;;  %v2704_v13 = vld [vmem:[#allocation23 + $0xe8] sm:$0xf] }
0x1927   :  { %v3104_v10 = vpop.eup %3103 }
0x1928   :  { %v1461_v11 = vmul.f32 %v3104_v10, %v1444_v8  ;;  %vm1466_vm14 = vweird.f32 %v3104_v10 }
0x1929   :  { %vm1467_vm7 = vmor %vm1465_vm6, %vm1466_vm14 }
0x192a   :  { %v1462_v12 = vsub.f32 1.0, %v1461_v11  ;;  %v2696_v11 = vld [vmem:[#allocation23 + $0xe0] sm:$0xf] }
0x192c   :  { %v1463_v14 = vmul.f32 %v3104_v10, %v1462_v12  ;;  %v2901_v12 = vld [vmem:[#allocation23 + $0xec] sm:$0xf0] }
0x192e   :  { %v1464_v16 = vadd.f32 %v3104_v10, %v1463_v14  ;;  %v2899_v14 = vld [vmem:[#allocation23 + $0xe4] sm:$0xf] }
0x1930   :  { %v1468_v19 = vsel %vm1467_vm7, %v3104_v10, %v1464_v16  ;;  %v2697_v16 = vor.u32 %v2901_v12, %v2696_v11 }
0x1931   :  { %v1473_v25 = vsel %vm1470_vm8, %v1472_v20, %v1468_v19  ;;  %v2902_v19 = vld [vmem:[#allocation23 + $0xf4] sm:$0xf0]  ;;  %v2701_v20 = vor.u32 %v2899_v14, %v2698_v17  ;;  %v2879_v14 = vld [vmem:[#allocation23 + $0x44] sm:$0xf]  ;;  %v2624_v17 = vld [vmem:[#allocation23 + $0x48] sm:$0xf] }
0x1932   :  { %1802 = vmatpush.bf16.msrb.mxu1 %v2697_v16  ;;  %v2618_v16 = vld [vmem:[#allocation23 + $0x50] sm:$0xf0] }
0x1933   :  { %1815 = vmatpush.bf16.msrb.mxu2 %v2701_v20  ;;  %v2626_v20 = vld [vmem:[#allocation23 + $0x58] sm:$0xf0] }
0x1990   :  { %v1494_v23 = vpop.permute.xlu0 %1493 }
0x1991   :  { %v1496_v15 = vmul.f32 %v1494_v23, %v1473_v25  ;;  %v2705_v23 = vor.u32 %v2902_v19, %v2704_v13  ;;  %v2900_v25 = vld [vmem:[#allocation23 + $0xec] sm:$0xf]  ;;  %v2882_v13 = vld [vmem:[#allocation23 + $0x54] sm:$0xf0] }
0x1992   :  { %v2880_v19 = vld [vmem:[#allocation23 + $0x4c] sm:$0xf] }
0x1993   :  { %v4168_v37 = vpack.c.bf16 %v1496_v15, %v1496_v15  ;;  %v2706_v15 = vld [vmem:[#allocation23 + $0xf8] sm:$0xf0]  ;;  %1828 = vmatpush.bf16.msrb.mxu3 %v2705_v23 }
0x1994   :  { %v2709_v22 = vor.u32 %v2900_v25, %v2706_v15  ;;  %v2621_v25 = vor.u32 %v2879_v14, %v2618_v16  ;;  %v2600_v15 = vld [vmem:[#allocation23 + $0x20] sm:$0xf]  ;;  %v2800_v14 = vld [vmem:[#allocation24 + $0xa8] sm:$0xf]  ;;  %v2926_v16 = vld [vmem:[#allocation24 + $0xb4] sm:$0xf0] }
0x1995   :  { %2578 = vmatmul.msk.bf16.vlgmr.msra.gmra.mxu3 %vm382_vm2, %v4168_v37  ;;  %2579 = vmatmul.msk.bf16.vlgmr.msra.gmra.mxu0 %vm382_vm2, %v4168_v37 }
0x1996   :  { %1841 = vmatpush.bf16.msrb.mxu0 %v2709_v22  ;;  %v2629_v22 = vor.u32 %v2880_v19, %v2626_v20  ;;  %v2924_v19 = vld [vmem:[#allocation24 + $0xac] sm:$0xf]  ;;  %v2802_v20 = vld [vmem:[#allocation24 + $0xb8] sm:$0xf0] }
0x1a12   :  { %v1525_v28 = vpop.f32.mrf.mxu0 }
0x1a13   :  { %v1530_v29 = vadd.f32 %v1525_v28, %v1349_v42  ;;  %v2897_v42 = vld [vmem:[#allocation23 + $0xcc] sm:$0xf0]  ;;  %v2895_v28 = vld [vmem:[#allocation23 + $0xc4] sm:$0xf] }
0x1a15   :  { %3105 = vtanh.f32 %v1530_v29  ;;  %v2581_v54 = vmul.f32 -1.442695, %v1530_v29  ;;  %v2682_v29 = vld [vmem:[#allocation23 + $0xd0] sm:$0xf0] }
0x1a18   :  { %v1512_v30 = vpop.f32.mrf.mxu3 }
0x1a19   :  { %v1529_v31 = vadd.f32 %v1512_v30, %v1335_v21  ;;  %v2685_v21 = vor.u32 %v2895_v28, %v2682_v29  ;;  %v2688_v30 = vld [vmem:[#allocation23 + $0xc8] sm:$0xf]  ;;  %v2602_v28 = vld [vmem:[#allocation23 + $0x30] sm:$0xf0] }
0x1a1a   :  { %v1527_v32 = vpop.f32.mrf.mxu0  ;;  %v2608_v29 = vld [vmem:[#allocation23 + $0x28] sm:$0xf] }
0x1a1b   :  { %v3106_v33 = vpop.eup %3105  ;;  %v2580_v38 = vmul.f32 -1.442695, %v1529_v31  ;;  %v2898_v31 = vld [vmem:[#allocation23 + $0xd4] sm:$0xf0]  ;;  %v2896_v32 = vld [vmem:[#allocation23 + $0xcc] sm:$0xf]  ;;  %1816 = vmatpush.bf16.msrb.mxu2 %v2685_v21 }
0x1a1c   :  { %1572 = vrot.lane.b32.xlu1 %v3106_v33, %s3680_s26  ;;  %v2689_v33 = vor.u32 %v2898_v31, %v2688_v30  ;;  %v2876_v21 = vld [vmem:[#allocation23 + $0x2c] sm:$0xf]  ;;  %v2610_v30 = vld [vmem:[#allocation23 + $0x38] sm:$0xf0] }
0x1a1d   :  { %3107 = vpow2.f32 %v2580_v38  ;;  %v2664_v38 = vld [vmem:[#allocation23 + $0xa0] sm:$0xf] }
0x1a1e   :  { %1829 = vmatpush.bf16.msrb.mxu3 %v2689_v33 }
0x1a20   :  { %v1514_v50 = vpop.f32.mrf.mxu3 }
0x1a21   :  { %v2690_v50 = vld [vmem:[#allocation23 + $0xd8] sm:$0xf0] }
0x1a23   :  { %v3108_v39 = vpop.eup %3107 }
0x1a24   :  { %v1537_v40 = vadd.f32 1.0, %v3108_v39  ;;  %v2893_v39 = vld [vmem:[#allocation23 + $0xac] sm:$0xf0] }
0x1a26   :  { %3109 = vrcp.f32 %v1537_v40  ;;  %v1550_v35 = vand.u32 2147483648, %v1537_v40  ;;  %vm1544_vm10 = vweird.f32 %v1537_v40  ;;  %v1548_v45 = vand.u32 2147483647, %v1537_v40 }
0x1a28   :  { %v1551_v46 = vor.u32 1.1754944e-38, %v1550_v35  ;;  %vm1549_vm12 = vcmp.eq.f32.partialorder %v1548_v45, 8.507059e+37  ;;  %v2892_v35 = vld [vmem:[#allocation23 + $0xac] sm:$0xf]  ;;  %v2674_v45 = vld [vmem:[#allocation23 + $0xb8] sm:$0xf0] }
0x1a2c   :  { %v3110_v43 = vpop.eup %3109 }
0x1a2d   :  { %v1540_v41 = vmul.f32 %v3110_v43, %v1537_v40  ;;  %vm1545_vm9 = vweird.f32 %v3110_v43  ;;  %v2693_v40 = vor.u32 %v2896_v32, %v2690_v50  ;;  %v2584_v32 = vld [vmem:[#allocation23] sm:$0xf]  ;;  %v2873_v50 = vld [vmem:[#allocation23 + $0xc] sm:$0xf0] }
0x1a2e   :  { %vm1546_vm11 = vmor %vm1544_vm10, %vm1545_vm9 }
0x1a2f   :  { %v1541_v6 = vsub.f32 1.0, %v1540_v41  ;;  %v2666_v41 = vld [vmem:[#allocation23 + $0xb0] sm:$0xf0]  ;;  %1842 = vmatpush.bf16.msrb.mxu0 %v2693_v40 }
0x1a31   :  { %v1542_v5 = vmul.f32 %v3110_v43, %v1541_v6  ;;  %v2672_v6 = vld [vmem:[#allocation23 + $0xa8] sm:$0xf] }
0x1a33   :  { %v1543_v44 = vadd.f32 %v3110_v43, %v1542_v5  ;;  %v2665_v5 = vor.u32 %v2893_v39, %v2664_v38  ;;  %v2871_v38 = vld [vmem:[#allocation23 + $0x4] sm:$0xf]  ;;  %v2586_v39 = vld [vmem:[#allocation23 + $0x10] sm:$0xf0] }
0x1a35   :  { %v1547_v24 = vsel %vm1546_vm11, %v3110_v43, %v1543_v44  ;;  %v2891_v43 = vld [vmem:[#allocation23 + $0xa4] sm:$0xf]  ;;  %v2894_v44 = vld [vmem:[#allocation23 + $0xb4] sm:$0xf0] }
0x1a36   :  { %v1552_v47 = vsel %vm1549_vm12, %v1551_v46, %v1547_v24  ;;  %v2669_v24 = vor.u32 %v2891_v43, %v2666_v41  ;;  %v2648_v46 = vld [vmem:[#allocation23 + $0x80] sm:$0xf]  ;;  %v2613_v43 = vor.u32 %v2876_v21, %v2610_v30  ;;  %v2592_v41 = vld [vmem:[#allocation23 + $0x8] sm:$0xf]  ;;  %v2786_v30 = vld [vmem:[#allocation24 + $0x98] sm:$0xf0] }
0x1a37   :  { %v1570_v49 = vmul.f32 %v1552_v47, %v4164_v3 }
0x1a38   :  { %1817 = vmatpush.bf16.msrb.mxu2 %v2669_v24  ;;  %v2585_v24 = vor.u32 %v2873_v50, %v2584_v32  ;;  %v2760_v32 = vld [vmem:[#allocation24 + $0x60] sm:$0xf]  ;;  %v2915_v50 = vld [vmem:[#allocation24 + $0x64] sm:$0xf] }
0x1a8e   :  { %v1573_v34 = vpop.permute.xlu1 %1572 }
0x1a8f   :  { %v1575_v48 = vmul.f32 %v1573_v34, %v1552_v47  ;;  %v2889_v34 = vld [vmem:[#allocation23 + $0x8c] sm:$0xf0]  ;;  %v2673_v47 = vor.u32 %v2894_v44, %v2672_v6  ;;  %v2874_v6 = vld [vmem:[#allocation23 + $0x14] sm:$0xf0]  ;;  %v2594_v44 = vld [vmem:[#allocation23 + $0x18] sm:$0xf0] }
0x1a91   :  { %1577 = vrot.lane.b32.xlu2 %v1575_v48, %s3680_s26  ;;  %v2677_v48 = vor.u32 %v2892_v35, %v2674_v45  ;;  %1830 = vmatpush.bf16.msrb.mxu3 %v2673_v47  ;;  %v2824_v35 = vld [vmem:[#allocation24 + $0xe0] sm:$0xf]  ;;  %v2933_v45 = vld [vmem:[#allocation24 + $0xec] sm:$0xf0]  ;;  %v2589_v47 = vor.u32 %v2871_v38, %v2586_v39  ;;  %v2762_v39 = vld [vmem:[#allocation24 + $0x70] sm:$0xf0] }
0x1a93   :  { %1843 = vmatpush.bf16.msrb.mxu0 %v2677_v48  ;;  %v2934_v48 = vld [vmem:[#allocation24 + $0xf4] sm:$0xf0] }
0x1aeb   :  { %v1578_v51 = vpop.permute.xlu2 %1577 }
0x1aec   :  { %v4181_v52 = vadd.f32 %v1578_v51, %v1570_v49  ;;  %v2887_v49 = vld [vmem:[#allocation23 + $0x84] sm:$0xf]  ;;  %v2650_v51 = vld [vmem:[#allocation23 + $0x90] sm:$0xf0] }
0x1aee   :  { %3111 = vtanh.f32 %v4181_v52 }
0x1aef   :  { %3113 = vpow2.f32 %v2581_v54  ;;  %v2890_v54 = vld [vmem:[#allocation23 + $0x94] sm:$0xf0] }
0x1af4   :  { %v3112_v53 = vpop.eup %3111 }
0x1af5   :  { %1583 = vrot.lane.b32.xlu0 %v3112_v53, %s3680_s26  ;;  %v3114_v55 = vpop.eup %3113  ;;  %v2656_v53 = vld [vmem:[#allocation23 + $0x88] sm:$0xf] }
0x1af6   :  { %v1538_v56 = vadd.f32 1.0, %v3114_v55  ;;  %v2888_v55 = vld [vmem:[#allocation23 + $0x8c] sm:$0xf] }
0x1af8   :  { %3115 = vrcp.f32 %v1538_v56  ;;  %v1565_v62 = vand.u32 2147483648, %v1538_v56  ;;  %vm1559_vm15 = vweird.f32 %v1538_v56  ;;  %v1563_v63 = vand.u32 2147483647, %v1538_v56 }
0x1afa   :  { %v1566_v1 = vor.u32 1.1754944e-38, %v1565_v62  ;;  %vm1564_vm4 = vcmp.eq.f32.partialorder %v1563_v63, 8.507059e+37  ;;  %v2883_v62 = vld [vmem:[#allocation23 + $0x64] sm:$0xf]  ;;  %v2634_v63 = vld [vmem:[#allocation23 + $0x70] sm:$0xf0] }
0x1afe   :  { %v3116_v57 = vpop.eup %3115 }
0x1aff   :  { %v1555_v58 = vmul.f32 %v3116_v57, %v1538_v56  ;;  %vm1560_vm13 = vweird.f32 %v3116_v57  ;;  %v2658_v56 = vld [vmem:[#allocation23 + $0x98] sm:$0xf0] }
0x1b00   :  { %vm1561_vm3 = vmor %vm1559_vm15, %vm1560_vm13  ;;  %vm2214_vm13 = vcmask 23552  }
0x1b01   :  { %v1556_v59 = vsub.f32 1.0, %v1555_v58  ;;  %v2653_v58 = vor.u32 %v2887_v49, %v2650_v51  ;;  %v2932_v49 = vld [vmem:[#allocation24 + $0xec] sm:$0xf]  ;;  %v2834_v51 = vld [vmem:[#allocation24 + $0xf8] sm:$0xf0] }
0x1b03   :  { %v1557_v60 = vmul.f32 %v3116_v57, %v1556_v59  ;;  %v2632_v59 = vld [vmem:[#allocation23 + $0x60] sm:$0xf]  ;;  %1818 = vmatpush.bf16.msrb.mxu2 %v2653_v58  ;;  %v2929_v58 = vld [vmem:[#allocation24 + $0xcc] sm:$0xf0] }
0x1b05   :  { %v1558_v61 = vadd.f32 %v3116_v57, %v1557_v60  ;;  %v2657_v60 = vor.u32 %v2890_v54, %v2656_v53  ;;  %v2593_v53 = vor.u32 %v2874_v6, %v2592_v41  ;;  %v2765_v41 = vor.u32 %v2915_v50, %v2762_v39  ;;  %v2186_v39 = vld [vmem:[%s4294_s6 + $0x60] sm:$0xff] }
0x1b07   :  { %v1562_v0 = vsel %vm1561_vm3, %v3116_v57, %v1558_v61  ;;  %v2649_v57 = vor.u32 %v2889_v34, %v2648_v46  ;;  %v2661_v61 = vor.u32 %v2888_v55, %v2658_v56  ;;  %1831 = vmatpush.bf16.msrb.mxu3 %v2657_v60  ;;  %v2931_v46 = vld [vmem:[#allocation24 + $0xe4] sm:$0xf]  ;;  %v2826_v34 = vld [vmem:[#allocation24 + $0xf0] sm:$0xf0]  ;;  %v2825_v55 = vor.u32 %v2933_v45, %v2824_v35  ;;  %v2744_v35 = vld [vmem:[#allocation24 + $0x40] sm:$0xf] }
0x1b08   :  { %v1567_v3 = vsel %vm1564_vm4, %v1566_v1, %v1562_v0  ;;  %v2640_v0 = vld [vmem:[#allocation23 + $0x68] sm:$0xf]  ;;  %v2886_v1 = vld [vmem:[#allocation23 + $0x74] sm:$0xf0]  ;;  %v2829_v56 = vor.u32 %v2931_v46, %v2826_v34  ;;  %v2927_v60 = vld [vmem:[#allocation24 + $0xc4] sm:$0xf] }
0x1b09   :  { %1844 = vmatpush.bf16.msrb.mxu0 %v2661_v61  ;;  %v2641_v11 = vor.u32 %v2886_v1, %v2640_v0  ;;  %v2810_v61 = vld [vmem:[#allocation24 + $0xd0] sm:$0xf0]  ;;  %v2928_v0 = vld [vmem:[#allocation24 + $0xcc] sm:$0xf]  ;;  %v2818_v1 = vld [vmem:[#allocation24 + $0xd8] sm:$0xf0] }
0x1b0a   :  { %v2911_v46 = vld [vmem:[#allocation24 + $0x44] sm:$0xf]  ;;  %v2746_v34 = vld [vmem:[#allocation24 + $0x50] sm:$0xf0] }
0x1b0b   :  { %1832 = vmatpush.bf16.msrb.mxu3 %v2641_v11 }
0x1b67   :  { %v1584_v9 = vpop.permute.xlu0 %1583 }
0x1b68   :  { %v1586_v4 = vmul.f32 %v1584_v9, %v1567_v3  ;;  %v2884_v3 = vld [vmem:[#allocation23 + $0x6c] sm:$0xf]  ;;  %v2642_v9 = vld [vmem:[#allocation23 + $0x78] sm:$0xf0] }
0x1b69   :  { %v2645_v12 = vor.u32 %v2884_v3, %v2642_v9  ;;  %v2813_v9 = vor.u32 %v2927_v60, %v2810_v61  ;;  %v2736_v60 = vld [vmem:[#allocation24 + $0x28] sm:$0xf]  ;;  %v2910_v61 = vld [vmem:[#allocation24 + $0x34] sm:$0xf0] }
0x1b6a   :  { %2247 = vst.msk [vmem:[#allocation35] sm:$0xff] %vm382_vm2, %v1586_v4  ;;  %v1587_v7 = vpack.c.bf16 %v1586_v4, %v1586_v4 }
0x1b6b   :  { %1845 = vmatpush.bf16.msrb.mxu0 %v2645_v12  ;;  %v2794_v12 = vld [vmem:[#allocation24 + $0xb0] sm:$0xf0] }
0x1b6c   :  { %v1589_v8 = vunpack.c.l.b16 %v1587_v7  ;;  %v2637_v7 = vor.u32 %v2883_v62, %v2634_v63  ;;  %v2816_v62 = vld [vmem:[#allocation24 + $0xc8] sm:$0xf]  ;;  %v2930_v63 = vld [vmem:[#allocation24 + $0xd4] sm:$0xf0] }
0x1b6e   :  { %v1590_v10 = vpack.c.b16 %v1589_v8, %v1589_v8  ;;  %v2616_v8 = vld [vmem:[#allocation23 + $0x40] sm:$0xf]  ;;  %1819 = vmatpush.bf16.msrb.mxu2 %v2637_v7  ;;  %v2821_v7 = vor.u32 %v2928_v0, %v2818_v1  ;;  %v2908_v0 = vld [vmem:[#allocation24 + $0x2c] sm:$0xf]  ;;  %v2738_v1 = vld [vmem:[#allocation24 + $0x38] sm:$0xf0] }
0x1b6f   :  { %1846 = vmatpush.bf16.msrb.mxu0 %v2629_v22 }
0x1b70   :  { %1591 = vrot.lane.b32.xlu1 %v1590_v10, %s3680_s26  ;;  %v2881_v10 = vld [vmem:[#allocation23 + $0x4c] sm:$0xf0] }
0x1b71   :  { %v2617_v23 = vor.u32 %v2881_v10, %v2616_v8  ;;  %v2792_v8 = vld [vmem:[#allocation24 + $0xa0] sm:$0xf]  ;;  %v2923_v10 = vld [vmem:[#allocation24 + $0xa4] sm:$0xf] }
0x1b72   :  { %1820 = vmatpush.bf16.msrb.mxu2 %v2621_v25  ;;  %v2805_v25 = vor.u32 %v2924_v19, %v2802_v20 }
0x1b73   :  { %1847 = vmatpush.bf16.msrb.mxu0 %v2613_v43  ;;  %v2918_v43 = vld [vmem:[#allocation24 + $0x74] sm:$0xf0] }
0x1b78   :  { %2233 = vrot.lane.b32.xlu1 %v4069_v18, %s3690_s4  ;;  %v2681_v18 = vor.u32 %v2897_v42, %v2680_v26  ;;  %v2625_v26 = vor.u32 %v2882_v13, %v2624_v17  ;;  %v2875_v42 = vld [vmem:[#allocation23 + $0x24] sm:$0xf]  ;;  %v2797_v17 = vor.u32 %v2923_v10, %v2794_v12  ;;  %v2801_v13 = vor.u32 %v2926_v16, %v2800_v14  ;;  %v2906_v12 = vld [vmem:[#allocation24 + $0x14] sm:$0xf0]  ;;  %v2904_v14 = vld [vmem:[#allocation24 + $0xc] sm:$0xf] }
0x1b79   :  { %v2605_v33 = vor.u32 %v2875_v42, %v2602_v28  ;;  %v2784_v28 = vld [vmem:[#allocation24 + $0x88] sm:$0xf] }
0x1b7a   :  { %1803 = vmatpush.bf16.msrb.mxu1 %v2681_v18  ;;  %v2878_v18 = vld [vmem:[#allocation23 + $0x34] sm:$0xf0]  ;;  %1833 = vmatpush.bf16.msrb.mxu3 %v2625_v26  ;;  %v2778_v26 = vld [vmem:[#allocation24 + $0x90] sm:$0xf0] }
0x1b7b   :  { %v2609_v40 = vor.u32 %v2878_v18, %v2608_v29  ;;  %1821 = vmatpush.bf16.msrb.mxu2 %v2605_v33  ;;  %v2922_v29 = vld [vmem:[#allocation24 + $0x94] sm:$0xf0]  ;;  %v2920_v18 = vld [vmem:[#allocation24 + $0x8c] sm:$0xf]  ;;  %v2917_v33 = vld [vmem:[#allocation24 + $0x6c] sm:$0xf0] }
0x1b7c   :  { %v2785_v21 = vor.u32 %v2922_v29, %v2784_v28  ;;  %v2761_v38 = vor.u32 %v2917_v33, %v2760_v32  ;;  %v2187_v32 = vld [vmem:[%s4294_s6 + $0x68] sm:$0xff]  ;;  %v4210_v33 = vld [vmem:[#allocation26] sm:$0xf] }
0x1b7e   :  { %1804 = vmatpush.bf16.msrb.mxu1 %v2665_v5  ;;  %v2872_v5 = vld [vmem:[#allocation23 + $0xc] sm:$0xf]  ;;  %1834 = vmatpush.bf16.msrb.mxu3 %v2609_v40  ;;  %v2768_v40 = vld [vmem:[#allocation24 + $0x68] sm:$0xf] }
0x1b7f   :  { %v2597_v54 = vor.u32 %v2872_v5, %v2594_v44  ;;  %1822 = vmatpush.bf16.msrb.mxu2 %v2589_v47  ;;  %v2769_v6 = vor.u32 %v2918_v43, %v2768_v40  ;;  %v2916_v5 = vld [vmem:[#allocation24 + $0x6c] sm:$0xf]  ;;  %v2770_v44 = vld [vmem:[#allocation24 + $0x78] sm:$0xf0]  ;;  %v2749_v47 = vor.u32 %v2911_v46, %v2746_v34  ;;  %v1634_v40 = vperm.slane %v4210_v33, 0 }
0x1b80   :  { %2243 = vrot.lane.b32.xlu1 %v4105_v36, %s3689_s30  ;;  %v2885_v36 = vld [vmem:[#allocation23 + $0x6c] sm:$0xf0]  ;;  %v2773_v45 = vor.u32 %v2916_v5, %v2770_v44  ;;  %v2185_v43 = vld [vmem:[%s4294_s6 + $0x58] sm:$0xff] }
0x1b81   :  { %v2633_v4 = vor.u32 %v2885_v36, %v2632_v59  ;;  %v2837_v36 = vor.u32 %v2932_v49, %v2834_v51  ;;  %1848 = vmatpush.bf16.msrb.mxu0 %v2597_v54  ;;  %v2914_v49 = vld [vmem:[#allocation24 + $0x54] sm:$0xf0]  ;;  %v2912_v51 = vld [vmem:[#allocation24 + $0x4c] sm:$0xf]  ;;  %v2754_v54 = vld [vmem:[#allocation24 + $0x58] sm:$0xf0] }
0x1b82   :  { %1805 = vmatpush.bf16.msrb.mxu1 %v2649_v57  ;;  %v2808_v57 = vld [vmem:[#allocation24 + $0xc0] sm:$0xf]  ;;  %1835 = vmatpush.bf16.msrb.mxu3 %v2593_v53 }
0x1b83   :  { %2068 = vmatpush.bf16.msra.mxu2 %v2829_v56  ;;  %v2809_v3 = vor.u32 %v2929_v58, %v2808_v57  ;;  %v2728_v56 = vld [vmem:[#allocation24 + $0x20] sm:$0xf]  ;;  %v2909_v57 = vld [vmem:[#allocation24 + $0x2c] sm:$0xf0]  ;;  %v2907_v58 = vld [vmem:[#allocation24 + $0x24] sm:$0xf] }
0x1b85   :  { %2094 = vmatpush.bf16.msra.mxu0 %v2837_v36  ;;  %v2730_v36 = vld [vmem:[#allocation24 + $0x30] sm:$0xf0] }
0x1b86   :  { %1806 = vmatpush.bf16.msrb.mxu1 %v2633_v4  ;;  %v2817_v4 = vor.u32 %v2930_v63, %v2816_v62  ;;  %v2733_v62 = vor.u32 %v2907_v58, %v2730_v36  ;;  %v2737_v63 = vor.u32 %v2910_v61, %v2736_v60 }
0x1b87   :  { %2069 = vmatpush.bf16.msra.mxu2 %v2813_v9  ;;  %v2741_v9 = vor.u32 %v2908_v0, %v2738_v1 }
0x1b88   :  { %2249 = vrot.lane.b32.xlu1 %v4181_v52, %s3680_s26  ;;  %v2877_v52 = vld [vmem:[#allocation23 + $0x2c] sm:$0xf0] }
0x1b89   :  { %v2601_v31 = vor.u32 %v2877_v52, %v2600_v15  ;;  %2095 = vmatpush.bf16.msra.mxu0 %v2821_v7  ;;  %v2921_v15 = vld [vmem:[#allocation24 + $0x8c] sm:$0xf0]  ;;  %v2919_v52 = vld [vmem:[#allocation24 + $0x84] sm:$0xf] }
0x1b8a   :  { %1807 = vmatpush.bf16.msrb.mxu1 %v2617_v23  ;;  %v2776_v23 = vld [vmem:[#allocation24 + $0x80] sm:$0xf]  ;;  %v2781_v42 = vor.u32 %v2919_v52, %v2778_v26  ;;  %v2903_v7 = vld [vmem:[#allocation24 + $0x4] sm:$0xf] }
0x1b8b   :  { %2070 = vmatpush.bf16.msra.mxu2 %v2797_v17  ;;  %v2777_v22 = vor.u32 %v2921_v15, %v2776_v23  ;;  %v2722_v17 = vld [vmem:[#allocation24 + $0x18] sm:$0xf0] }
0x1b8d   :  { %2096 = vmatpush.bf16.msra.mxu0 %v2805_v25 }
0x1b8e   :  { %1808 = vmatpush.bf16.msrb.mxu1 %v2601_v31  ;;  %v2789_v31 = vor.u32 %v2920_v18, %v2786_v30  ;;  %v2189_v18 = vld [vmem:[%s4294_s6 + $0x78] sm:$0xff] }
0x1b8f   :  { %2071 = vmatpush.bf16.msra.mxu2 %v2781_v42 }
0x1b90   :  { %2228 = vrot.lane.b32.xlu1 %v4078_v27, %s3689_s30  ;;  %v2832_v27 = vld [vmem:[#allocation24 + $0xe8] sm:$0xf] }
0x1b91   :  { %v2833_v59 = vor.u32 %v2934_v48, %v2832_v27  ;;  %2097 = vmatpush.bf16.msra.mxu0 %v2789_v31  ;;  %v2752_v48 = vld [vmem:[#allocation24 + $0x48] sm:$0xf] }
0x1b92   :  { %1809 = vmatpush.bf16.msrb.mxu1 %v2585_v24  ;;  %v2913_v24 = vld [vmem:[#allocation24 + $0x4c] sm:$0xf0]  ;;  %v2753_v53 = vor.u32 %v2914_v49, %v2752_v48  ;;  %v2181_v49 = vld [vmem:[%s4294_s6 + $0x38] sm:$0xff] }
0x1b93   :  { %2081 = vmatpush.bf16.msra.mxu3 %v2833_v59  ;;  %2072 = vmatpush.bf16.msra.mxu2 %v2765_v41  ;;  %v2745_v27 = vor.u32 %v2913_v24, %v2744_v35  ;;  %v2729_v59 = vor.u32 %v2909_v57, %v2728_v56  ;;  %v2184_v41 = vld [vmem:[%s4294_s6 + $0x50] sm:$0xff]  ;;  %v2183_v35 = vld [vmem:[%s4294_s6 + $0x48] sm:$0xff]  ;;  %v1635_v24 = vperm.slane %v4210_v33, 1 }
0x1b95   :  { %2098 = vmatpush.bf16.msra.mxu0 %v2773_v45 }
0x1b96   :  { %2055 = vmatpush.bf16.msra.mxu1 %v2825_v55  ;;  %v2757_v55 = vor.u32 %v2912_v51, %v2754_v54  ;;  %v2180_v51 = vld [vmem:[%s4294_s6 + $0x30] sm:$0xff]  ;;  %v2179_v54 = vld [vmem:[%s4294_s6 + $0x28] sm:$0xff] }
0x1b97   :  { %2082 = vmatpush.bf16.msra.mxu3 %v2817_v4  ;;  %2073 = vmatpush.bf16.msra.mxu2 %v2749_v47  ;;  %v2905_v4 = vld [vmem:[#allocation24 + $0xc] sm:$0xf0]  ;;  %v1636_v47 = vperm.slane %v4210_v33, 2 }
0x1b98   :  { %2238 = vrot.lane.b32.xlu1 %v4128_v2, %s3680_s26  ;;  %v2925_v2 = vld [vmem:[#allocation24 + $0xac] sm:$0xf0]  ;;  %s4293_s26 = sld [smem:[#allocation59_spill]] }
0x1b99   :  { %v2793_v11 = vor.u32 %v2925_v2, %v2792_v8  ;;  %2099 = vmatpush.bf16.msra.mxu0 %v2757_v55  ;;  %v2714_v8 = vld [vmem:[#allocation24 + $0x10] sm:$0xf0] }
0x1b9a   :  { %2056 = vmatpush.bf16.msra.mxu1 %v2809_v3  ;;  %v2712_v3 = vld [vmem:[#allocation24] sm:$0xf]  ;;  %v2717_v10 = vor.u32 %v2903_v7, %v2714_v8 }
0x1b9b   :  { %2083 = vmatpush.bf16.msra.mxu3 %v2801_v13  ;;  %2074 = vmatpush.bf16.msra.mxu2 %v2733_v62  ;;  %v2713_v2 = vor.u32 %v2905_v4, %v2712_v3  ;;  %v2725_v13 = vor.u32 %v2904_v14, %v2722_v17  ;;  %v2176_v3 = vld [vmem:[%s4294_s6 + $0x10] sm:$0xff]  ;;  %v2175_v4 = vld [vmem:[%s4294_s6 + $0x8] sm:$0xff]  ;;  %v1637_v17 = vperm.slane %v4210_v33, 3 }
0x1b9d   :  { %2100 = vmatpush.bf16.msra.mxu0 %v2741_v9 }
0x1b9e   :  { %2057 = vmatpush.bf16.msra.mxu1 %v2793_v11  ;;  %v2720_v11 = vld [vmem:[#allocation24 + $0x8] sm:$0xf]  ;;  %v1598_v52 = vld [vmem:[%s4293_s26] sm:$0xff] }
0x1b9f   :  { %2084 = vmatpush.bf16.msra.mxu3 %v2785_v21  ;;  %v2721_v16 = vor.u32 %v2906_v12, %v2720_v11  ;;  %2075 = vmatpush.bf16.msra.mxu2 %v2717_v10  ;;  %v1890_v26 = vpack.c.bf16 %v1598_v52, %v1598_v52  ;;  %v2188_v21 = vld [vmem:[%s4294_s6 + $0x70] sm:$0xff] }
0x1ba1   :  { %2101 = vmatpush.bf16.msra.mxu0 %v2725_v13 }
0x1ba2   :  { %2058 = vmatpush.bf16.msra.mxu1 %v2777_v22 }
0x1ba3   :  { %2085 = vmatpush.bf16.msra.mxu3 %v2769_v6 }
0x1ba6   :  { %2059 = vmatpush.bf16.msra.mxu1 %v2761_v38 }
0x1ba7   :  { %2086 = vmatpush.bf16.msra.mxu3 %v2753_v53 }
0x1baa   :  { %2060 = vmatpush.bf16.msra.mxu1 %v2745_v27  ;;  %v2182_v27 = vld [vmem:[%s4294_s6 + $0x40] sm:$0xff] }
0x1bab   :  { %2087 = vmatpush.bf16.msra.mxu3 %v2737_v63  ;;  %v2177_v63 = vld [vmem:[%s4294_s6 + $0x18] sm:$0xff] }
0x1bae   :  { %2061 = vmatpush.bf16.msra.mxu1 %v2729_v59  ;;  %v2178_v59 = vld [vmem:[%s4294_s6 + $0x20] sm:$0xff] }
0x1baf   :  { %2088 = vmatpush.bf16.msra.mxu3 %v2721_v16 }
0x1bb2   :  { %2062 = vmatpush.bf16.msra.mxu1 %v2713_v2  ;;  %v2174_v2 = vld [vmem:[%s4294_s6] sm:$0xff] }
0x1be2   :  { %v1592_v19 = vpop.permute.xlu1 %1591 }
0x1be3   :  { %v1594_v20 = vsel %vm382_vm2, %v4168_v37, %v1592_v19 }
0x1be4   :  { %1596 = vst [vmem:[#allocation8] sm:$0xf] %v1594_v20 }
0x1bea   :  { %v2234_v23 = vpop.permute.xlu1 %2233 }
0x1beb   :  { %2236 = vst.msk [vmem:[#allocation30] sm:$0xff] %vm401_vm0, %v2234_v23  ;;  %v1597_v25 = vld [vmem:[#allocation8] sm:$0xf] }
0x1bec   :  { %1810 = vmatmul.bf16.vlgmr.msrb.gmra.mxu1 %v1597_v25  ;;  %1823 = vmatmul.bf16.vlgmr.msrb.gmra.mxu2 %v1597_v25 }
0x1bed   :  { %1836 = vmatmul.bf16.vlgmr.msrb.gmra.mxu3 %v1597_v25  ;;  %1849 = vmatmul.bf16.vlgmr.msrb.gmra.mxu0 %v1597_v25 }
0x1bee   :  { %2194 = vmatpush.msrb.mxu1 %v2189_v18 }
0x1bf0   :  { %2195 = vmatpush.msrb.mxu1 %v2188_v21 }
0x1bf2   :  { %v2244_v15 = vpop.permute.xlu1 %2243  ;;  %2196 = vmatpush.msrb.mxu1 %v2187_v32 }
0x1bf3   :  { %2246 = vst.msk [vmem:[#allocation33] sm:$0xff] %vm340_vm1, %v2244_v15 }
0x1bf4   :  { %2197 = vmatpush.msrb.mxu1 %v2186_v39 }
0x1bf6   :  { %2198 = vmatpush.msrb.mxu1 %v2185_v43 }
0x1bf8   :  { %2199 = vmatpush.msrb.mxu1 %v2184_v41 }
0x1bfa   :  { %v2250_v22 = vpop.permute.xlu1 %2249  ;;  %2200 = vmatpush.msrb.mxu1 %v2183_v35 }
0x1bfb   :  { %2252 = vst.msk [vmem:[#allocation36] sm:$0xff] %vm382_vm2, %v2250_v22 }
0x1bfc   :  { %2063 = vmatmul.bf16.vlgmr.msra.gmra.mxu1 %v1890_v26  ;;  %2076 = vmatmul.bf16.vlgmr.msra.gmra.mxu2 %v1890_v26 }
0x1bfd   :  { %2089 = vmatmul.bf16.vlgmr.msra.gmra.mxu3 %v1890_v26  ;;  %2102 = vmatmul.bf16.vlgmr.msra.gmra.mxu0 %v1890_v26 }
0x1bfe   :  { %2201 = vmatpush.msrb.mxu1 %v2182_v27 }
0x1c00   :  { %2202 = vmatpush.msrb.mxu1 %v2181_v49 }
0x1c02   :  { %v2229_v37 = vpop.permute.xlu1 %2228  ;;  %2203 = vmatpush.msrb.mxu1 %v2180_v51 }
0x1c03   :  { %2231 = vst.msk [vmem:[#allocation29] sm:$0xff] %vm401_vm0, %v2229_v37 }
0x1c04   :  { %2204 = vmatpush.msrb.mxu1 %v2179_v54 }
0x1c06   :  { %2205 = vmatpush.msrb.mxu1 %v2178_v59 }
0x1c08   :  { %2206 = vmatpush.msrb.mxu1 %v2177_v63 }
0x1c0a   :  { %v2239_v42 = vpop.permute.xlu1 %2238  ;;  %2207 = vmatpush.msrb.mxu1 %v2176_v3 }
0x1c0b   :  { %2241 = vst.msk [vmem:[#allocation32] sm:$0xff] %vm340_vm1, %v2239_v42 }
0x1c0c   :  { %2208 = vmatpush.msrb.mxu1 %v2175_v4 }
0x1c0e   :  { %2209 = vmatpush.msrb.mxu1 %v2174_v2 }
0x1c69   :  { %v1811_v28 = vpop.f32.mrf.mxu1 }
0x1c6a   :  { %v4205_v29 = vpop.f32.mrf.mxu0  ;;  %v1812_v5 = vadd.f32 %v1811_v28, %v1634_v40  ;;  %v1599_v40 = vld [vmem:[#allocation27] sm:$0xff] }
0x1c6b   :  { %v1851_v20 = vadd.f32 %v4205_v29, %v1637_v17 }
0x1c6f   :  { %v1824_v30 = vpop.f32.mrf.mxu2 }
0x1c70   :  { %v1837_v31 = vpop.f32.mrf.mxu3  ;;  %v1825_v53 = vadd.f32 %v1824_v30, %v1635_v24 }
0x1c71   :  { %v1813_v50 = vpop.f32.mrf.mxu1  ;;  %v1838_v55 = vadd.f32 %v1837_v31, %v1636_v47 }
0x1c72   :  { %v1852_v38 = vpop.f32.mrf.mxu0 }
0x1c77   :  { %v1826_v6 = vpop.f32.mrf.mxu2 }
0x1c78   :  { %v1839_v44 = vpop.f32.mrf.mxu3 }
0x1c79   :  { %v2064_v45 = vpop.f32.mrf.mxu1 }
0x1c7a   :  { %v2107_v46 = vadd.f32 %v2064_v45, %v1812_v5  ;;  %v2103_v34 = vpop.f32.mrf.mxu0 }
0x1c7b   :  { %v2110_v15 = vadd.f32 %v2103_v34, %v1851_v20 }
0x1c7c   :  { %v2838_v48 = vmul.f32 -1.442695, %v2107_v46 }
0x1c7e   :  { %3117 = vpow2.f32 %v2838_v48 }
0x1c7f   :  { %v2077_v56 = vpop.f32.mrf.mxu2 }
0x1c80   :  { %v2108_v57 = vadd.f32 %v2077_v56, %v1825_v53  ;;  %v2090_v58 = vpop.f32.mrf.mxu3  ;;  %v2996_v53 = vld [vmem:[%s4295_s11] ss:$0 sm:$0xff] }
0x1c81   :  { %v2109_v36 = vadd.f32 %v2090_v58, %v1838_v55  ;;  %v2066_v60 = vpop.f32.mrf.mxu1 }
0x1c82   :  { %v2839_v61 = vmul.f32 -1.442695, %v2108_v57  ;;  %v2105_v62 = vpop.f32.mrf.mxu0 }
0x1c83   :  { %v2840_v0 = vmul.f32 -1.442695, %v2109_v36 }
0x1c84   :  { %v3118_v1 = vpop.eup %3117  ;;  %3119 = vpow2.f32 %v2839_v61 }
0x1c85   :  { %v2120_v9 = vadd.f32 1.0, %v3118_v1  ;;  %3121 = vpow2.f32 %v2840_v0 }
0x1c87   :  { %3123 = vrcp.f32 %v2120_v9  ;;  %v2079_v7 = vpop.f32.mrf.mxu2  ;;  %v2134_v37 = vand.u32 2147483648, %v2120_v9  ;;  %vm2128_vm1 = vweird.f32 %v2120_v9  ;;  %v2132_v28 = vand.u32 2147483647, %v2120_v9 }
0x1c88   :  { %v2092_v8 = vpop.f32.mrf.mxu3 }
0x1c89   :  { %v2135_v29 = vor.u32 1.1754944e-38, %v2134_v37  ;;  %vm2133_vm14 = vcmp.eq.f32.partialorder %v2132_v28, 8.507059e+37 }
0x1c8a   :  { %v3120_v10 = vpop.eup %3119 }
0x1c8b   :  { %v3122_v11 = vpop.eup %3121  ;;  %v2121_v12 = vadd.f32 1.0, %v3120_v10 }
0x1c8c   :  { %v2122_v14 = vadd.f32 1.0, %v3122_v11 }
0x1c8d   :  { %v3124_v16 = vpop.eup %3123  ;;  %3125 = vrcp.f32 %v2121_v12  ;;  %v2149_v21 = vand.u32 2147483648, %v2121_v12  ;;  %v2147_v32 = vand.u32 2147483647, %v2121_v12  ;;  %vm2143_vm6 = vweird.f32 %v2121_v12 }
0x1c8e   :  { %v2124_v13 = vmul.f32 %v3124_v16, %v2120_v9  ;;  %3127 = vrcp.f32 %v2122_v14  ;;  %vm2129_vm0 = vweird.f32 %v3124_v16  ;;  %v2164_v46 = vand.u32 2147483648, %v2122_v14 }
0x1c8f   :  { %vm2130_vm2 = vmor %vm2128_vm1, %vm2129_vm0  ;;  %3129 = vtanh.f32 %v2110_v15  ;;  %v2150_v39 = vor.u32 1.1754944e-38, %v2149_v21  ;;  %vm2148_vm8 = vcmp.eq.f32.partialorder %v2147_v32, 8.507059e+37  ;;  %vm2158_vm10 = vweird.f32 %v2122_v14 }
0x1c90   :  { %v2125_v19 = vsub.f32 1.0, %v2124_v13  ;;  %v2162_v34 = vand.u32 2147483647, %v2122_v14  ;;  %v2165_v47 = vor.u32 1.1754944e-38, %v2164_v46 }
0x1c92   :  { %v2126_v23 = vmul.f32 %v3124_v16, %v2125_v19  ;;  %vm2163_vm12 = vcmp.eq.f32.partialorder %v2162_v34, 8.507059e+37 }
0x1c93   :  { %v3126_v25 = vpop.eup %3125 }
0x1c94   :  { %v3128_v52 = vpop.eup %3127  ;;  %v2127_v26 = vadd.f32 %v3124_v16, %v2126_v23  ;;  %v2139_v22 = vmul.f32 %v3126_v25, %v2121_v12  ;;  %vm2144_vm5 = vweird.f32 %v3126_v25 }
0x1c95   :  { %v2154_v42 = vmul.f32 %v3128_v52, %v2122_v14  ;;  %vm2145_vm7 = vmor %vm2143_vm6, %vm2144_vm5  ;;  %v3130_v41 = vpop.eup %3129  ;;  %vm2159_vm9 = vweird.f32 %v3128_v52 }
0x1c96   :  { %v2140_v18 = vsub.f32 1.0, %v2139_v22  ;;  %v2131_v30 = vsel %vm2130_vm2, %v3124_v16, %v2127_v26  ;;  %vm2160_vm11 = vmor %vm2158_vm10, %vm2159_vm9 }
0x1c97   :  { %v2155_v33 = vsub.f32 1.0, %v2154_v42  ;;  %v2136_v38 = vsel %vm2133_vm14, %v2135_v29, %v2131_v30 }
0x1c98   :  { %v2141_v31 = vmul.f32 %v3126_v25, %v2140_v18  ;;  %v2170_v44 = vmul.f32 %v3130_v41, %v2136_v38 }
0x1c99   :  { %v2156_v5 = vmul.f32 %v3128_v52, %v2155_v33 }
0x1c9a   :  { %v2142_v50 = vadd.f32 %v3126_v25, %v2141_v31 }
0x1c9b   :  { %v2157_v24 = vadd.f32 %v3128_v52, %v2156_v5 }
0x1c9c   :  { %v2146_v43 = vsel %vm2145_vm7, %v3126_v25, %v2142_v50 }
0x1c9d   :  { %v2151_v6 = vsel %vm2148_vm8, %v2150_v39, %v2146_v43  ;;  %v2161_v27 = vsel %vm2160_vm11, %v3128_v52, %v2157_v24 }
0x1c9e   :  { %v2169_v35 = vmul.f32 %v2151_v6, %v1599_v40  ;;  %v2166_v49 = vsel %vm2163_vm12, %v2165_v47, %v2161_v27 }
0x1ca0   :  { %v2171_v45 = vadd.f32 %v2170_v44, %v2169_v35 }
0x1ca2   :  { %3131 = vtanh.f32 %v2171_v45  ;;  %2254 = vst [vmem:[#allocation39] sm:$0xff] %v2171_v45 }
0x1ca8   :  { %v3132_v48 = vpop.eup %3131 }
0x1ca9   :  { %v2173_v51 = vmul.f32 %v3132_v48, %v2166_v49 }
0x1cab   :  { %2210 = vmatmul.f32.vlgmr.msrb.gmra.mxu1 %v2173_v51  ;;  %2253 = vst [vmem:[#allocation38] sm:$0xff] %v2173_v51 }
0x1d28   :  { %v2211_v54 = vpop.f32.mrf.mxu1 }
0x1d29   :  { %v2212_v55 = vadd.f32 %v2996_v53, %v2211_v54 }
0x1d2b   :  { %v2215_v56 = vsel %vm2214_vm13, %v2212_v55, -inf }
0x1d2c   :  { %2216 = vmax.xlane.f32.xlu2 %v2215_v56 }
0x1d9f   :  { %v2217_v57 = vpop.xlane.xlu2 %2216 }
0x1da0   :  { %v2218_v58 = vsub.f32 %v2212_v55, %v2217_v57 }
0x1da2   :  { %v2219_v59 = vmul.f32 1.442695, %v2218_v58 }
0x1da4   :  { %3133 = vpow2.f32 %v2219_v59 }
0x1daa   :  { %v4233_v36 = vpop.eup %3133 }
0x1dab   :  { %3448 = shalt.err (!%p3445_p8)
}
0x1dac   :  { %2278 = dma.vmem_to_hbm [thread:$0]  %s2274_s18, 128, %s2276_s12, [#allocation31]   ;;  %v2221_v60 = vsel %vm2214_vm13, %v4233_v36, 0.0 }
0x1dad   :  { %s4297_s27 = sld [smem:[#allocation66_spill]]  ;;  %s3693_s23 = smov [#allocation33]   ;;  %2222 = vadd.xlane.f32.xlu0 %v2221_v60 }
0x1dae   :  { %s2295_s28 = sshll.u32 %s3693_s23, 4  ;;  %s2296_s28 = int_to_ptr.vmem [resolvable:$true] %s2295_s28 }
0x1db3   :  { %s2297_s21 = sshll.u32 %s4297_s27, 4  ;;  %s3465_s8 = scalar_lea.hbm %s4297_s27, 8  ;;  %s2298_s21 = int_to_ptr.hbm [resolvable:$true] %s2297_s21 }
0x1db4   :  { %s3461_s1 = sshra.s32 %s2298_s21, 4  ;;  %s3462_s1 = int_to_ptr.hbm [resolvable:$true] %s3461_s1 }
0x1db5   :  { %s3463_s25 = scalar_lea.hbm %s3462_s1, 8  ;;  %p3466_p10 = scmp.lt.s32.totalorder %s3462_s1, %s4297_s27 }
0x1db6   :  { %p3464_p9 = scmp.ne.s32.totalorder %s3462_s1, %s3463_s25  ;;  %p3467_p11 = scmp.lt.s32.totalorder %s3465_s8, %s3463_s25 }
0x1db8   :  { %p3468_p12 = por %p3467_p11, %p3466_p10 }
0x1dba   :  { %p3469_p13 = pnand %p3468_p12, %p3464_p9 }
0x1dbc   :  { %3472 = shalt.err (!%p3469_p13)
}
0x1dbd   :  { %2300 = dma.vmem_to_hbm [thread:$0]  %s2296_s28, 128, %s2298_s21, [#allocation34]  }
0x1dbe   :  { %s2319_s19 = sshll.u32 %s3853_s3, 4  ;;  %s3694_s9 = smov [#allocation36]   ;;  %s2320_s19 = int_to_ptr.hbm [resolvable:$true] %s2319_s19 }
0x1dbf   :  { %s2317_s30 = sshll.u32 %s3694_s9, 4  ;;  %s3485_s4 = sshra.s32 %s2320_s19, 4  ;;  %s2318_s30 = int_to_ptr.vmem [resolvable:$true] %s2317_s30  ;;  %s3486_s4 = int_to_ptr.hbm [resolvable:$true] %s3485_s4 }
0x1dc0   :  { %s3487_s2 = scalar_lea.hbm %s3486_s4, 8  ;;  %s3489_s7 = scalar_lea.hbm %s3853_s3, 8 }
0x1dc1   :  { %p3488_p0 = scmp.ne.s32.totalorder %s3486_s4, %s3487_s2  ;;  %p3490_p1 = scmp.lt.s32.totalorder %s3486_s4, %s3853_s3 }
0x1dc2   :  { %p3491_p2 = scmp.lt.s32.totalorder %s3489_s7, %s3487_s2 }
0x1dc4   :  { %p3492_p3 = por %p3491_p2, %p3490_p1 }
0x1dc6   :  { %p3493_p4 = pnand %p3492_p3, %p3488_p0 }
0x1dc8   :  { %3496 = shalt.err (!%p3493_p4)
}
0x1dc9   :  { %2322 = dma.vmem_to_hbm [thread:$0]  %s2318_s30, 128, %s2320_s19, [#allocation37]  }
0x1dca   :  { %s4298_s5 = sld [smem:[#allocation63_spill]]  ;;  %s3695_s10 = smov [#allocation29]  }
0x1dcb   :  { %s2262_s0 = sshll.u32 %s3695_s10, 4  ;;  %s2263_s0 = int_to_ptr.vmem [resolvable:$true] %s2262_s0 }
0x1dd0   :  { %s2264_s14 = sshll.u32 %s4298_s5, 4  ;;  %s3513_s11 = scalar_lea.hbm %s4298_s5, 8  ;;  %s2265_s14 = int_to_ptr.hbm [resolvable:$true] %s2264_s14 }
0x1dd1   :  { %s3509_s26 = sshra.s32 %s2265_s14, 4  ;;  %s3510_s26 = int_to_ptr.hbm [resolvable:$true] %s3509_s26 }
0x1dd2   :  { %s3511_s6 = scalar_lea.hbm %s3510_s26, 8  ;;  %p3514_p6 = scmp.lt.s32.totalorder %s3510_s26, %s4298_s5 }
0x1dd3   :  { %p3512_p5 = scmp.ne.s32.totalorder %s3510_s26, %s3511_s6  ;;  %p3515_p7 = scmp.lt.s32.totalorder %s3513_s11, %s3511_s6 }
0x1dd5   :  { %p3516_p8 = por %p3515_p7, %p3514_p6 }
0x1dd7   :  { %p3517_p9 = pnand %p3516_p8, %p3512_p5 }
0x1dd9   :  { %3520 = shalt.err (!%p3517_p9)
}
0x1dda   :  { %2267 = dma.vmem_to_hbm [thread:$0]  %s2263_s0, 128, %s2265_s14, [#allocation11]  }
0x1ddb   :  { %s4299_s3 = sld [smem:[#allocation65_spill]]  ;;  %s3696_s15 = smov [#allocation32]  }
0x1ddc   :  { %s2284_s18 = sshll.u32 %s3696_s15, 4  ;;  %s2285_s18 = int_to_ptr.vmem [resolvable:$true] %s2284_s18 }
0x1de1   :  { %s2286_s13 = sshll.u32 %s4299_s3, 4  ;;  %s3537_s22 = scalar_lea.hbm %s4299_s3, 8  ;;  %s2287_s13 = int_to_ptr.hbm [resolvable:$true] %s2286_s13 }
0x1de2   :  { %s3533_s12 = sshra.s32 %s2287_s13, 4  ;;  %s3534_s12 = int_to_ptr.hbm [resolvable:$true] %s3533_s12 }
0x1de3   :  { %s3535_s16 = scalar_lea.hbm %s3534_s12, 8  ;;  %p3538_p11 = scmp.lt.s32.totalorder %s3534_s12, %s4299_s3 }
0x1de4   :  { %p3536_p10 = scmp.ne.s32.totalorder %s3534_s12, %s3535_s16  ;;  %p3539_p12 = scmp.lt.s32.totalorder %s3537_s22, %s3535_s16 }
0x1de6   :  { %p3540_p13 = por %p3539_p12, %p3538_p11 }
0x1de8   :  { %p3541_p0 = pnand %p3540_p13, %p3536_p10 }
0x1dea   :  { %3544 = shalt.err (!%p3541_p0)
}
0x1deb   :  { %2289 = dma.vmem_to_hbm [thread:$0]  %s2285_s18, 128, %s2287_s13, [#allocation31]  }
0x1dec   :  { %s3697_s20 = smov [#allocation35]   ;;  %s2308_s23 = sshll.u32 %s3848_s17, 4  ;;  %s2309_s23 = int_to_ptr.hbm [resolvable:$true] %s2308_s23 }
0x1ded   :  { %s2306_s27 = sshll.u32 %s3697_s20, 4  ;;  %s3557_s28 = sshra.s32 %s2309_s23, 4  ;;  %s2307_s27 = int_to_ptr.vmem [resolvable:$true] %s2306_s27  ;;  %s3558_s28 = int_to_ptr.hbm [resolvable:$true] %s3557_s28 }
0x1dee   :  { %s3559_s21 = scalar_lea.hbm %s3558_s28, 8  ;;  %s3561_s1 = scalar_lea.hbm %s3848_s17, 8 }
0x1def   :  { %p3560_p1 = scmp.ne.s32.totalorder %s3558_s28, %s3559_s21  ;;  %p3562_p2 = scmp.lt.s32.totalorder %s3558_s28, %s3848_s17 }
0x1df0   :  { %p3563_p3 = scmp.lt.s32.totalorder %s3561_s1, %s3559_s21 }
0x1df2   :  { %p3564_p4 = por %p3563_p3, %p3562_p2 }
0x1df4   :  { %p3565_p5 = pnand %p3564_p4, %p3560_p1 }
0x1df6   :  { %3568 = shalt.err (!%p3565_p5)
}
0x1df7   :  { %2311 = dma.vmem_to_hbm [thread:$0]  %s2307_s27, 128, %s2309_s23, [#allocation34]  }
0x1df8   :  { %s2330_s25 = sshll.u32 %s3858_s29, 4  ;;  %s3698_s8 = smov [#allocation38]   ;;  %s2331_s25 = int_to_ptr.hbm [resolvable:$true] %s2330_s25 }
0x1df9   :  { %s2328_s19 = sshll.u32 %s3698_s8, 4  ;;  %s3581_s9 = sshra.s32 %s2331_s25, 4  ;;  %s2329_s19 = int_to_ptr.vmem [resolvable:$true] %s2328_s19  ;;  %s3582_s9 = int_to_ptr.hbm [resolvable:$true] %s3581_s9 }
0x1dfa   :  { %s3583_s30 = scalar_lea.hbm %s3582_s9, 8  ;;  %s3585_s4 = scalar_lea.hbm %s3858_s29, 8 }
0x1dfb   :  { %p3584_p6 = scmp.ne.s32.totalorder %s3582_s9, %s3583_s30  ;;  %p3586_p7 = scmp.lt.s32.totalorder %s3582_s9, %s3858_s29 }
0x1dfc   :  { %p3587_p8 = scmp.lt.s32.totalorder %s3585_s4, %s3583_s30 }
0x1dfe   :  { %p3588_p9 = por %p3587_p8, %p3586_p7 }
0x1e00   :  { %p3589_p10 = pnand %p3588_p9, %p3584_p6 }
0x1e02   :  { %3592 = shalt.err (!%p3589_p10)
}
0x1e03   :  { %2333 = dma.vmem_to_hbm [thread:$0]  %s2329_s19, 128, %s2331_s25, [#allocation37]  }
0x1e04   :  { %s3699_s17 = smov [#allocation39]   ;;  %s2341_s7 = sshll.u32 %s3863_s24, 4  ;;  %s2342_s7 = int_to_ptr.hbm [resolvable:$true] %s2341_s7 }
0x1e05   :  { %s2339_s2 = sshll.u32 %s3699_s17, 4  ;;  %s3605_s5 = sshra.s32 %s2342_s7, 4  ;;  %s2340_s2 = int_to_ptr.vmem [resolvable:$true] %s2339_s2  ;;  %s3606_s5 = int_to_ptr.hbm [resolvable:$true] %s3605_s5 }
0x1e06   :  { %s3607_s10 = scalar_lea.hbm %s3606_s5, 8  ;;  %s3609_s0 = scalar_lea.hbm %s3863_s24, 8 }
0x1e07   :  { %p3608_p11 = scmp.ne.s32.totalorder %s3606_s5, %s3607_s10  ;;  %p3610_p12 = scmp.lt.s32.totalorder %s3606_s5, %s3863_s24 }
0x1e08   :  { %p3611_p13 = scmp.lt.s32.totalorder %s3609_s0, %s3607_s10 }
0x1e0a   :  { %p3612_p0 = por %p3611_p13, %p3610_p12 }
0x1e0c   :  { %p3613_p1 = pnand %p3612_p0, %p3608_p11 }
0x1e0e   :  { %3616 = shalt.err (!%p3613_p1)
}
0x1e0f   :  { %2344 = dma.vmem_to_hbm [thread:$0]  %s2340_s2, 128, %s2342_s7, [#allocation40]  }
0x1e10   :  { %s4300_s29 = sld [smem:[#allocation62_spill]] }
0x1e20   :  { %v2223_v61 = vpop.xlane.xlu0 %2222 }
0x1e21   :  { %3135 = vrcp.f32 %v2223_v61 }
0x1e27   :  { %v3136_v62 = vpop.eup %3135 }
0x1e28   :  { %v2225_v63 = vmul.f32 %v3136_v62, %v4233_v36 }
0x1e2a   :  { %2226 = vst.msk [vmem:[%s4300_s29] sm:$0xff] %vm2214_vm13, %v2225_v63 }
0x1e2b   :  { %3631 = dma.done.wait [#allocation11], 128  }
0x1e2c   :  { %3632 = vsyncadd [#allocation11], 4294967168 }
0x1e2d   :  { %3633 = dma.done.wait [#allocation31], 256  }
0x1e2e   :  { %3634 = vsyncadd [#allocation31], 4294967040 }
0x1e2f   :  { %3635 = dma.done.wait [#allocation34], 256  }
0x1e30   :  { %3636 = vsyncadd [#allocation34], 4294967040 }
0x1e31   :  { %3637 = dma.done.wait [#allocation37], 256  }
0x1e32   :  { %3638 = vsyncadd [#allocation37], 4294967040 }
0x1e33   :  { %3639 = dma.done.wait [#allocation40], 128  }
0x1e34   :  { %3640 = vsyncadd [#allocation40], 4294967168 }
0x1e35   :  { %2379 = vsyncpa [#allocation10], 1 }
0x1e36   :  { %2380 = vsyncpa [#allocation13], 1 }
0x1e37   :  { %2381 = vsyncpa [#allocation16], 1 }
0x1e38   :  { %2382 = vsyncpa [#allocation19], 1 }
0x1e39   :  { %2383 = vsyncpa [#allocation22], 1 }
0x1e3a   :  { %2384 = vsyncpa [#allocation25], 1 }
0x1e3b   :  { %2385 = vsyncpa [#allocation28], 1 }
0x1e3c   :  { %2386 = vsyncpa [#allocation11], 1 }
0x1e3d   :  { %2387 = vsyncpa [#allocation31], 1 }
0x1e3e   :  { %2388 = vsyncpa [#allocation34], 1 }
0x1e3f   :  { %2389 = vsyncpa [#allocation37], 1 }
0x1e40   :  { %2390 = vsyncpa [#allocation40], 1 }

</bundles_post_ra>
